<compile_context>
chip_gen: v7x
topology: tpu7x:2x2x1
jax: 0.10.0
libtpu: 0.0.40
codegen_flags: <defaults>
</compile_context>

<pallas_src>
import functools

import jax
import jax.numpy as jnp
from jax import lax
from jax.experimental import pallas as pl
from jax.experimental.pallas import tpu as pltpu


def _round_up(v, m):
    return ((v + m - 1) // m) * m


# ----------------------------- Pallas kernel --------------------------------

def _conv_relu_pool_kernel(xa_ref, xb_ref, w_ref, b_ref, y_ref, p_ref, zh_scr,
                           *, Hs, Wc, Cin, Cout, nstrips):
    """One (batch, D-plane-pair) grid step.

    xa_ref, xb_ref: (2, Hc+2, Wc+2, Cin) bf16   padded planes [2d, 2d+2), [2d+2, 2d+4)
    w_ref:          (3, 9*Cin, Cout)     bf16   weights folded as (kd, (kh, kw, cin), cout)
    b_ref:          (1, Cout)            f32
    y_ref:          (2, Hc, Wc, Cout)    bf16   relu(conv) for output planes 2d, 2d+1
    p_ref:          (Hc//2, Wc//2, Cout) bf16   fully 2x2x2 max-pooled plane d
    zh_scr:         (Hs//2, Wc, Cout)    f32    scratch for the W-pair pooling step
    """
    Rs = Hs * Wc
    bvec = b_ref[...]                               # (1, Cout) f32, loop-invariant
    wks = [w_ref[k] for k in range(3)]              # (9*Cin, Cout) bf16, loop-invariant

    @pl.loop(0, nstrips)
    def _(s):
        row0 = pl.multiple_of(s * Hs, Hs)           # first output row of this strip

        outs = [None, None]
        # Walk the 4 local padded D-planes once; each feeds 1-2 output planes of the pair.
        for dloc in range(4):
            src = xa_ref if dloc < 2 else xb_ref
            di = dloc % 2
            # Fold the 9 (kh, kw) taps of this plane into the contraction axis:
            # tap9[(h, w), (kh*3 + kw)*Cin + ci] = x_pad[dloc, row0 + h + kh, w + kw, ci]
            pieces = [src[di, pl.ds(row0 + kh, Hs), kw:kw + Wc, :]
                      for kh in range(3) for kw in range(3)]
            tap9 = jnp.concatenate(pieces, axis=-1).reshape(Rs, 9 * Cin)   # bf16
            for t in range(2):                      # output plane within the D pair
                kd = dloc - t
                if 0 <= kd <= 2:
                    c = jnp.dot(tap9, wks[kd], preferred_element_type=jnp.float32)
                    outs[t] = c if outs[t] is None else outs[t] + c

        # Bias + ReLU; store this strip of the two full-resolution conv planes (bf16).
        for t in range(2):
            outs[t] = jnp.maximum(outs[t] + bvec, 0.0)                     # (Rs, Cout) f32
            y_ref[t, pl.ds(row0, Hs), :, :] = (
                outs[t].reshape(Hs, Wc, Cout).astype(y_ref.dtype))

        # Fused 2x2x2 max-pool of this strip: D pair, H pairs (leading-axis ops only),
        # then W pairs via a stride-2 read of the VMEM scratch.
        zd = jnp.maximum(outs[0], outs[1]).reshape(Hs // 2, 2, Wc, Cout)
        zh_scr[...] = jnp.maximum(zd[:, 0], zd[:, 1])                      # (Hs//2, Wc, Cout)
        zp = jnp.maximum(zh_scr[:, pl.ds(0, Wc // 2, stride=2), :],
                         zh_scr[:, pl.ds(1, Wc // 2, stride=2), :])        # (Hs//2, Wc//2, Cout)
        p_ref[pl.ds(s * (Hs // 2), Hs // 2), :, :] = zp.astype(p_ref.dtype)


# ------------------------------ wrapper --------------------------------------

def contracting_block_forward(x_ncdhw, weight_oidhw, bias, *, strip_rows=8):
    """Pallas implementation of ContractingBlock.forward (NCDHW in / NCDHW out)."""
    N, Cin, D, H, W = x_ncdhw.shape
    Cout = weight_oidhw.shape[0]
    assert weight_oidhw.shape == (Cout, Cin, 3, 3, 3)
    Hs = strip_rows
    assert Hs % 2 == 0

    # Internal compute sizes: D even (pool pairs), H a multiple of the strip size,
    # W a multiple of 16 (bf16 sublane tile).  Padded garbage is sliced away below.
    Dc = _round_up(D, 2)
    Hc = _round_up(H, Hs)
    Wc = _round_up(W, 16)
    nstrips = Hc // Hs

    # Channels-last, bf16, zero-padded: 1-halo on each side plus alignment padding.
    xl = jnp.transpose(x_ncdhw, (0, 2, 3, 4, 1)).astype(jnp.bfloat16)        # (N,D,H,W,Cin)
    xp = jnp.pad(xl, ((0, 0),
                      (1, 1 + Dc - D),
                      (1, 1 + Hc - H),
                      (1, 1 + Wc - W),
                      (0, 0)))                                               # (N,Dc+2,Hc+2,Wc+2,Cin)

    # Weights folded to match the in-kernel tap concat order: (kd, (kh, kw, cin), cout).
    w9 = (jnp.transpose(weight_oidhw, (2, 3, 4, 1, 0))
          .reshape(3, 9 * Cin, Cout).astype(jnp.bfloat16))
    b2 = bias.reshape(1, Cout).astype(jnp.float32)

    kernel = functools.partial(_conv_relu_pool_kernel, Hs=Hs, Wc=Wc,
                               Cin=Cin, Cout=Cout, nstrips=nstrips)

    flops = 2 * N * Dc * Hc * Wc * Cout * 27 * Cin
    bytes_accessed = (2 * xp.size * 2                                        # bf16 in, ~2x D-halo
                      + w9.size * 2 + b2.size * 4
                      + N * Dc * Hc * Wc * Cout * 2                          # y bf16
                      + N * (Dc // 2) * (Hc // 2) * (Wc // 2) * Cout * 2)    # pooled bf16

    y_pad, p_pad = pl.pallas_call(
        kernel,
        out_shape=(
            jax.ShapeDtypeStruct((N, Dc, Hc, Wc, Cout), jnp.bfloat16),
            jax.ShapeDtypeStruct((N, Dc // 2, Hc // 2, Wc // 2, Cout), jnp.bfloat16),
        ),
        grid_spec=pltpu.PrefetchScalarGridSpec(
            num_scalar_prefetch=0,
            grid=(N, Dc // 2),
            in_specs=[
                # Two adjacent 2-plane D-blocks of the same padded input give the 4-plane
                # halo window [2d, 2d+4) without materializing any overlapping copy in HBM.
                pl.BlockSpec((None, 2, Hc + 2, Wc + 2, Cin),
                             lambda n, d: (n, d, 0, 0, 0)),
                pl.BlockSpec((None, 2, Hc + 2, Wc + 2, Cin),
                             lambda n, d: (n, d + 1, 0, 0, 0)),
                pl.BlockSpec((3, 9 * Cin, Cout), lambda n, d: (0, 0, 0)),
                pl.BlockSpec((1, Cout), lambda n, d: (0, 0)),
            ],
            out_specs=[
                pl.BlockSpec((None, 2, Hc, Wc, Cout), lambda n, d: (n, d, 0, 0, 0)),
                pl.BlockSpec((None, None, Hc // 2, Wc // 2, Cout),
                             lambda n, d: (n, d, 0, 0, 0)),
            ],
            scratch_shapes=[pltpu.VMEM((Hs // 2, Wc, Cout), jnp.float32)],
        ),
        compiler_params=pltpu.CompilerParams(
            dimension_semantics=("parallel", "parallel"),
            vmem_limit_bytes=64 * 1024 * 1024),
        cost_estimate=pl.CostEstimate(flops=flops, transcendentals=0,
                                      bytes_accessed=bytes_accessed),
    )(xp, xp, w9, b2)

    # Strip alignment padding (all padded-region garbage dies here), cast back, NCDHW.
    y = y_pad[:, :D, :H, :W, :].astype(jnp.float32)
    x_out = jnp.transpose(y, (0, 4, 1, 2, 3))                                # (N,Cout,D,H,W)
    p = p_pad[:, :D // 2, :H // 2, :W // 2, :].astype(jnp.float32)
    x_pooled = jnp.transpose(p, (0, 4, 1, 2, 3))                             # (N,Cout,D/2,H/2,W/2)
    return x_pooled, x_out


# ------------------------------ reference ------------------------------------

def _reference(x_ncdhw, weight_oidhw, bias):
    y = lax.conv_general_dilated(
        x_ncdhw, weight_oidhw, window_strides=(1, 1, 1),
        padding=((1, 1), (1, 1), (1, 1)),
        dimension_numbers=("NCDHW", "OIDHW", "NCDHW"))
    y = jax.nn.relu(y + bias[None, :, None, None, None])
    pooled = lax.reduce_window(
        y, -jnp.inf, lax.max,
        window_dimensions=(1, 1, 2, 2, 2),
        window_strides=(1, 1, 2, 2, 2), padding="VALID")
    return pooled, y


# --------------------------------- main ---------------------------------------

if __name__ == "__main__":
    N, Cin, Cout = 2, 4, 8
    D = H = W = 8

    key = jax.random.PRNGKey(0)
    kx, kw_, kb = jax.random.split(key, 3)
    x = jax.random.normal(kx, (N, Cin, D, H, W), dtype=jnp.float32)
    weight = 0.1 * jax.random.normal(kw_, (Cout, Cin, 3, 3, 3), dtype=jnp.float32)
    bias = 0.1 * jax.random.normal(kb, (Cout,), dtype=jnp.float32)

    fwd = jax.jit(contracting_block_forward)
    x_pooled, x_full = fwd(x, weight, bias)
    jax.block_until_ready((x_pooled, x_full))

    ref_pooled, ref_full = _reference(x, weight, bias)

    assert x_full.shape == (N, Cout, D, H, W)
    assert x_pooled.shape == (N, Cout, D // 2, H // 2, W // 2)
    # bf16 MXU inputs and bf16 stores with f32 accumulation -> relaxed tolerance vs. f32 ref.
    assert jnp.allclose(x_full, ref_full, rtol=3e-2, atol=3e-2)
    assert jnp.allclose(x_pooled, ref_pooled, rtol=3e-2, atol=3e-2)

    print("KERNEL_OK")
</pallas_src>

<mosaic_0001>
module attributes {stable_mosaic.version = 11 : i64} {
  func.func @_conv_relu_pool_kernel(%arg0: i32, %arg1: i32, %arg2: memref<1x2x10x18x4xbf16, #tpu.memory_space<vmem>>, %arg3: memref<1x2x10x18x4xbf16, #tpu.memory_space<vmem>>, %arg4: memref<3x36x8xbf16, #tpu.memory_space<vmem>>, %arg5: memref<1x8xf32, #tpu.memory_space<vmem>>, %arg6: memref<1x2x8x16x8xbf16, #tpu.memory_space<vmem>>, %arg7: memref<1x1x4x8x8xbf16, #tpu.memory_space<vmem>>, %arg8: memref<4x16x8xf32, #tpu.memory_space<vmem>>) attributes {dimension_semantics = [#tpu.dimension_semantics<parallel>, #tpu.dimension_semantics<parallel>], iteration_bounds = array<i64: 2, 4>, scalar_prefetch = 0 : i64, scratch_operands = 1 : i64, tpu.core_type = #tpu.core_type<tc>, window_params = [{transform_indices = @transform_0, window_bounds = array<i64: 1, 2, 10, 18, 4>}, {transform_indices = @transform_1, window_bounds = array<i64: 1, 2, 10, 18, 4>}, {pipeline_mode = #tpu.pipeline_mode<synchronous>, transform_indices = @transform_2, window_bounds = array<i64: 3, 36, 8>}, {pipeline_mode = #tpu.pipeline_mode<synchronous>, transform_indices = @transform_3, window_bounds = array<i64: 1, 8>}, {transform_indices = @transform_4, window_bounds = array<i64: 1, 2, 8, 16, 8>}, {transform_indices = @transform_5, window_bounds = array<i64: 1, 1, 4, 8, 8>}]} {
    %c0 = arith.constant 0 : index
    %c0_0 = arith.constant 0 : index
    %0 = vector.load %arg5[%c0, %c0_0] : memref<1x8xf32, #tpu.memory_space<vmem>>, vector<1x8xf32>
    %c0_1 = arith.constant 0 : index
    %c0_2 = arith.constant 0 : index
    %c0_3 = arith.constant 0 : index
    %1 = vector.load %arg4[%c0_1, %c0_2, %c0_3] : memref<3x36x8xbf16, #tpu.memory_space<vmem>>, vector<1x36x8xbf16>
    %2 = vector.shape_cast %1 : vector<1x36x8xbf16> to vector<36x8xbf16>
    %c1 = arith.constant 1 : index
    %c0_4 = arith.constant 0 : index
    %c0_5 = arith.constant 0 : index
    %3 = vector.load %arg4[%c1, %c0_4, %c0_5] : memref<3x36x8xbf16, #tpu.memory_space<vmem>>, vector<1x36x8xbf16>
    %4 = vector.shape_cast %3 : vector<1x36x8xbf16> to vector<36x8xbf16>
    %c2 = arith.constant 2 : index
    %c0_6 = arith.constant 0 : index
    %c0_7 = arith.constant 0 : index
    %5 = vector.load %arg4[%c2, %c0_6, %c0_7] : memref<3x36x8xbf16, #tpu.memory_space<vmem>>, vector<1x36x8xbf16>
    %6 = vector.shape_cast %5 : vector<1x36x8xbf16> to vector<36x8xbf16>
    %c0_i32 = arith.constant 0 : i32
    %c1_i32 = arith.constant 1 : i32
    %7 = arith.muli %c0_i32, %c1_i32 : i32
    %c0_i32_8 = arith.constant 0 : i32
    %8 = arith.addi %c0_i32_8, %7 : i32
    %c8_i32 = arith.constant 8 : i32
    %9 = arith.muli %8, %c8_i32 : i32
    %10 = tpu.assume_multiple %9, 8 : i32
    %c0_i32_9 = arith.constant 0 : i32
    %11 = arith.addi %10, %c0_i32_9 : i32
    %c0_10 = arith.constant 0 : index
    %c0_11 = arith.constant 0 : index
    %12 = arith.index_cast %11 : i32 to index
    %c0_12 = arith.constant 0 : index
    %c0_13 = arith.constant 0 : index
    %13 = vector.load %arg2[%c0_10, %c0_11, %12, %c0_12, %c0_13] : memref<1x2x10x18x4xbf16, #tpu.memory_space<vmem>>, vector<1x1x8x16x4xbf16>
    %14 = vector.shape_cast %13 : vector<1x1x8x16x4xbf16> to vector<8x16x4xbf16>
    %c0_i32_14 = arith.constant 0 : i32
    %15 = arith.addi %10, %c0_i32_14 : i32
    %c0_15 = arith.constant 0 : index
    %c0_16 = arith.constant 0 : index
    %16 = arith.index_cast %15 : i32 to index
    %c1_17 = arith.constant 1 : index
    %c0_18 = arith.constant 0 : index
    %17 = vector.load %arg2[%c0_15, %c0_16, %16, %c1_17, %c0_18] : memref<1x2x10x18x4xbf16, #tpu.memory_space<vmem>>, vector<1x1x8x16x4xbf16>
    %18 = vector.shape_cast %17 : vector<1x1x8x16x4xbf16> to vector<8x16x4xbf16>
    %c0_i32_19 = arith.constant 0 : i32
    %19 = arith.addi %10, %c0_i32_19 : i32
    %c0_20 = arith.constant 0 : index
    %c0_21 = arith.constant 0 : index
    %20 = arith.index_cast %19 : i32 to index
    %c2_22 = arith.constant 2 : index
    %c0_23 = arith.constant 0 : index
    %21 = vector.load %arg2[%c0_20, %c0_21, %20, %c2_22, %c0_23] : memref<1x2x10x18x4xbf16, #tpu.memory_space<vmem>>, vector<1x1x8x16x4xbf16>
    %22 = vector.shape_cast %21 : vector<1x1x8x16x4xbf16> to vector<8x16x4xbf16>
    %c1_i32_24 = arith.constant 1 : i32
    %23 = arith.addi %10, %c1_i32_24 : i32
    %c0_25 = arith.constant 0 : index
    %c0_26 = arith.constant 0 : index
    %24 = arith.index_cast %23 : i32 to index
    %c0_27 = arith.constant 0 : index
    %c0_28 = arith.constant 0 : index
    %25 = vector.load %arg2[%c0_25, %c0_26, %24, %c0_27, %c0_28] : memref<1x2x10x18x4xbf16, #tpu.memory_space<vmem>>, vector<1x1x8x16x4xbf16>
    %26 = vector.shape_cast %25 : vector<1x1x8x16x4xbf16> to vector<8x16x4xbf16>
    %c1_i32_29 = arith.constant 1 : i32
    %27 = arith.addi %10, %c1_i32_29 : i32
    %c0_30 = arith.constant 0 : index
    %c0_31 = arith.constant 0 : index
    %28 = arith.index_cast %27 : i32 to index
    %c1_32 = arith.constant 1 : index
    %c0_33 = arith.constant 0 : index
    %29 = vector.load %arg2[%c0_30, %c0_31, %28, %c1_32, %c0_33] : memref<1x2x10x18x4xbf16, #tpu.memory_space<vmem>>, vector<1x1x8x16x4xbf16>
    %30 = vector.shape_cast %29 : vector<1x1x8x16x4xbf16> to vector<8x16x4xbf16>
    %c1_i32_34 = arith.constant 1 : i32
    %31 = arith.addi %10, %c1_i32_34 : i32
    %c0_35 = arith.constant 0 : index
    %c0_36 = arith.constant 0 : index
    %32 = arith.index_cast %31 : i32 to index
    %c2_37 = arith.constant 2 : index
    %c0_38 = arith.constant 0 : index
    %33 = vector.load %arg2[%c0_35, %c0_36, %32, %c2_37, %c0_38] : memref<1x2x10x18x4xbf16, #tpu.memory_space<vmem>>, vector<1x1x8x16x4xbf16>
    %34 = vector.shape_cast %33 : vector<1x1x8x16x4xbf16> to vector<8x16x4xbf16>
    %c2_i32 = arith.constant 2 : i32
    %35 = arith.addi %10, %c2_i32 : i32
    %c0_39 = arith.constant 0 : index
    %c0_40 = arith.constant 0 : index
    %36 = arith.index_cast %35 : i32 to index
    %c0_41 = arith.constant 0 : index
    %c0_42 = arith.constant 0 : index
    %37 = vector.load %arg2[%c0_39, %c0_40, %36, %c0_41, %c0_42] : memref<1x2x10x18x4xbf16, #tpu.memory_space<vmem>>, vector<1x1x8x16x4xbf16>
    %38 = vector.shape_cast %37 : vector<1x1x8x16x4xbf16> to vector<8x16x4xbf16>
    %c2_i32_43 = arith.constant 2 : i32
    %39 = arith.addi %10, %c2_i32_43 : i32
    %c0_44 = arith.constant 0 : index
    %c0_45 = arith.constant 0 : index
    %40 = arith.index_cast %39 : i32 to index
    %c1_46 = arith.constant 1 : index
    %c0_47 = arith.constant 0 : index
    %41 = vector.load %arg2[%c0_44, %c0_45, %40, %c1_46, %c0_47] : memref<1x2x10x18x4xbf16, #tpu.memory_space<vmem>>, vector<1x1x8x16x4xbf16>
    %42 = vector.shape_cast %41 : vector<1x1x8x16x4xbf16> to vector<8x16x4xbf16>
    %c2_i32_48 = arith.constant 2 : i32
    %43 = arith.addi %10, %c2_i32_48 : i32
    %c0_49 = arith.constant 0 : index
    %c0_50 = arith.constant 0 : index
    %44 = arith.index_cast %43 : i32 to index
    %c2_51 = arith.constant 2 : index
    %c0_52 = arith.constant 0 : index
    %45 = vector.load %arg2[%c0_49, %c0_50, %44, %c2_51, %c0_52] : memref<1x2x10x18x4xbf16, #tpu.memory_space<vmem>>, vector<1x1x8x16x4xbf16>
    %46 = vector.shape_cast %45 : vector<1x1x8x16x4xbf16> to vector<8x16x4xbf16>
    %47 = tpu.concatenate %14, %18, %22, %26, %30, %34, %38, %42, %46 in 2 : vector<8x16x4xbf16>, vector<8x16x4xbf16>, vector<8x16x4xbf16>, vector<8x16x4xbf16>, vector<8x16x4xbf16>, vector<8x16x4xbf16>, vector<8x16x4xbf16>, vector<8x16x4xbf16>, vector<8x16x4xbf16> -> vector<8x16x36xbf16>
    %48 = vector.shape_cast %47 : vector<8x16x36xbf16> to vector<128x36xbf16>
    %cst = arith.constant dense<0.000000e+00> : vector<128x8xf32>
    %49 = tpu.matmul %48, %2, %cst {dimension_numbers = #tpu.dot_dimension_numbers<[1], [0], [0], [1], [0, 0, 1, 1], [], []>} : vector<128x36xbf16>, vector<36x8xbf16>, vector<128x8xf32> -> vector<128x8xf32>
    %c0_i32_53 = arith.constant 0 : i32
    %50 = arith.addi %10, %c0_i32_53 : i32
    %c0_54 = arith.constant 0 : index
    %c1_55 = arith.constant 1 : index
    %51 = arith.index_cast %50 : i32 to index
    %c0_56 = arith.constant 0 : index
    %c0_57 = arith.constant 0 : index
    %52 = vector.load %arg2[%c0_54, %c1_55, %51, %c0_56, %c0_57] : memref<1x2x10x18x4xbf16, #tpu.memory_space<vmem>>, vector<1x1x8x16x4xbf16>
    %53 = vector.shape_cast %52 : vector<1x1x8x16x4xbf16> to vector<8x16x4xbf16>
    %c0_i32_58 = arith.constant 0 : i32
    %54 = arith.addi %10, %c0_i32_58 : i32
    %c0_59 = arith.constant 0 : index
    %c1_60 = arith.constant 1 : index
    %55 = arith.index_cast %54 : i32 to index
    %c1_61 = arith.constant 1 : index
    %c0_62 = arith.constant 0 : index
    %56 = vector.load %arg2[%c0_59, %c1_60, %55, %c1_61, %c0_62] : memref<1x2x10x18x4xbf16, #tpu.memory_space<vmem>>, vector<1x1x8x16x4xbf16>
    %57 = vector.shape_cast %56 : vector<1x1x8x16x4xbf16> to vector<8x16x4xbf16>
    %c0_i32_63 = arith.constant 0 : i32
    %58 = arith.addi %10, %c0_i32_63 : i32
    %c0_64 = arith.constant 0 : index
    %c1_65 = arith.constant 1 : index
    %59 = arith.index_cast %58 : i32 to index
    %c2_66 = arith.constant 2 : index
    %c0_67 = arith.constant 0 : index
    %60 = vector.load %arg2[%c0_64, %c1_65, %59, %c2_66, %c0_67] : memref<1x2x10x18x4xbf16, #tpu.memory_space<vmem>>, vector<1x1x8x16x4xbf16>
    %61 = vector.shape_cast %60 : vector<1x1x8x16x4xbf16> to vector<8x16x4xbf16>
    %c1_i32_68 = arith.constant 1 : i32
    %62 = arith.addi %10, %c1_i32_68 : i32
    %c0_69 = arith.constant 0 : index
    %c1_70 = arith.constant 1 : index
    %63 = arith.index_cast %62 : i32 to index
    %c0_71 = arith.constant 0 : index
    %c0_72 = arith.constant 0 : index
    %64 = vector.load %arg2[%c0_69, %c1_70, %63, %c0_71, %c0_72] : memref<1x2x10x18x4xbf16, #tpu.memory_space<vmem>>, vector<1x1x8x16x4xbf16>
    %65 = vector.shape_cast %64 : vector<1x1x8x16x4xbf16> to vector<8x16x4xbf16>
    %c1_i32_73 = arith.constant 1 : i32
    %66 = arith.addi %10, %c1_i32_73 : i32
    %c0_74 = arith.constant 0 : index
    %c1_75 = arith.constant 1 : index
    %67 = arith.index_cast %66 : i32 to index
    %c1_76 = arith.constant 1 : index
    %c0_77 = arith.constant 0 : index
    %68 = vector.load %arg2[%c0_74, %c1_75, %67, %c1_76, %c0_77] : memref<1x2x10x18x4xbf16, #tpu.memory_space<vmem>>, vector<1x1x8x16x4xbf16>
    %69 = vector.shape_cast %68 : vector<1x1x8x16x4xbf16> to vector<8x16x4xbf16>
    %c1_i32_78 = arith.constant 1 : i32
    %70 = arith.addi %10, %c1_i32_78 : i32
    %c0_79 = arith.constant 0 : index
    %c1_80 = arith.constant 1 : index
    %71 = arith.index_cast %70 : i32 to index
    %c2_81 = arith.constant 2 : index
    %c0_82 = arith.constant 0 : index
    %72 = vector.load %arg2[%c0_79, %c1_80, %71, %c2_81, %c0_82] : memref<1x2x10x18x4xbf16, #tpu.memory_space<vmem>>, vector<1x1x8x16x4xbf16>
    %73 = vector.shape_cast %72 : vector<1x1x8x16x4xbf16> to vector<8x16x4xbf16>
    %c2_i32_83 = arith.constant 2 : i32
    %74 = arith.addi %10, %c2_i32_83 : i32
    %c0_84 = arith.constant 0 : index
    %c1_85 = arith.constant 1 : index
    %75 = arith.index_cast %74 : i32 to index
    %c0_86 = arith.constant 0 : index
    %c0_87 = arith.constant 0 : index
    %76 = vector.load %arg2[%c0_84, %c1_85, %75, %c0_86, %c0_87] : memref<1x2x10x18x4xbf16, #tpu.memory_space<vmem>>, vector<1x1x8x16x4xbf16>
    %77 = vector.shape_cast %76 : vector<1x1x8x16x4xbf16> to vector<8x16x4xbf16>
    %c2_i32_88 = arith.constant 2 : i32
    %78 = arith.addi %10, %c2_i32_88 : i32
    %c0_89 = arith.constant 0 : index
    %c1_90 = arith.constant 1 : index
    %79 = arith.index_cast %78 : i32 to index
    %c1_91 = arith.constant 1 : index
    %c0_92 = arith.constant 0 : index
    %80 = vector.load %arg2[%c0_89, %c1_90, %79, %c1_91, %c0_92] : memref<1x2x10x18x4xbf16, #tpu.memory_space<vmem>>, vector<1x1x8x16x4xbf16>
    %81 = vector.shape_cast %80 : vector<1x1x8x16x4xbf16> to vector<8x16x4xbf16>
    %c2_i32_93 = arith.constant 2 : i32
    %82 = arith.addi %10, %c2_i32_93 : i32
    %c0_94 = arith.constant 0 : index
    %c1_95 = arith.constant 1 : index
    %83 = arith.index_cast %82 : i32 to index
    %c2_96 = arith.constant 2 : index
    %c0_97 = arith.constant 0 : index
    %84 = vector.load %arg2[%c0_94, %c1_95, %83, %c2_96, %c0_97] : memref<1x2x10x18x4xbf16, #tpu.memory_space<vmem>>, vector<1x1x8x16x4xbf16>
    %85 = vector.shape_cast %84 : vector<1x1x8x16x4xbf16> to vector<8x16x4xbf16>
    %86 = tpu.concatenate %53, %57, %61, %65, %69, %73, %77, %81, %85 in 2 : vector<8x16x4xbf16>, vector<8x16x4xbf16>, vector<8x16x4xbf16>, vector<8x16x4xbf16>, vector<8x16x4xbf16>, vector<8x16x4xbf16>, vector<8x16x4xbf16>, vector<8x16x4xbf16>, vector<8x16x4xbf16> -> vector<8x16x36xbf16>
    %87 = vector.shape_cast %86 : vector<8x16x36xbf16> to vector<128x36xbf16>
    %cst_98 = arith.constant dense<0.000000e+00> : vector<128x8xf32>
    %88 = tpu.matmul %87, %4, %cst_98 {dimension_numbers = #tpu.dot_dimension_numbers<[1], [0], [0], [1], [0, 0, 1, 1], [], []>} : vector<128x36xbf16>, vector<36x8xbf16>, vector<128x8xf32> -> vector<128x8xf32>
    %89 = arith.addf %49, %88 : vector<128x8xf32>
    %cst_99 = arith.constant dense<0.000000e+00> : vector<128x8xf32>
    %90 = tpu.matmul %87, %2, %cst_99 {dimension_numbers = #tpu.dot_dimension_numbers<[1], [0], [0], [1], [0, 0, 1, 1], [], []>} : vector<128x36xbf16>, vector<36x8xbf16>, vector<128x8xf32> -> vector<128x8xf32>
    %c0_i32_100 = arith.constant 0 : i32
    %91 = arith.addi %10, %c0_i32_100 : i32
    %c0_101 = arith.constant 0 : index
    %c0_102 = arith.constant 0 : index
    %92 = arith.index_cast %91 : i32 to index
    %c0_103 = arith.constant 0 : index
    %c0_104 = arith.constant 0 : index
    %93 = vector.load %arg3[%c0_101, %c0_102, %92, %c0_103, %c0_104] : memref<1x2x10x18x4xbf16, #tpu.memory_space<vmem>>, vector<1x1x8x16x4xbf16>
    %94 = vector.shape_cast %93 : vector<1x1x8x16x4xbf16> to vector<8x16x4xbf16>
    %c0_i32_105 = arith.constant 0 : i32
    %95 = arith.addi %10, %c0_i32_105 : i32
    %c0_106 = arith.constant 0 : index
    %c0_107 = arith.constant 0 : index
    %96 = arith.index_cast %95 : i32 to index
    %c1_108 = arith.constant 1 : index
    %c0_109 = arith.constant 0 : index
    %97 = vector.load %arg3[%c0_106, %c0_107, %96, %c1_108, %c0_109] : memref<1x2x10x18x4xbf16, #tpu.memory_space<vmem>>, vector<1x1x8x16x4xbf16>
    %98 = vector.shape_cast %97 : vector<1x1x8x16x4xbf16> to vector<8x16x4xbf16>
    %c0_i32_110 = arith.constant 0 : i32
    %99 = arith.addi %10, %c0_i32_110 : i32
    %c0_111 = arith.constant 0 : index
    %c0_112 = arith.constant 0 : index
    %100 = arith.index_cast %99 : i32 to index
    %c2_113 = arith.constant 2 : index
    %c0_114 = arith.constant 0 : index
    %101 = vector.load %arg3[%c0_111, %c0_112, %100, %c2_113, %c0_114] : memref<1x2x10x18x4xbf16, #tpu.memory_space<vmem>>, vector<1x1x8x16x4xbf16>
    %102 = vector.shape_cast %101 : vector<1x1x8x16x4xbf16> to vector<8x16x4xbf16>
    %c1_i32_115 = arith.constant 1 : i32
    %103 = arith.addi %10, %c1_i32_115 : i32
    %c0_116 = arith.constant 0 : index
    %c0_117 = arith.constant 0 : index
    %104 = arith.index_cast %103 : i32 to index
    %c0_118 = arith.constant 0 : index
    %c0_119 = arith.constant 0 : index
    %105 = vector.load %arg3[%c0_116, %c0_117, %104, %c0_118, %c0_119] : memref<1x2x10x18x4xbf16, #tpu.memory_space<vmem>>, vector<1x1x8x16x4xbf16>
    %106 = vector.shape_cast %105 : vector<1x1x8x16x4xbf16> to vector<8x16x4xbf16>
    %c1_i32_120 = arith.constant 1 : i32
    %107 = arith.addi %10, %c1_i32_120 : i32
    %c0_121 = arith.constant 0 : index
    %c0_122 = arith.constant 0 : index
    %108 = arith.index_cast %107 : i32 to index
    %c1_123 = arith.constant 1 : index
    %c0_124 = arith.constant 0 : index
    %109 = vector.load %arg3[%c0_121, %c0_122, %108, %c1_123, %c0_124] : memref<1x2x10x18x4xbf16, #tpu.memory_space<vmem>>, vector<1x1x8x16x4xbf16>
    %110 = vector.shape_cast %109 : vector<1x1x8x16x4xbf16> to vector<8x16x4xbf16>
    %c1_i32_125 = arith.constant 1 : i32
    %111 = arith.addi %10, %c1_i32_125 : i32
    %c0_126 = arith.constant 0 : index
    %c0_127 = arith.constant 0 : index
    %112 = arith.index_cast %111 : i32 to index
    %c2_128 = arith.constant 2 : index
    %c0_129 = arith.constant 0 : index
    %113 = vector.load %arg3[%c0_126, %c0_127, %112, %c2_128, %c0_129] : memref<1x2x10x18x4xbf16, #tpu.memory_space<vmem>>, vector<1x1x8x16x4xbf16>
    %114 = vector.shape_cast %113 : vector<1x1x8x16x4xbf16> to vector<8x16x4xbf16>
    %c2_i32_130 = arith.constant 2 : i32
    %115 = arith.addi %10, %c2_i32_130 : i32
    %c0_131 = arith.constant 0 : index
    %c0_132 = arith.constant 0 : index
    %116 = arith.index_cast %115 : i32 to index
    %c0_133 = arith.constant 0 : index
    %c0_134 = arith.constant 0 : index
    %117 = vector.load %arg3[%c0_131, %c0_132, %116, %c0_133, %c0_134] : memref<1x2x10x18x4xbf16, #tpu.memory_space<vmem>>, vector<1x1x8x16x4xbf16>
    %118 = vector.shape_cast %117 : vector<1x1x8x16x4xbf16> to vector<8x16x4xbf16>
    %c2_i32_135 = arith.constant 2 : i32
    %119 = arith.addi %10, %c2_i32_135 : i32
    %c0_136 = arith.constant 0 : index
    %c0_137 = arith.constant 0 : index
    %120 = arith.index_cast %119 : i32 to index
    %c1_138 = arith.constant 1 : index
    %c0_139 = arith.constant 0 : index
    %121 = vector.load %arg3[%c0_136, %c0_137, %120, %c1_138, %c0_139] : memref<1x2x10x18x4xbf16, #tpu.memory_space<vmem>>, vector<1x1x8x16x4xbf16>
    %122 = vector.shape_cast %121 : vector<1x1x8x16x4xbf16> to vector<8x16x4xbf16>
    %c2_i32_140 = arith.constant 2 : i32
    %123 = arith.addi %10, %c2_i32_140 : i32
    %c0_141 = arith.constant 0 : index
    %c0_142 = arith.constant 0 : index
    %124 = arith.index_cast %123 : i32 to index
    %c2_143 = arith.constant 2 : index
    %c0_144 = arith.constant 0 : index
    %125 = vector.load %arg3[%c0_141, %c0_142, %124, %c2_143, %c0_144] : memref<1x2x10x18x4xbf16, #tpu.memory_space<vmem>>, vector<1x1x8x16x4xbf16>
    %126 = vector.shape_cast %125 : vector<1x1x8x16x4xbf16> to vector<8x16x4xbf16>
    %127 = tpu.concatenate %94, %98, %102, %106, %110, %114, %118, %122, %126 in 2 : vector<8x16x4xbf16>, vector<8x16x4xbf16>, vector<8x16x4xbf16>, vector<8x16x4xbf16>, vector<8x16x4xbf16>, vector<8x16x4xbf16>, vector<8x16x4xbf16>, vector<8x16x4xbf16>, vector<8x16x4xbf16> -> vector<8x16x36xbf16>
    %128 = vector.shape_cast %127 : vector<8x16x36xbf16> to vector<128x36xbf16>
    %cst_145 = arith.constant dense<0.000000e+00> : vector<128x8xf32>
    %129 = tpu.matmul %128, %6, %cst_145 {dimension_numbers = #tpu.dot_dimension_numbers<[1], [0], [0], [1], [0, 0, 1, 1], [], []>} : vector<128x36xbf16>, vector<36x8xbf16>, vector<128x8xf32> -> vector<128x8xf32>
    %130 = arith.addf %89, %129 : vector<128x8xf32>
    %cst_146 = arith.constant dense<0.000000e+00> : vector<128x8xf32>
    %131 = tpu.matmul %128, %4, %cst_146 {dimension_numbers = #tpu.dot_dimension_numbers<[1], [0], [0], [1], [0, 0, 1, 1], [], []>} : vector<128x36xbf16>, vector<36x8xbf16>, vector<128x8xf32> -> vector<128x8xf32>
    %132 = arith.addf %90, %131 : vector<128x8xf32>
    %c0_i32_147 = arith.constant 0 : i32
    %133 = arith.addi %10, %c0_i32_147 : i32
    %c0_148 = arith.constant 0 : index
    %c1_149 = arith.constant 1 : index
    %134 = arith.index_cast %133 : i32 to index
    %c0_150 = arith.constant 0 : index
    %c0_151 = arith.constant 0 : index
    %135 = vector.load %arg3[%c0_148, %c1_149, %134, %c0_150, %c0_151] : memref<1x2x10x18x4xbf16, #tpu.memory_space<vmem>>, vector<1x1x8x16x4xbf16>
    %136 = vector.shape_cast %135 : vector<1x1x8x16x4xbf16> to vector<8x16x4xbf16>
    %c0_i32_152 = arith.constant 0 : i32
    %137 = arith.addi %10, %c0_i32_152 : i32
    %c0_153 = arith.constant 0 : index
    %c1_154 = arith.constant 1 : index
    %138 = arith.index_cast %137 : i32 to index
    %c1_155 = arith.constant 1 : index
    %c0_156 = arith.constant 0 : index
    %139 = vector.load %arg3[%c0_153, %c1_154, %138, %c1_155, %c0_156] : memref<1x2x10x18x4xbf16, #tpu.memory_space<vmem>>, vector<1x1x8x16x4xbf16>
    %140 = vector.shape_cast %139 : vector<1x1x8x16x4xbf16> to vector<8x16x4xbf16>
    %c0_i32_157 = arith.constant 0 : i32
    %141 = arith.addi %10, %c0_i32_157 : i32
    %c0_158 = arith.constant 0 : index
    %c1_159 = arith.constant 1 : index
    %142 = arith.index_cast %141 : i32 to index
    %c2_160 = arith.constant 2 : index
    %c0_161 = arith.constant 0 : index
    %143 = vector.load %arg3[%c0_158, %c1_159, %142, %c2_160, %c0_161] : memref<1x2x10x18x4xbf16, #tpu.memory_space<vmem>>, vector<1x1x8x16x4xbf16>
    %144 = vector.shape_cast %143 : vector<1x1x8x16x4xbf16> to vector<8x16x4xbf16>
    %c1_i32_162 = arith.constant 1 : i32
    %145 = arith.addi %10, %c1_i32_162 : i32
    %c0_163 = arith.constant 0 : index
    %c1_164 = arith.constant 1 : index
    %146 = arith.index_cast %145 : i32 to index
    %c0_165 = arith.constant 0 : index
    %c0_166 = arith.constant 0 : index
    %147 = vector.load %arg3[%c0_163, %c1_164, %146, %c0_165, %c0_166] : memref<1x2x10x18x4xbf16, #tpu.memory_space<vmem>>, vector<1x1x8x16x4xbf16>
    %148 = vector.shape_cast %147 : vector<1x1x8x16x4xbf16> to vector<8x16x4xbf16>
    %c1_i32_167 = arith.constant 1 : i32
    %149 = arith.addi %10, %c1_i32_167 : i32
    %c0_168 = arith.constant 0 : index
    %c1_169 = arith.constant 1 : index
    %150 = arith.index_cast %149 : i32 to index
    %c1_170 = arith.constant 1 : index
    %c0_171 = arith.constant 0 : index
    %151 = vector.load %arg3[%c0_168, %c1_169, %150, %c1_170, %c0_171] : memref<1x2x10x18x4xbf16, #tpu.memory_space<vmem>>, vector<1x1x8x16x4xbf16>
    %152 = vector.shape_cast %151 : vector<1x1x8x16x4xbf16> to vector<8x16x4xbf16>
    %c1_i32_172 = arith.constant 1 : i32
    %153 = arith.addi %10, %c1_i32_172 : i32
    %c0_173 = arith.constant 0 : index
    %c1_174 = arith.constant 1 : index
    %154 = arith.index_cast %153 : i32 to index
    %c2_175 = arith.constant 2 : index
    %c0_176 = arith.constant 0 : index
    %155 = vector.load %arg3[%c0_173, %c1_174, %154, %c2_175, %c0_176] : memref<1x2x10x18x4xbf16, #tpu.memory_space<vmem>>, vector<1x1x8x16x4xbf16>
    %156 = vector.shape_cast %155 : vector<1x1x8x16x4xbf16> to vector<8x16x4xbf16>
    %c2_i32_177 = arith.constant 2 : i32
    %157 = arith.addi %10, %c2_i32_177 : i32
    %c0_178 = arith.constant 0 : index
    %c1_179 = arith.constant 1 : index
    %158 = arith.index_cast %157 : i32 to index
    %c0_180 = arith.constant 0 : index
    %c0_181 = arith.constant 0 : index
    %159 = vector.load %arg3[%c0_178, %c1_179, %158, %c0_180, %c0_181] : memref<1x2x10x18x4xbf16, #tpu.memory_space<vmem>>, vector<1x1x8x16x4xbf16>
    %160 = vector.shape_cast %159 : vector<1x1x8x16x4xbf16> to vector<8x16x4xbf16>
    %c2_i32_182 = arith.constant 2 : i32
    %161 = arith.addi %10, %c2_i32_182 : i32
    %c0_183 = arith.constant 0 : index
    %c1_184 = arith.constant 1 : index
    %162 = arith.index_cast %161 : i32 to index
    %c1_185 = arith.constant 1 : index
    %c0_186 = arith.constant 0 : index
    %163 = vector.load %arg3[%c0_183, %c1_184, %162, %c1_185, %c0_186] : memref<1x2x10x18x4xbf16, #tpu.memory_space<vmem>>, vector<1x1x8x16x4xbf16>
    %164 = vector.shape_cast %163 : vector<1x1x8x16x4xbf16> to vector<8x16x4xbf16>
    %c2_i32_187 = arith.constant 2 : i32
    %165 = arith.addi %10, %c2_i32_187 : i32
    %c0_188 = arith.constant 0 : index
    %c1_189 = arith.constant 1 : index
    %166 = arith.index_cast %165 : i32 to index
    %c2_190 = arith.constant 2 : index
    %c0_191 = arith.constant 0 : index
    %167 = vector.load %arg3[%c0_188, %c1_189, %166, %c2_190, %c0_191] : memref<1x2x10x18x4xbf16, #tpu.memory_space<vmem>>, vector<1x1x8x16x4xbf16>
    %168 = vector.shape_cast %167 : vector<1x1x8x16x4xbf16> to vector<8x16x4xbf16>
    %169 = tpu.concatenate %136, %140, %144, %148, %152, %156, %160, %164, %168 in 2 : vector<8x16x4xbf16>, vector<8x16x4xbf16>, vector<8x16x4xbf16>, vector<8x16x4xbf16>, vector<8x16x4xbf16>, vector<8x16x4xbf16>, vector<8x16x4xbf16>, vector<8x16x4xbf16>, vector<8x16x4xbf16> -> vector<8x16x36xbf16>
    %170 = vector.shape_cast %169 : vector<8x16x36xbf16> to vector<128x36xbf16>
    %cst_192 = arith.constant dense<0.000000e+00> : vector<128x8xf32>
    %171 = tpu.matmul %170, %6, %cst_192 {dimension_numbers = #tpu.dot_dimension_numbers<[1], [0], [0], [1], [0, 0, 1, 1], [], []>} : vector<128x36xbf16>, vector<36x8xbf16>, vector<128x8xf32> -> vector<128x8xf32>
    %172 = arith.addf %132, %171 : vector<128x8xf32>
    %173 = vector.broadcast %0 : vector<1x8xf32> to vector<128x8xf32>
    %174 = arith.addf %130, %173 : vector<128x8xf32>
    %cst_193 = arith.constant 0.000000e+00 : f32
    %175 = vector.broadcast %cst_193 : f32 to vector<128x8xf32>
    %176 = arith.maximumf %174, %175 : vector<128x8xf32>
    %177 = vector.shape_cast %176 : vector<128x8xf32> to vector<8x16x8xf32>
    %178 = arith.truncf %177 : vector<8x16x8xf32> to vector<8x16x8xbf16>
    %c0_194 = arith.constant 0 : index
    %c0_195 = arith.constant 0 : index
    %179 = arith.index_cast %10 : i32 to index
    %c0_196 = arith.constant 0 : index
    %c0_197 = arith.constant 0 : index
    %180 = vector.load %arg6[%c0_194, %c0_195, %179, %c0_196, %c0_197] : memref<1x2x8x16x8xbf16, #tpu.memory_space<vmem>>, vector<1x1x8x16x8xbf16>
    %181 = vector.shape_cast %180 : vector<1x1x8x16x8xbf16> to vector<8x16x8xbf16>
    %182 = vector.shape_cast %178 : vector<8x16x8xbf16> to vector<1x1x8x16x8xbf16>
    tpu.vector_store %arg6[%c0_194, %c0_195, %179, %c0_196, %c0_197], %182 {strides = array<i32>} : memref<1x2x8x16x8xbf16, #tpu.memory_space<vmem>>, vector<1x1x8x16x8xbf16>,
    %183 = vector.broadcast %0 : vector<1x8xf32> to vector<128x8xf32>
    %184 = arith.addf %172, %183 : vector<128x8xf32>
    %cst_198 = arith.constant 0.000000e+00 : f32
    %185 = vector.broadcast %cst_198 : f32 to vector<128x8xf32>
    %186 = arith.maximumf %184, %185 : vector<128x8xf32>
    %187 = vector.shape_cast %186 : vector<128x8xf32> to vector<8x16x8xf32>
    %188 = arith.truncf %187 : vector<8x16x8xf32> to vector<8x16x8xbf16>
    %c0_199 = arith.constant 0 : index
    %c1_200 = arith.constant 1 : index
    %189 = arith.index_cast %10 : i32 to index
    %c0_201 = arith.constant 0 : index
    %c0_202 = arith.constant 0 : index
    %190 = vector.load %arg6[%c0_199, %c1_200, %189, %c0_201, %c0_202] : memref<1x2x8x16x8xbf16, #tpu.memory_space<vmem>>, vector<1x1x8x16x8xbf16>
    %191 = vector.shape_cast %190 : vector<1x1x8x16x8xbf16> to vector<8x16x8xbf16>
    %192 = vector.shape_cast %188 : vector<8x16x8xbf16> to vector<1x1x8x16x8xbf16>
    tpu.vector_store %arg6[%c0_199, %c1_200, %189, %c0_201, %c0_202], %192 {strides = array<i32>} : memref<1x2x8x16x8xbf16, #tpu.memory_space<vmem>>, vector<1x1x8x16x8xbf16>,
    %193 = arith.maximumf %176, %186 : vector<128x8xf32>
    %194 = vector.shape_cast %193 : vector<128x8xf32> to vector<4x2x16x8xf32>
    %195 = vector.extract_strided_slice %194 {offsets = [0, 0, 0, 0], sizes = [4, 1, 16, 8], strides = [1, 1, 1, 1]} : vector<4x2x16x8xf32> to vector<4x1x16x8xf32>
    %196 = vector.shape_cast %195 : vector<4x1x16x8xf32> to vector<4x16x8xf32>
    %197 = vector.extract_strided_slice %194 {offsets = [0, 1, 0, 0], sizes = [4, 1, 16, 8], strides = [1, 1, 1, 1]} : vector<4x2x16x8xf32> to vector<4x1x16x8xf32>
    %198 = vector.shape_cast %197 : vector<4x1x16x8xf32> to vector<4x16x8xf32>
    %199 = arith.maximumf %196, %198 : vector<4x16x8xf32>
    %c0_203 = arith.constant 0 : index
    %c0_204 = arith.constant 0 : index
    %c0_205 = arith.constant 0 : index
    %200 = vector.load %arg8[%c0_203, %c0_204, %c0_205] : memref<4x16x8xf32, #tpu.memory_space<vmem>>, vector<4x16x8xf32>
    tpu.vector_store %arg8[%c0_203, %c0_204, %c0_205], %199 {strides = array<i32>} : memref<4x16x8xf32, #tpu.memory_space<vmem>>, vector<4x16x8xf32>,
    %c0_206 = arith.constant 0 : index
    %c0_207 = arith.constant 0 : index
    %c0_208 = arith.constant 0 : index
    %201 = tpu.strided_load %arg8[%c0_206, %c0_207, %c0_208] {strides = array<i32: 1, 2, 1>} : memref<4x16x8xf32, #tpu.memory_space<vmem>>, vector<4x8x8xf32>
    %c0_209 = arith.constant 0 : index
    %c1_210 = arith.constant 1 : index
    %c0_211 = arith.constant 0 : index
    %202 = tpu.strided_load %arg8[%c0_209, %c1_210, %c0_211] {strides = array<i32: 1, 2, 1>} : memref<4x16x8xf32, #tpu.memory_space<vmem>>, vector<4x8x8xf32>
    %203 = arith.maximumf %201, %202 : vector<4x8x8xf32>
    %204 = arith.truncf %203 : vector<4x8x8xf32> to vector<4x8x8xbf16>
    %c4_i32 = arith.constant 4 : i32
    %205 = arith.muli %8, %c4_i32 : i32
    %c0_212 = arith.constant 0 : index
    %c0_213 = arith.constant 0 : index
    %206 = arith.index_cast %205 : i32 to index
    %c0_214 = arith.constant 0 : index
    %c0_215 = arith.constant 0 : index
    %207 = vector.load %arg7[%c0_212, %c0_213, %206, %c0_214, %c0_215] : memref<1x1x4x8x8xbf16, #tpu.memory_space<vmem>>, vector<1x1x4x8x8xbf16>
    %208 = vector.shape_cast %207 : vector<1x1x4x8x8xbf16> to vector<4x8x8xbf16>
    %209 = vector.shape_cast %204 : vector<4x8x8xbf16> to vector<1x1x4x8x8xbf16>
    tpu.vector_store %arg7[%c0_212, %c0_213, %206, %c0_214, %c0_215], %209 {strides = array<i32>} : memref<1x1x4x8x8xbf16, #tpu.memory_space<vmem>>, vector<1x1x4x8x8xbf16>,
    %c1_i32_216 = arith.constant 1 : i32
    return
  }
  func.func @transform_0(%arg0: i32, %arg1: i32) -> (i32, i32, i32, i32, i32) {
    %c0_i32 = arith.constant 0 : i32
    %c0_i32_0 = arith.constant 0 : i32
    %c0_i32_1 = arith.constant 0 : i32
    %c0_i32_2 = arith.constant 0 : i32
    return %arg0, %arg1, %c0_i32, %c0_i32_0, %c0_i32_1 : i32, i32, i32, i32, i32
  }
  func.func @transform_1(%arg0: i32, %arg1: i32) -> (i32, i32, i32, i32, i32) {
    %c1_i32 = arith.constant 1 : i32
    %0 = arith.addi %arg1, %c1_i32 : i32
    %c0_i32 = arith.constant 0 : i32
    %c0_i32_0 = arith.constant 0 : i32
    %c0_i32_1 = arith.constant 0 : i32
    %c0_i32_2 = arith.constant 0 : i32
    return %arg0, %0, %c0_i32, %c0_i32_0, %c0_i32_1 : i32, i32, i32, i32, i32
  }
  func.func @transform_2(%arg0: i32, %arg1: i32) -> (i32, i32, i32) {
    %c0_i32 = arith.constant 0 : i32
    %c0_i32_0 = arith.constant 0 : i32
    %c0_i32_1 = arith.constant 0 : i32
    %c0_i32_2 = arith.constant 0 : i32
    return %c0_i32, %c0_i32_0, %c0_i32_1 : i32, i32, i32
  }
  func.func @transform_3(%arg0: i32, %arg1: i32) -> (i32, i32) {
    %c0_i32 = arith.constant 0 : i32
    %c0_i32_0 = arith.constant 0 : i32
    %c0_i32_1 = arith.constant 0 : i32
    return %c0_i32, %c0_i32_0 : i32, i32
  }
  func.func @transform_4(%arg0: i32, %arg1: i32) -> (i32, i32, i32, i32, i32) {
    %c0_i32 = arith.constant 0 : i32
    %c0_i32_0 = arith.constant 0 : i32
    %c0_i32_1 = arith.constant 0 : i32
    %c0_i32_2 = arith.constant 0 : i32
    return %arg0, %arg1, %c0_i32, %c0_i32_0, %c0_i32_1 : i32, i32, i32, i32, i32
  }
  func.func @transform_5(%arg0: i32, %arg1: i32) -> (i32, i32, i32, i32, i32) {
    %c0_i32 = arith.constant 0 : i32
    %c0_i32_0 = arith.constant 0 : i32
    %c0_i32_1 = arith.constant 0 : i32
    %c0_i32_2 = arith.constant 0 : i32
    return %arg0, %arg1, %c0_i32, %c0_i32_0, %c0_i32_1 : i32, i32, i32, i32, i32
  }
}

</mosaic_0001>

<bundles_post_ra>
// kernel: contracting_block_forward.1
= control target key start
LH: loop header
LB: loop body
LE: loop exit
PB: predicated region body
PF: predicated region fallthrough
CT: control target
= control target key end

     0   :  { %s10748_s0 = inlined_call_operand.hbm [shape: bf16[2,10,10,18,4], index: 0, kind: input, shape index: {}, may-alias: {0,1}]   ;;  %s10749_s1 = inlined_call_operand.hbm [shape: bf16[2,10,10,18,4], index: 1, kind: input, shape index: {}, may-alias: {0,1}]   ;;  %s10750_s2 = inlined_call_operand.hbm [shape: bf16[3,36,8], index: 2, kind: input, shape index: {}]   ;;  %s10751_s3 = inlined_call_operand.hbm [shape: f32[1,8], index: 3, kind: input, shape index: {}]   ;;  %s10752_s4 = inlined_call_operand.hbm [shape: bf16[2,8,8,16,8], index: 4, kind: output, shape index: {0}]   ;;  %s10753_s5 = inlined_call_operand.hbm [shape: bf16[2,4,4,8,8], index: 5, kind: output, shape index: {1}]  }
   0x1   :  { %10808 = sst [smem:[#allocation114_spill]] %s10748_s0 }
   0x2   :  { %10809 = sst [smem:[#allocation115_spill]] %s10750_s2 }
   0x3   :  { %10810 = sst [smem:[#allocation116_spill]] %s10751_s3 }
   0x4   :  { %10811 = sst [smem:[#allocation117_spill]] %s10752_s4 }
   0x5   :  { %10812 = sst [smem:[#allocation118_spill]] %s10753_s5 }
   0x6   :  { %11 = vsyncpa [#allocation4], 0 }
   0x7   :  { %13 = vsyncpa [#allocation4 + $0x1], 0 }
   0x8   :  { %14 = vsyncpa [#allocation7], 0 }
   0x9   :  { %16 = vsyncpa [#allocation7 + $0x1], 0 }
   0xa   :  { %17 = vsyncpa [#allocation10], 0 }
   0xb   :  { %18 = vsyncpa [#allocation5], 0 }
   0xc   :  { %20 = vsyncpa [#allocation5 + $0x1], 0 }
   0xd   :  { %21 = vsyncpa [#allocation13], 0 }
   0xe   :  { %23 = vsyncpa [#allocation13 + $0x1], 0  ;;  %s7398_s18 = smov 0   ;;  %s7400_s19 = smov 0  }
   0xf   :  { %s7402_s20 = smov 0   ;;  %s7404_s21 = smov 0  }
  0x10   :  { %s7406_s22 = smov 0   ;;  %s7408_s23 = smov 0  }
  0x11   :  { %s7410_s24 = smov 0   ;;  %s7412_s25 = smov 0  }
  0x12   :  { %s7414_s26 = smov 0   ;;  %s7416_s27 = smov 0  }
  0x13   :  { %s7418_s28 = smov 0  }
  0x14 LB: > { %10813 = sst [smem:[#allocation20_spill]] %s7321_s21  ;;  %s7452_s29 = sadd.s32 4294967295, %s7349_s28   ;;  %s7349_s28 = sphi %s7418_s28, %s29_s28   ;;  %s7345_s27 = sphi %s7416_s27, %s11042_s27   ;;  %s7341_s26 = sphi %s7414_s26, %s11050_s26   ;;  %s7337_s25 = sphi %s7412_s25, %s11040_s25   ;;  %s7333_s24 = sphi %s7410_s24, %s11049_s24   ;;  %s7329_s23 = sphi %s7408_s23, %s11048_s23   ;;  %s7325_s22 = sphi %s7406_s22, %s11047_s22   ;;  %s7321_s21 = sphi %s7404_s21, %s11046_s21   ;;  %s7317_s20 = sphi %s7402_s20, %s11045_s20   ;;  %s7313_s19 = sphi %s7400_s19, %s11044_s19   ;;  %s7309_s18 = sphi %s7398_s18, %s11043_s18  }
  0x15   : > { %10814 = sst [smem:[#allocation21_spill]] %s7345_s27  ;;  %s5572_s30 = sadd.s32 4294967294, %s7349_s28  }
  0x16   : > { %p63_p0 = scmp.ne.s32.totalorder %s7325_s22, %s7321_s21  ;;  %p10755_p1 = scmp.eq.s32.totalorder %s7452_s29, 0 }
  0x17   : > { %p93_p2 = scmp.ne.s32.totalorder %s7313_s19, %s7309_s18  ;;  %p167_p4 = scmp.eq.s32.totalorder %s5572_s30, 7 }
  0x18   : > { %p7461_p3 = por %p10755_p1, %p63_p0  ;;  %p5573_p6 = scmp.ge.s32.totalorder %s7349_s28, 1 }
  0x19   : > { %p7467_p5 = por %p93_p2, %p10755_p1  ;;  %p7472_p7 = por %p167_p4, %p63_p0 }
  0x1a   : > { %s10815_s6 = scalar_select %p7461_p3, 1, 0 }
  0x1b   : > { %s10816_s7 = scalar_select %p7467_p5, 1, 0 }
  0x1c   : > { %s10817_s8 = scalar_select %p7472_p7, 1, 0 }
  0x1d   : > { %p202_p8 = scmp.lt.s32.totalorder %s7349_s28, 9  ;;  %s7351_s10 = smov [#allocation8]  }
  0x1e   : > { %10818 = sst [smem:[#allocation22_spill]] %s10817_s8  ;;  %s214_s11 = sshll.u32 %s7351_s10, 4  ;;  %s215_s11 = int_to_ptr.vmem [resolvable:$true] %s214_s11 }
  0x1f   : > { %p7477_p9 = pnand %p5573_p6, %p202_p8  ;;  %s7352_s13 = smov [#allocation9]  }
  0x20   : > { %s228_s14 = sshll.u32 %s7352_s13, 4  ;;  %s10821_s2 = sld [smem:[#allocation115_spill]]  ;;  %s7489_s14 = int_to_ptr.vmem [resolvable:$true] %s228_s14 }
  0x21   : > { %s10819_s9 = scalar_select %p7477_p9, 1, 0 }
  0x22   : > { %p6634_p10 = pneg %p7477_p9 }
  0x24   : > { %p7485_p11 = pnand %p6634_p10, %p10755_p1 }
  0x26   : > { %s7066_s17 = scalar_lea.hbm %s10821_s2, 960  ;;  %p7068_p13 = pneg %p7485_p11 }
  0x27   : > { %p7067_p12 = scmp.ne.s32.totalorder %s10821_s2, %s7066_s17  ;;  %p7073_p4 = scmp.lt.u32.totalorder %s7066_s17, %s10821_s2 }
  0x29   : > { %p7069_p0 = pnand %p7068_p13, %p7067_p12 }
  0x2b   : > { %p7070_p2 = pneg %p7069_p0 }
  0x2d   : > { %p7075_p6 = pnand %p7073_p4, %p7070_p2 }
  0x2f   : > { %7078 = shalt.err (!%p7075_p6)
}
  0x30   : > { %s7079_s13 = scalar_lea.vmem %s215_s11, 960  ;;  %p7087_p7 = scmp.lt.s32.totalorder %s215_s11, %s215_s11 }
  0x31   : > { %p7080_p8 = scmp.ne.s32.totalorder %s215_s11, %s7079_s13  ;;  %p7088_p5 = scmp.lt.s32.totalorder %s7079_s13, %s7079_s13 }
  0x33   : > { %p7082_p10 = pnand %p7080_p8, %p7068_p13  ;;  %p7089_p3 = por %p7088_p5, %p7087_p7 }
  0x35   : > { %p7083_p1 = pneg %p7082_p10 }
  0x37   : > { %p7090_p9 = pnand %p7089_p3, %p7083_p1 }
  0x39   : > { %7093 = shalt.err (!%p7090_p9)
}
  0x3a   : > { %s10762_s15 = smov 64   ;;  %s10764_s16 = smov 4  }
  0x3b   : > { %6637 = dma.hbm_to_vmem [thread:$0]  (!%p7485_p11), %s10821_s2, 960, %s215_s11, [#allocation7], %s10762_s15, %s10762_s15, %s10764_s16  }
  0x3c   : > { %s10822_s3 = sld [smem:[#allocation116_spill]] }
  0x42   : > { %s7094_s10 = scalar_lea.hbm %s10822_s3, 16 }
  0x43   : > { %p7095_p1 = scmp.ne.s32.totalorder %s10822_s3, %s7094_s10  ;;  %p7101_p7 = scmp.lt.u32.totalorder %s7094_s10, %s10822_s3 }
  0x45   : > { %p7097_p3 = pnand %p7095_p1, %p7068_p13 }
  0x47   : > { %p7098_p5 = pneg %p7097_p3 }
  0x49   : > { %p7103_p9 = pnand %p7101_p7, %p7098_p5 }
  0x4b   : > { %7106 = shalt.err (!%p7103_p9)
}
  0x4c   : > { %s7107_s11 = scalar_lea.vmem %s7489_s14, 16  ;;  %s7114_s21 = scalar_lea.vmem %s7489_s14, 32 }
  0x4d   : > { %p7108_p12 = scmp.ne.s32.totalorder %s7489_s14, %s7107_s11  ;;  %p7115_p4 = scmp.lt.s32.totalorder %s7489_s14, %s7489_s14 }
  0x4e   : > { %p7116_p6 = scmp.lt.s32.totalorder %s7114_s21, %s7107_s11 }
  0x4f   : > { %p7110_p0 = pnand %p7108_p12, %p7068_p13 }
  0x50   : > { %p7117_p8 = por %p7116_p6, %p7115_p4 }
  0x51   : > { %p7111_p2 = pneg %p7110_p0 }
  0x53   : > { %p7118_p10 = pnand %p7117_p8, %p7111_p2 }
  0x55   : > { %7121 = shalt.err (!%p7118_p10)
}
  0x56   : > { %6640 = dma.hbm_to_vmem [thread:$0]  (!%p7485_p11), %s10822_s3, 16, %s7489_s14, [#allocation10]  }
  0x57   : > { %p161_p13 = scmp.eq.s32.totalorder %s7452_s29, 7  ;;  %s38_s8 = sadd.s32 1, %s7341_s26 }
  0x58   : > { %p39_p1 = scmp.ge.s32.totalorder %s38_s8, 4  ;;  %s41_s12 = sadd.s32 1, %s7345_s27 }
  0x59   : > { %p57_p3 = scmp.ne.s32.totalorder %s7329_s23, %s7325_s22  ;;  %p10770_p5 = scmp.eq.s32.totalorder %s7349_s28, 0 }
  0x5a   : > { %s7548_s17 = scalar_select %p39_p1, 0, %s38_s8  }
  0x5b   : > { %s11052_s12 = smov (!%p39_p1, %s41_s12), %s7345_s27  ;;  %s50_s30 = sadd.s32 1, %s7329_s23 }
  0x5c   : > { %10823 = sst [smem:[#allocation23_spill]] %s7548_s17  ;;  %s46_s18 = ssub.s32 %s7341_s26, %s7548_s17 }
  0x5d   : > { %p43_p11 = scmp.ge.s32.totalorder %s11052_s12, 2  ;;  %s74_s14 = sadd.s32 1, %s7548_s17 }
  0x5e   : > { %p59_p7 = por %p10770_p5, %p57_p3  ;;  %p7559_p9 = por %p161_p13, %p57_p3 }
  0x5f   : > { %s11054_s12 = smov (%p43_p11, %s11052_s12), 0  ;;  %s76_s13 = ssub.s32 %s38_s8, %s74_s14 }
  0x60   : > { %s10824_s10 = scalar_select %p7559_p9, 1, 0 }
  0x61   : > { %10826 = sst [smem:[#allocation25_spill]] %s11054_s12  ;;  %p10769_p12 = scmp.lt.s32.totalorder %s7349_s28, 8 }
  0x62   : > { %10825 = sst [smem:[#allocation24_spill]] %s10824_s10  ;;  %s45_s11 = ssub.s32 %s7345_s27, %s11054_s12 }
  0x63   : > { %s239_s21 = sand.u32 1, %s7329_s23   ;;  %s47_s4 = sor.u32 %s46_s18, %s45_s11 }
  0x64   : > { %p48_p0 = scmp.eq.s32.totalorder %s47_s4, 0  ;;  %s77_s5 = sor.u32 %s76_s13, %s45_s11 }
  0x65   : > { %s6612_s15 = smul.u32 240, %s239_s21  ;;  %p7571_p2 = pnand %p10769_p12, %p59_p7 }
  0x66   : > { %s7576_s2 = scalar_select %p48_p0, %s7329_s23, %s50_s30  }
  0x67   : > { %s6613_s3 = smul.u32 60, %s7341_s26  ;;  %s243_s10 = scalar_lea.vmem [#allocation3], %s6612_s15 }
  0x68   : > { %s6614_s17 = smul.u32 300, %s7345_s27  ;;  %s253_s8 = sshll.u32 %s243_s10, 4  ;;  %s7580_s8 = int_to_ptr.vmem [resolvable:$true] %s253_s8 }
  0x69   : > { %p7584_p4 = scmp.eq.s32.totalorder %s77_s5, 0  ;;  %s10829_s0 = sld [smem:[#allocation114_spill]] }
  0x6a   : > { %s7582_s14 = sadd.s32 %s6614_s17, %s6613_s3  ;;  %s7596_s15 = scalar_lea.sflag [#allocation4], %s239_s21 }
  0x6b   : > { %s5579_s13 = sshll.u32 %s7582_s14, 6  ;;  %p7124_p8 = pneg %p7571_p2 }
  0x6f   : > { %s7594_s30 = scalar_lea.hbm %s10829_s0, %s5579_s13  ;;  %s7127_s5 = scalar_lea.hbm %s10829_s0, 38400 }
  0x70   : > { %s7122_s3 = scalar_lea.hbm %s7594_s30, 3840  ;;  %p7128_p1 = scmp.lt.u32.totalorder %s7594_s30, %s10829_s0 }
  0x71   : > { %p7123_p6 = scmp.ne.s32.totalorder %s7594_s30, %s7122_s3  ;;  %p7129_p3 = scmp.lt.u32.totalorder %s7127_s5, %s7122_s3 }
  0x72   : > { %p7131_p7 = scmp.lt.u32.totalorder %s7122_s3, %s7594_s30 }
  0x73   : > { %p7125_p10 = pnand %p7124_p8, %p7123_p6  ;;  %p7130_p11 = por %p7129_p3, %p7128_p1 }
  0x75   : > { %p7126_p13 = pneg %p7125_p10  ;;  %p7132_p0 = por %p7131_p7, %p7130_p11 }
  0x77   : > { %p7133_p12 = pnand %p7132_p0, %p7126_p13 }
  0x79   : > { %7136 = shalt.err (!%p7133_p12)
}
  0x7a   : > { %s7137_s21 = scalar_lea.vmem %s7580_s8, 3840  ;;  %s7355_s17 = smov [#allocation3]  }
  0x7b   : > { %p7138_p6 = scmp.ne.s32.totalorder %s7580_s8, %s7137_s21  ;;  %s7142_s10 = sshll.u32 %s7355_s17, 4  ;;  %s7143_s10 = int_to_ptr.vmem [resolvable:$false] %s7142_s10 }
  0x7c   : > { %s7144_s11 = scalar_lea.vmem %s7143_s10, 7680  ;;  %p7145_p9 = scmp.lt.s32.totalorder %s7580_s8, %s7143_s10 }
  0x7d   : > { %p7140_p10 = pnand %p7138_p6, %p7124_p8  ;;  %p7146_p1 = scmp.lt.s32.totalorder %s7144_s11, %s7137_s21 }
  0x7f   : > { %p7141_p5 = pneg %p7140_p10  ;;  %p7147_p3 = por %p7146_p1, %p7145_p9 }
  0x81   : > { %p7148_p11 = pnand %p7147_p3, %p7141_p5 }
  0x83   : > { %7151 = shalt.err (!%p7148_p11)
}
  0x84   : > { %s10830_s3 = smov 4   ;;  %s10831_s5 = smov 64  }
  0x85   : > { %6644 = dma.hbm_to_vmem [thread:$0]  (!%p7571_p2), %s7594_s30, 3840, %s7580_s8, %s7596_s15, %s10831_s5, %s10831_s5, %s10830_s3  }
  0x86   : > { %s5447_s21 = scalar_lea.hbm %s10749_s1, %s5579_s13  ;;  %s80_s17 = sadd.s32 1, %s7317_s20 }
  0x87   : > { %s7636_s10 = scalar_select %p7584_p4, %s7317_s20, %s80_s17  }
  0x88   : > { %p87_p5 = scmp.ne.s32.totalorder %s7317_s20, %s7313_s19  ;;  %s263_s11 = sand.u32 1, %s7349_s28  }
  0x89   : > { %s265_s0 = sand.u32 1, %s7317_s20   ;;  %p10832_p9 = scmp.eq.s32.totalorder %s7349_s28, 0 }
  0x8a   : > { %s6615_s12 = smul.u32 240, %s265_s0  ;;  %s7644_s27 = scalar_lea.hbm %s5447_s21, 3840 }
  0x8b   : > { %p89_p12 = por %p87_p5, %p10832_p9  ;;  %p10833_p8 = scmp.lt.s32.totalorder %s7349_s28, 8 }
  0x8c   : > { %s267_s14 = scalar_lea.vmem [#allocation6], %s6615_s12  ;;  %s7654_s13 = scalar_lea.sflag [#allocation7], %s263_s11 }
  0x8d   : > { %p7648_p2 = pnand %p10833_p8, %p89_p12  ;;  %s278_s18 = sshll.u32 %s267_s14, 4  ;;  %s7652_s18 = int_to_ptr.vmem [resolvable:$true] %s278_s18 }
  0x8e   : > { %s7182_s30 = scalar_lea.hbm %s5447_s21, 7680  ;;  %s7157_s4 = scalar_lea.hbm %s10749_s1, 38400 }
  0x8f   : > { %p7153_p4 = scmp.ne.s32.totalorder %s7644_s27, %s7182_s30  ;;  %p7154_p13 = pneg %p7648_p2 }
  0x90   : > { %p7158_p6 = scmp.lt.u32.totalorder %s7644_s27, %s10749_s1  ;;  %p7159_p10 = scmp.lt.u32.totalorder %s7157_s4, %s7182_s30 }
  0x91   : > { %p7155_p7 = pnand %p7154_p13, %p7153_p4  ;;  %p7161_p3 = scmp.lt.u32.totalorder %s7182_s30, %s7644_s27 }
  0x92   : > { %p7160_p1 = por %p7159_p10, %p7158_p6 }
  0x93   : > { %p7156_p0 = pneg %p7155_p7 }
  0x94   : > { %p7162_p11 = por %p7161_p3, %p7160_p1 }
  0x96   : > { %p7163_p5 = pnand %p7162_p11, %p7156_p0 }
  0x98   : > { %7166 = shalt.err (!%p7163_p5)
}
  0x99   : > { %s7167_s12 = scalar_lea.vmem %s7652_s18, 3840  ;;  %s7356_s21 = smov [#allocation6]  }
  0x9a   : > { %p7168_p9 = scmp.ne.s32.totalorder %s7652_s18, %s7167_s12  ;;  %s7172_s11 = sshll.u32 %s7356_s21, 4  ;;  %s7173_s11 = int_to_ptr.vmem [resolvable:$false] %s7172_s11 }
  0x9b   : > { %s7174_s14 = scalar_lea.vmem %s7173_s11, 7680  ;;  %p7175_p4 = scmp.lt.s32.totalorder %s7652_s18, %s7173_s11 }
  0x9c   : > { %p7170_p12 = pnand %p7168_p9, %p7154_p13  ;;  %p7176_p7 = scmp.lt.s32.totalorder %s7174_s14, %s7167_s12 }
  0x9e   : > { %p7171_p8 = pneg %p7170_p12  ;;  %p7177_p6 = por %p7176_p7, %p7175_p4 }
  0xa0   : > { %p7178_p10 = pnand %p7177_p6, %p7171_p8 }
  0xa2   : > { %7181 = shalt.err (!%p7178_p10)
}
  0xa3   : > { %6647 = dma.hbm_to_vmem [thread:$0]  (!%p7648_p2), %s7644_s27, 3840, %s7652_s18, %s7654_s13, %s10831_s5, %s10831_s5, %s10830_s3  }
  0xa4   : > { %p10835_p13 = scmp.ne.s32.totalorder %s10819_s9, 0 }
  0xa6   : > { %290 = sbr.rel (%p10835_p13) target bundleno = 1087 (0x43f), region = 36 }
  0xad   : > { %s7687_s30 = sand.u32 1, %s7325_s22   ;;  %p10836_p0 = scmp.ne.s32.totalorder %s10815_s6, 0 }
  0xae   : > { %s6616_s0 = smul.u32 240, %s7687_s30  ;;  %s293_s15 = scalar_lea.sflag [#allocation4], %s7687_s30 }
  0xb0   : > { %s7691_s4 = scalar_lea.vmem [#allocation3], %s6616_s0 }
  0xb1   : > { %7284 = dma.done.wait (%p10836_p0), %s293_s15, 3840  }
  0xb2   : > { %7286 = vsyncadd (%p10836_p0), %s293_s15, 4294963456  ;;  %s301_s27 = sand.u32 1, %s7452_s29   ;;  %s303_s9 = sand.u32 1, %s7313_s19  }
  0xb3   : > { %s6617_s3 = smul.u32 240, %s303_s9  ;;  %s302_s5 = scalar_lea.sflag [#allocation7], %s301_s27 }
  0xb4   : > { %p10837_p2 = scmp.ne.s32.totalorder %s10816_s7, 0 }
  0xb5   : > { %s7699_s8 = scalar_lea.vmem [#allocation6], %s6617_s3 }
  0xb6   : > { %7288 = dma.done.wait (%p10837_p2), %s302_s5, 3840  }
  0xb7   : > { %7290 = vsyncadd (%p10837_p2), %s302_s5, 4294963456  ;;  %p10838_p1 = scmp.eq.s32.totalorder %s7452_s29, 0 }
  0xb9   : > { %7292 = dma.done.wait (%p10838_p1), [#allocation7], 960   ;;  %p10839_p3 = pmov %p10838_p1 }
  0xba   : > { %p10840_p11 = pmov %p10838_p1 }
  0xbb   : > { %7294 = vsyncadd (%p10839_p3), [#allocation7], 4294966336 }
  0xbc   : > { %7296 = dma.done.wait (%p10840_p11), [#allocation10], 16   ;;  %p10841_p5 = pmov %p10838_p1 }
  0xbd   : > { %vm681_vm0 = vcmask 1046528   ;;  %v379_v0 = vld [vmem:[%s7691_s4 + $0x10] sm:$0xf]  ;;  %v401_v1 = vld [vmem:[%s7691_s4 + $0xc] sm:$0xe]  ;;  %s7357_s29 = smov 8  }
  0xbe   : > { %7298 = vsyncadd (%p10841_p5), [#allocation10], 4294967280  ;;  %v6762_v2 = vld [vmem:[%s7691_s4 + $0x14] ss:$0 sps:$4 sm:$0x11]   ;;  %v5667_v3 = vcombine.low %v401_v1, %v379_v0  ;;  %s7358_s6 = smov 4  }
  0xbf   : > { %v378_v4 = vld [vmem:[%s7691_s4 + $0xc] sm:$0xf]  ;;  %v377_v5 = vld [vmem:[%s7691_s4 + $0x4] sm:$0xf]  ;;  %v400_v6 = vld [vmem:[%s7691_s4] sm:$0xe] }
  0xc0   : > { %vm544_vm1 = vsmask.f32 7424  ;;  %v685_v7 = vrot.slane %v5667_v3, 1  ;;  %v686_v8 = vrot.slane %v6762_v2, 1  ;;  %v5666_v10 = vcombine.low %v400_v6, %v377_v5  ;;  %v376_v12 = vld [vmem:[%s7691_s4] sm:$0xf] }
  0xc1   : > { %v6765_v9 = vld [vmem:[%s7691_s4 + $0x8] ss:$0 sps:$4 sm:$0x11]   ;;  %v565_v11 = vshll.u32 %v6762_v2, 16  ;;  %v380_v13 = vld [vmem:[%s7691_s4 + $0x18] sm:$0xf]  ;;  %v7726_v18 = vcombine.low %v376_v12, %v377_v5  ;;  %v7730_v20 = vcombine.low %v378_v4, %v379_v0 }
  0xc2   : > { %v7723_v14 = vld [vmem:[%s7691_s4 + $0x1c] sm:$0xf]  ;;  %v687_v15 = vsel %vm681_vm0, %v685_v7, %v686_v8  ;;  %v682_v16 = vrot.slane %v5666_v10, 1  ;;  %v683_v17 = vrot.slane %v6765_v9, 1  ;;  %v382_v19 = vld [vmem:[%s7691_s4 + $0x24] sm:$0xf] }
  0xc3   : > { %10842 = vst [vmem:[#allocation26_spill] sm:$0xff] %v7726_v18  ;;  %708 = vrot.lane.b32.xlu1 %v687_v15, %s7357_s29  ;;  %10843 = vst [vmem:[#allocation27_spill] sm:$0xff] %v7730_v20  ;;  %v7733_v21 = vcombine.low %v380_v13, %v7723_v14  ;;  %v7736_v22 = vld [vmem:[%s7691_s4 + $0x20] ss:$0 sps:$4 sm:$0x11]   ;;  %v553_v23 = vshll.u32 %v6765_v9, 16 }
  0xc4   : > { %v7739_v24 = vld [vmem:[%s7691_s4 + $0x28] sm:$0xf]  ;;  %v684_v25 = vsel %vm681_vm0, %v682_v16, %v683_v17  ;;  %v546_v26 = vshrl.u32 %v7726_v18, 16  ;;  %v548_v27 = vshll.u32 %v7726_v18, 16  ;;  %v386_v29 = vld [vmem:[%s7691_s4 + $0x3c] sm:$0xf] }
  0xc5   : > { %10844 = vst [vmem:[#allocation28_spill] sm:$0xff] %v7733_v21  ;;  %v7745_v28 = vcombine.low %v382_v19, %v7739_v24  ;;  %706 = vrot.lane.b32.xlu0 %v684_v25, %s7357_s29  ;;  %v570_v30 = vshrl.u32 %v7733_v21, 16  ;;  %v572_v31 = vshll.u32 %v7733_v21, 16  ;;  %v577_v32 = vshll.u32 %v7736_v22, 16  ;;  %v7753_v34 = vld [vmem:[%s7691_s4 + $0x40] sm:$0xf] }
  0xc6   : > { %v555_v33 = vrot.slane %v553_v23, 1  ;;  %v550_v35 = vrot.slane %v548_v27, 1  ;;  %v7756_v36 = vld [vmem:[%s7691_s4 + $0x2c] ss:$0 sps:$4 sm:$0x11]   ;;  %v7761_v39 = vcombine.low %v386_v29, %v7753_v34  ;;  %v558_v42 = vshrl.u32 %v7730_v20, 16 }
  0xc7   : > { %10845 = vst [vmem:[#allocation29_spill] sm:$0xff] %v7745_v28  ;;  %v582_v37 = vshrl.u32 %v7745_v28, 16  ;;  %v584_v38 = vshll.u32 %v7745_v28, 16  ;;  %v574_v40 = vrot.slane %v572_v31, 1  ;;  %v579_v41 = vrot.slane %v577_v32, 1  ;;  %s7359_s7 = smov 12  }
  0xc8   : > { %10846 = vst [vmem:[#allocation30_spill] sm:$0xff] %v7761_v39  ;;  %v560_v43 = vshll.u32 %v7730_v20, 16  ;;  %v551_v44 = vor.u32 %v550_v35, %v546_v26  ;;  %v589_v46 = vshll.u32 %v7756_v36, 16  ;;  %v567_v47 = vrot.slane %v565_v11, 1  ;;  %v384_v53 = vld [vmem:[%s7691_s4 + $0x30] sm:$0xf] }
  0xc9   : > { %v586_v45 = vrot.slane %v584_v38, 1  ;;  %v7767_v48 = vld [vmem:[%s7691_s4 + $0x44] ss:$0 sps:$4 sm:$0x11]   ;;  %v575_v49 = vor.u32 %v574_v40, %v570_v30  ;;  %v606_v51 = vshrl.u32 %v7761_v39, 16  ;;  %v608_v52 = vshll.u32 %v7761_v39, 16 }
  0xca   : > { %v562_v50 = vrot.slane %v560_v43, 1  ;;  %v556_v54 = vsel %vm544_vm1, %v551_v44, %v555_v33  ;;  %v591_v56 = vrot.slane %v589_v46, 1  ;;  %v613_v57 = vshll.u32 %v7767_v48, 16  ;;  %v7775_v58 = vld [vmem:[%s7691_s4 + $0x34] sm:$0xf]  ;;  %s7360_s18 = smov 16  }
  0xcb   : > { %v587_v55 = vor.u32 %v586_v45, %v582_v37  ;;  %v580_v59 = vsel %vm544_vm1, %v575_v49, %v579_v41  ;;  %641 = vrot.lane.b32.xlu0 %v556_v54, %s7358_s6  ;;  %v610_v61 = vrot.slane %v608_v52, 1  ;;  %v7780_v62 = vcombine.low %v384_v53, %v7775_v58  ;;  %v7783_v63 = vld [vmem:[%s7691_s4 + $0x38] ss:$0 sps:$4 sm:$0x11]   ;;  %v390_v0 = vld [vmem:[%s7691_s4 + $0x54] sm:$0xf] }
  0xcc   : > { %v563_v60 = vor.u32 %v562_v50, %v558_v42  ;;  %645 = vrot.lane.b32.xlu1 %v580_v59, %s7358_s6  ;;  %v615_v2 = vrot.slane %v613_v57, 1  ;;  %v7789_v3 = vld [vmem:[%s7691_s4 + $0x58] sm:$0xf]  ;;  %v7795_v8 = vld [vmem:[%s7691_s4 + $0x5c] ss:$0 sps:$4 sm:$0x11]  }
  0xcd   : > { %10847 = vst [vmem:[#allocation31_spill] sm:$0xff] %v7780_v62  ;;  %v592_v1 = vsel %vm544_vm1, %v587_v55, %v591_v56  ;;  %v611_v5 = vor.u32 %v610_v61, %v606_v51  ;;  %v594_v6 = vshrl.u32 %v7780_v62, 16  ;;  %v596_v7 = vshll.u32 %v7780_v62, 16  ;;  %v388_v11 = vld [vmem:[%s7691_s4 + $0x48] sm:$0xf]  ;;  %s7361_s13 = smov 20  }
  0xce   : > { %v568_v4 = vsel %vm544_vm1, %v563_v60, %v567_v47  ;;  %v601_v9 = vshll.u32 %v7783_v63, 16  ;;  %v7799_v10 = vcombine.low %v390_v0, %v7789_v3  ;;  %v389_v12 = vld [vmem:[%s7691_s4 + $0x4c] sm:$0xf]  ;;  %v637_v15 = vshll.u32 %v7795_v8, 16  ;;  %v403_v17 = vld [vmem:[%s7691_s4 + $0x24] sm:$0xe] }
  0xcf   : > { %643 = vrot.lane.b32.xlu0 %v568_v4, %s7358_s6  ;;  %v598_v13 = vrot.slane %v596_v7, 1  ;;  %v7805_v16 = vcombine.low %v388_v11, %v389_v12  ;;  %v6779_v26 = vld [vmem:[%s7691_s4 + $0x50] ss:$0 sps:$4 sm:$0x11]   ;;  %v5669_v27 = vcombine.low %v403_v17, %v7739_v24  ;;  %v616_v29 = vsel %vm544_vm1, %v611_v5, %v615_v2  ;;  %v402_v33 = vld [vmem:[%s7691_s4 + $0x18] sm:$0xe] }
  0xd0   : > { %10848 = vst [vmem:[#allocation32_spill] sm:$0xff] %v7799_v10  ;;  %647 = vrot.lane.b32.xlu1 %v592_v1, %s7358_s6  ;;  %v603_v19 = vrot.slane %v601_v9, 1  ;;  %v630_v23 = vshrl.u32 %v7799_v10, 16  ;;  %v632_v25 = vshll.u32 %v7799_v10, 16  ;;  %v639_v37 = vrot.slane %v637_v15, 1  ;;  %s7362_s16 = smov 24  }
  0xd1   : > { %10849 = vst [vmem:[#allocation33_spill] sm:$0xff] %v7805_v16  ;;  %v599_v30 = vor.u32 %v598_v13, %v594_v6  ;;  %v618_v31 = vshrl.u32 %v7805_v16, 16  ;;  %v620_v32 = vshll.u32 %v7805_v16, 16  ;;  %v625_v38 = vshll.u32 %v6779_v26, 16  ;;  %v405_v41 = vld [vmem:[%s7691_s4 + $0x3c] sm:$0xe] }
  0xd2   : > { %v634_v35 = vrot.slane %v632_v25, 1  ;;  %v5668_v40 = vcombine.low %v402_v33, %v7723_v14  ;;  %v692_v24 = vrot.slane %v7756_v36, 1  ;;  %v404_v44 = vld [vmem:[%s7691_s4 + $0x30] sm:$0xe]  ;;  %v691_v47 = vrot.slane %v5669_v27, 1  ;;  %s7363_s17 = smov 28  }
  0xd3   : > { %v604_v42 = vsel %vm544_vm1, %v599_v30, %v603_v19  ;;  %v622_v43 = vrot.slane %v620_v32, 1  ;;  %v627_v46 = vrot.slane %v625_v38, 1  ;;  %v5671_v49 = vcombine.low %v405_v41, %v7753_v34  ;;  %v407_v54 = vld [vmem:[%s7691_s4 + $0x54] sm:$0xe]  ;;  %v406_v36 = vld [vmem:[%s7691_s4 + $0x48] sm:$0xe] }
  0xd4   : > { %651 = vrot.lane.b32.xlu1 %v616_v29, %s7358_s6  ;;  %649 = vrot.lane.b32.xlu0 %v604_v42, %s7358_s6  ;;  %v635_v45 = vor.u32 %v634_v35, %v630_v23  ;;  %v688_v14 = vrot.slane %v5668_v40, 1  ;;  %v689_v51 = vrot.slane %v7736_v22, 1  ;;  %v5670_v52 = vcombine.low %v404_v44, %v7775_v58  ;;  %v7847_v5 = vld [vmem:[%s7691_s4 + $0x1c] sm:$0xf]  ;;  %v7853_v9 = vld [vmem:[%s7691_s4 + $0x10] sm:$0xf] }
  0xd5   : > { %v623_v50 = vor.u32 %v622_v43, %v618_v31  ;;  %v693_v56 = vsel %vm681_vm0, %v691_v47, %v692_v24  ;;  %v697_v34 = vrot.slane %v5671_v49, 1  ;;  %v698_v57 = vrot.slane %v7767_v48, 1  ;;  %v5592_v11 = vld [vmem:[%s7691_s4 + $0x30] sm:$0xf]  ;;  %v7861_v15 = vld [vmem:[%s7691_s4 + $0x34] sm:$0xf] }
  0xd6   : > { %v640_v53 = vsel %vm544_vm1, %v635_v45, %v639_v37  ;;  %v695_v22 = vrot.slane %v7783_v63, 1  ;;  %v690_v58 = vsel %vm681_vm0, %v688_v14, %v689_v51  ;;  %v694_v59 = vrot.slane %v5670_v52, 1  ;;  %v5590_v17 = vld [vmem:[%s7691_s4 + $0x24] sm:$0xf]  ;;  %v7865_v19 = vld [vmem:[%s7691_s4 + $0x28] sm:$0xf] }
  0xd7   : > { %v628_v55 = vsel %vm544_vm1, %v623_v50, %v627_v46  ;;  %v5673_v60 = vcombine.low %v407_v54, %v7789_v3  ;;  %v5672_v61 = vcombine.low %v406_v36, %v389_v12  ;;  %v699_v0 = vsel %vm681_vm0, %v697_v34, %v698_v57  ;;  %v5588_v3 = vld [vmem:[%s7691_s4 + $0x18] sm:$0xf]  ;;  %v5596_v23 = vld [vmem:[%s7691_s4 + $0x48] sm:$0xf]  ;;  %v7869_v25 = vld [vmem:[%s7691_s4 + $0x4c] sm:$0xf] }
  0xd8   : > { %655 = vrot.lane.b32.xlu1 %v640_v53, %s7358_s6  ;;  %653 = vrot.lane.b32.xlu0 %v628_v55, %s7358_s6  ;;  %v704_v48 = vrot.slane %v7795_v8, 1  ;;  %v696_v63 = vsel %vm681_vm0, %v694_v59, %v695_v22  ;;  %v701_v4 = vrot.slane %v6779_v26, 1  ;;  %v5586_v8 = vld [vmem:[%s7691_s4 + $0xc] sm:$0xf]  ;;  %v5675_v12 = vcombine.low %v5588_v3, %v7847_v5  ;;  %v5594_v31 = vld [vmem:[%s7691_s4 + $0x3c] sm:$0xf] }
  0xd9   : > { %v703_v1 = vrot.slane %v5673_v60, 1  ;;  %v700_v2 = vrot.slane %v5672_v61, 1  ;;  %v5674_v13 = vcombine.low %v5586_v8, %v7853_v9  ;;  %v5677_v29 = vcombine.low %v5592_v11, %v7861_v15  ;;  %v7877_v32 = vld [vmem:[%s7691_s4 + $0x40] sm:$0xf]  ;;  %v7897_v44 = vld [vmem:[%s7691_s4 + $0x64] sm:$0xf] }
  0xda   : > { %v817_v26 = vshll.u32 %v5675_v12, 16  ;;  %v5676_v30 = vcombine.low %v5590_v17, %v7865_v19  ;;  %v7880_v33 = vld [vmem:[%s7691_s4 + $0x20] ss:$0 sps:$4 sm:$0x11]   ;;  %v5679_v43 = vcombine.low %v5596_v23, %v7869_v25  ;;  %v5678_v24 = vcombine.low %v5594_v31, %v7877_v32  ;;  %v5598_v45 = vld [vmem:[%s7691_s4 + $0x54] sm:$0xf] }
  0xdb   : > { %v705_v6 = vsel %vm681_vm0, %v703_v1, %v704_v48  ;;  %v702_v7 = vsel %vm681_vm0, %v700_v2, %v701_v4  ;;  %v805_v27 = vshll.u32 %v5674_v13, 16  ;;  %v7883_v35 = vld [vmem:[%s7691_s4 + $0x14] ss:$0 sps:$4 sm:$0x11]   ;;  %v841_v37 = vshll.u32 %v5677_v29, 16  ;;  %s7364_s12 = smov 32  }
  0xdc   : > { %712 = vrot.lane.b32.xlu1 %v693_v56, %s7357_s29  ;;  %710 = vrot.lane.b32.xlu0 %v690_v58, %s7357_s29  ;;  %v829_v38 = vshll.u32 %v5676_v30, 16  ;;  %v5600_v40 = vld [vmem:[%s7691_s4 + $0x60] sm:$0xf]  ;;  %v7887_v41 = vld [vmem:[%s7691_s4 + $0x38] ss:$0 sps:$4 sm:$0x11]  }
  0xdd   : > { %v7890_v42 = vld [vmem:[%s7691_s4 + $0x2c] ss:$0 sps:$4 sm:$0x11]   ;;  %v815_v46 = vshrl.u32 %v5675_v12, 16  ;;  %v819_v47 = vrot.slane %v817_v26, 1  ;;  %v822_v50 = vshll.u32 %v7880_v33, 16  ;;  %v5681_v58 = vcombine.low %v5600_v40, %v7897_v44 }
  0xde   : > { %v7901_v49 = vld [vmem:[%s7691_s4 + $0x58] sm:$0xf]  ;;  %v803_v14 = vshrl.u32 %v5674_v13, 16  ;;  %v807_v51 = vrot.slane %v805_v27, 1  ;;  %v810_v52 = vshll.u32 %v7883_v35, 16  ;;  %v865_v53 = vshll.u32 %v5679_v43, 16 }
  0xdf   : > { %v839_v54 = vshrl.u32 %v5677_v29, 16  ;;  %v843_v36 = vrot.slane %v841_v37, 1  ;;  %v846_v55 = vshll.u32 %v7887_v41, 16  ;;  %v827_v56 = vshrl.u32 %v5676_v30, 16  ;;  %v2625_v10 = vld [vmem:[%s7699_s8 + $0x18] sm:$0xf] }
  0xe0   : > { %716 = vrot.lane.b32.xlu1 %v699_v0, %s7357_s29  ;;  %714 = vrot.lane.b32.xlu0 %v696_v63, %s7357_s29  ;;  %v831_v34 = vrot.slane %v829_v38, 1  ;;  %v834_v57 = vshll.u32 %v7890_v42, 16  ;;  %v853_v22 = vshll.u32 %v5678_v24, 16  ;;  %v5680_v59 = vcombine.low %v5598_v45, %v7901_v49  ;;  %v7912_v60 = vld [vmem:[%s7691_s4 + $0x50] ss:$0 sps:$4 sm:$0x11]  }
  0xe1   : > { %v820_v61 = vor.u32 %v819_v47, %v815_v46  ;;  %v824_v0 = vrot.slane %v822_v50, 1  ;;  %v808_v48 = vor.u32 %v807_v51, %v803_v14  ;;  %v812_v63 = vrot.slane %v810_v52, 1  ;;  %v7915_v1 = vld [vmem:[%s7691_s4 + $0x44] ss:$0 sps:$4 sm:$0x11]   ;;  %s5584_s21 = sshll.u32 %s7687_s30, 7 }
  0xe2   : > { %v889_v2 = vshll.u32 %v5681_v58, 16  ;;  %v844_v4 = vor.u32 %v843_v36, %v839_v54  ;;  %v863_v3 = vshrl.u32 %v5679_v43, 16  ;;  %v836_v8 = vrot.slane %v834_v57, 1  ;;  %v7921_v23 = vld [vmem:[%s7691_s4 + $0x68] ss:$0 sps:$4 sm:$0x11]  }
  0xe3   : > { %v867_v11 = vrot.slane %v865_v53, 1  ;;  %v855_v17 = vrot.slane %v853_v22, 1  ;;  %v877_v26 = vshll.u32 %v5680_v59, 16  ;;  %v825_v27 = vsel %vm544_vm1, %v820_v61, %v824_v0  ;;  %v7927_v31 = vld [vmem:[%s7691_s4 + $0x5c] ss:$0 sps:$4 sm:$0x11]  }
  0xe4   : > { %720 = vrot.lane.b32.xlu1 %v705_v6, %s7357_s29  ;;  %718 = vrot.lane.b32.xlu0 %v702_v7, %s7357_s29  ;;  %v848_v6 = vrot.slane %v846_v55, 1  ;;  %v832_v7 = vor.u32 %v831_v34, %v827_v56  ;;  %v891_v47 = vrot.slane %v889_v2, 1  ;;  %v894_v50 = vshll.u32 %v7921_v23, 16  ;;  %v5610_v14 = vld [vmem:[%s7691_s4 + $0xc] sm:$0xe]  ;;  %s10466_s11 = scalar_lea.vmem [#allocation11], %s5584_s21 }
  0xe5   : > { %v868_v40 = vor.u32 %v867_v11, %v863_v3  ;;  %v875_v52 = vshrl.u32 %v5680_v59, 16  ;;  %v879_v53 = vrot.slane %v877_v26, 1  ;;  %v882_v54 = vshll.u32 %v7927_v31, 16  ;;  %v5613_v56 = vld [vmem:[%s7691_s4 + $0x30] sm:$0xe]  ;;  %s5585_s14 = sshll.u32 %s7687_s30, 4 }
  0xe6   : > { %v849_v37 = vsel %vm544_vm1, %v844_v4, %v848_v6  ;;  %v837_v38 = vsel %vm544_vm1, %v832_v7, %v836_v8  ;;  %v5690_v55 = vcombine.low %v5610_v14, %v7853_v9  ;;  %v5612_v22 = vld [vmem:[%s7691_s4 + $0x24] sm:$0xe]  ;;  %v942_v2 = vrot.slane %v7880_v33, 1  ;;  %v5614_v4 = vld [vmem:[%s7691_s4 + $0x3c] sm:$0xe]  ;;  %s10553_s0 = scalar_lea.vmem [#allocation12], %s5585_s14 }
  0xe7   : > { %v880_v61 = vor.u32 %v879_v53, %v875_v52  ;;  %v884_v0 = vrot.slane %v882_v54, 1  ;;  %v5692_v9 = vcombine.low %v5612_v22, %v7865_v19  ;;  %v939_v8 = vrot.slane %v7883_v35, 1  ;;  %v5617_v11 = vld [vmem:[%s7691_s4 + $0x60] sm:$0xe]  ;;  %v5624_v14 = vld [vmem:[%s7691_s4 + $0x3c] sm:$0xf] }
  0xe8   : > { %764 = vrot.lane.b32.xlu1 %v5675_v12, %s7359_s7  ;;  %762 = vrot.lane.b32.xlu0 %v5674_v13, %s7359_s7  ;;  %v870_v12 = vshll.u32 %v7912_v60, 16  ;;  %v851_v13 = vshrl.u32 %v5678_v24, 16  ;;  %v938_v7 = vrot.slane %v5690_v55, 1  ;;  %v5694_v19 = vcombine.low %v5614_v4, %v7877_v32  ;;  %v5622_v53 = vld [vmem:[%s7691_s4 + $0x30] sm:$0xf]  ;;  %s6343_s15 = sshll.u32 %s7333_s24, 5 }
  0xe9   : > { %v885_v6 = vsel %vm544_vm1, %v880_v61, %v884_v0  ;;  %v948_v33 = vrot.slane %v7887_v41, 1  ;;  %v945_v35 = vrot.slane %v7890_v42, 1  ;;  %v951_v42 = vrot.slane %v7915_v1, 1  ;;  %v8001_v54 = vld [vmem:[%s7691_s4 + $0x34] sm:$0xf]  ;;  %s5371_s9 = sshll.u32 %s10466_s11, 4  ;;  %s10629_s9 = int_to_ptr.vmem [resolvable:$true] %s5371_s9 }
  0xea   : > { %v872_v45 = vrot.slane %v870_v12, 1  ;;  %v856_v46 = vor.u32 %v855_v17, %v851_v13  ;;  %v5616_v13 = vld [vmem:[%s7691_s4 + $0x54] sm:$0xe]  ;;  %v940_v26 = vsel %vm681_vm0, %v938_v7, %v939_v8  ;;  %v8011_v61 = vld [vmem:[%s7691_s4 + $0x4c] sm:$0xf]  ;;  %vm2387_vm2 = vcmask 1041408  }
  0xeb   : > { %v5696_v32 = vcombine.low %v5616_v13, %v7901_v49  ;;  %v960_v49 = vrot.slane %v7921_v23, 1  ;;  %v5628_v55 = vld [vmem:[%s7691_s4 + $0x54] sm:$0xf]  ;;  %v5632_v4 = vld [vmem:[%s7691_s4 + $0x6c] sm:$0xf]  ;;  %vm1234_vm3 = vcmask 31744  }
  0xec   : > { %768 = vrot.lane.b32.xlu1 %v5677_v29, %s7359_s7  ;;  %766 = vrot.lane.b32.xlu0 %v5676_v30, %s7359_s7  ;;  %v813_v29 = vsel %vm544_vm1, %v808_v48, %v812_v63  ;;  %v858_v30 = vshll.u32 %v7915_v1, 16  ;;  %v873_v34 = vsel %vm544_vm1, %v868_v40, %v872_v45  ;;  %v5615_v48 = vld [vmem:[%s7691_s4 + $0x48] sm:$0xe]  ;;  %v5620_v1 = vld [vmem:[%s7691_s4 + $0x24] sm:$0xf]  ;;  %vm1251_vm4 = vcmask 64512  }
  0xed   : > { %v5811_v16 = vld [vmem:[%s7691_s4 + $0x9c] sm:$0xe]  ;;  %v5783_v18 = vld [vmem:[%s7691_s4 + $0xc0] sm:$0xe]  ;;  %vm1268_vm5 = vcmask 97280   ;;  %vm1285_vm6 = vcmask 130048  }
  0xee   : > { %v860_v51 = vrot.slane %v858_v30, 1  ;;  %vm1302_vm7 = vcmask 162816   ;;  %vm1319_vm8 = vcmask 195584   ;;  %vm1336_vm9 = vcmask 228352   ;;  %s11033_s5 = sld [smem:[#allocation24_spill]] }
  0xef   : > { %vm1353_vm10 = vcmask 261120   ;;  %vm2370_vm11 = vcmask 293888   ;;  %vm5158_vm12 = vcmask 60416  }
  0xf0   : > { %772 = vrot.lane.b32.xlu1 %v5679_v43, %s7359_s7  ;;  %770 = vrot.lane.b32.xlu0 %v5678_v24, %s7359_s7  ;;  %v887_v43 = vshrl.u32 %v5681_v58, 16  ;;  %v5611_v24 = vld [vmem:[%s7691_s4 + $0x18] sm:$0xe] }
  0xf1   : > { %v5691_v36 = vcombine.low %v5611_v24, %v7847_v5  ;;  %v5693_v5 = vcombine.low %v5613_v56, %v7861_v15  ;;  %v5695_v15 = vcombine.low %v5615_v48, %v7869_v25  ;;  %v5697_v25 = vcombine.low %v5617_v11, %v7897_v44  ;;  %v5629_v56 = vld [vmem:[%s7691_s4 + $0x58] sm:$0xf]  ;;  %v5631_v11 = vld [vmem:[%s7691_s4 + $0x64] sm:$0xf] }
  0xf2   : > { %v892_v57 = vor.u32 %v891_v47, %v887_v43  ;;  %v957_v24 = vrot.slane %v7927_v31, 1  ;;  %v5618_v47 = vld [vmem:[%s7691_s4 + $0x18] sm:$0xf]  ;;  %v5703_v0 = vcombine.low %v5628_v55, %v5629_v56 }
  0xf3   : > { %v941_v63 = vrot.slane %v5691_v36, 1  ;;  %v947_v12 = vrot.slane %v5693_v5, 1  ;;  %v953_v41 = vrot.slane %v5695_v15, 1  ;;  %v959_v44 = vrot.slane %v5697_v25, 1 }
  0xf4   : > { %776 = vrot.lane.b32.xlu1 %v5681_v58, %s7359_s7  ;;  %774 = vrot.lane.b32.xlu0 %v5680_v59, %s7359_s7  ;;  %v861_v58 = vsel %vm544_vm1, %v856_v46, %v860_v51  ;;  %v896_v59 = vrot.slane %v894_v50, 1  ;;  %v7985_v46 = vld [vmem:[%s7691_s4 + $0x28] sm:$0xf]  ;;  %v7989_v50 = vld [vmem:[%s7691_s4 + $0x1c] sm:$0xf]  ;;  %p11035_p12 = scmp.ne.s32.totalorder %s11033_s5, 0 }
  0xf5   : > { %v943_v17 = vsel %vm681_vm0, %v941_v63, %v942_v2  ;;  %v961_v45 = vsel %vm681_vm0, %v959_v44, %v960_v49  ;;  %v7993_v51 = vld [vmem:[%s7691_s4 + $0x40] sm:$0xf]  ;;  %v5699_v31 = vcombine.low %v5620_v1, %v7985_v46  ;;  %v5698_v52 = vcombine.low %v5618_v47, %v7989_v50  ;;  %v8014_v5 = vld [vmem:[%s7691_s4 + $0x2c] ss:$0 sps:$4 sm:$0x11]  }
  0xf6   : > { %v897_v3 = vsel %vm544_vm1, %v892_v57, %v896_v59  ;;  %v5701_v36 = vcombine.low %v5624_v14, %v7993_v51  ;;  %v5626_v59 = vld [vmem:[%s7691_s4 + $0x48] sm:$0xf]  ;;  %v8020_v63 = vld [vmem:[%s7691_s4 + $0x44] ss:$0 sps:$4 sm:$0x11]   ;;  %v1121_v2 = vshll.u32 %v5703_v0, 16 }
  0xf7   : > { %v1061_v57 = vshll.u32 %v5698_v52, 16  ;;  %v1071_v7 = vshrl.u32 %v5699_v31, 16  ;;  %v5702_v8 = vcombine.low %v5626_v59, %v8011_v61  ;;  %v1119_v47 = vshrl.u32 %v5703_v0, 16  ;;  %v5642_v59 = vld [vmem:[%s7691_s4 + $0x18] sm:$0xe] }
  0xf8   : > { %900 = vrot.lane.b32.xlu1 %v825_v27, %s7360_s18  ;;  %898 = vrot.lane.b32.xlu0 %v813_v29, %s7360_s18  ;;  %v944_v27 = vrot.slane %v5692_v9, 1  ;;  %v949_v29 = vsel %vm681_vm0, %v947_v12, %v948_v33  ;;  %v1097_v22 = vshll.u32 %v5701_v36, 16  ;;  %v8017_v9 = vld [vmem:[%s7691_s4 + $0x20] ss:$0 sps:$4 sm:$0x11]   ;;  %v1078_v12 = vshll.u32 %v8014_v5, 16 }
  0xf9   : > { %v1059_v33 = vshrl.u32 %v5698_v52, 16  ;;  %v1063_v13 = vrot.slane %v1061_v57, 1  ;;  %v1123_v14 = vrot.slane %v1121_v2, 1  ;;  %v6832_v57 = vld [vmem:[%s7691_s4 + $0x74] ss:$0 sps:$4 sm:$0x11]  }
  0xfa   : > { %v946_v30 = vsel %vm681_vm0, %v944_v27, %v945_v35  ;;  %v1099_v27 = vrot.slane %v1097_v22, 1  ;;  %v1102_v35 = vshll.u32 %v8020_v63, 16  ;;  %v1080_v49 = vrot.slane %v1078_v12, 1  ;;  %v6833_v22 = vld [vmem:[%s7691_s4 + $0x68] ss:$0 sps:$4 sm:$0x11]  }
  0xfc   : > { %904 = vrot.lane.b32.xlu1 %v849_v37, %s7360_s18  ;;  %902 = vrot.lane.b32.xlu0 %v837_v38, %s7360_s18  ;;  %v954_v37 = vrot.slane %v7912_v60, 1  ;;  %v950_v38 = vrot.slane %v5694_v19, 1  ;;  %v956_v60 = vrot.slane %v5696_v32, 1  ;;  %v8029_v19 = vld [vmem:[%s7691_s4 + $0x38] ss:$0 sps:$4 sm:$0x11]  }
  0xfe   : > { %v955_v40 = vsel %vm681_vm0, %v953_v41, %v954_v37  ;;  %v952_v43 = vsel %vm681_vm0, %v950_v38, %v951_v42  ;;  %v958_v23 = vsel %vm681_vm0, %v956_v60, %v957_v24  ;;  %v1109_v41 = vshll.u32 %v5702_v8, 16  ;;  %v8040_v42 = vld [vmem:[%s7691_s4 + $0x50] ss:$0 sps:$4 sm:$0x11]  }
  0xff   : > { %v1090_v38 = vshll.u32 %v8029_v19, 16  ;;  %v1114_v55 = vshll.u32 %v8040_v42, 16 }
 0x100   : > { %908 = vrot.lane.b32.xlu1 %v873_v34, %s7360_s18  ;;  %906 = vrot.lane.b32.xlu0 %v861_v58, %s7360_s18  ;;  %v1073_v34 = vshll.u32 %v5699_v31, 16  ;;  %v5700_v58 = vcombine.low %v5622_v53, %v8001_v54  ;;  %v1107_v53 = vshrl.u32 %v5702_v8, 16 }
 0x102   : > { %v1085_v48 = vshll.u32 %v5700_v58, 16  ;;  %v1075_v15 = vrot.slane %v1073_v34, 1  ;;  %v1083_v25 = vshrl.u32 %v5700_v58, 16 }
 0x104   : > { %912 = vrot.lane.b32.xlu1 %v897_v3, %s7360_s18  ;;  %910 = vrot.lane.b32.xlu0 %v885_v6, %s7360_s18  ;;  %v5633_v3 = vld [vmem:[%s7691_s4 + $0x70] sm:$0xf]  ;;  %v5630_v6 = vld [vmem:[%s7691_s4 + $0x60] sm:$0xf]  ;;  %v1087_v32 = vrot.slane %v1085_v48, 1  ;;  %v1076_v44 = vor.u32 %v1075_v15, %v1071_v7  ;;  %v1124_v48 = vor.u32 %v1123_v14, %v1119_v47  ;;  %v1116_v7 = vrot.slane %v1114_v55, 1 }
 0x105   : > { %v5704_v37 = vcombine.low %v5630_v6, %v5631_v11  ;;  %v1150_v15 = vshll.u32 %v6832_v57, 16  ;;  %v2623_v55 = vld [vmem:[%s7699_s8 + $0xc] sm:$0xf]  ;;  %v1201_v57 = vrot.slane %v8029_v19, 1 }
 0x106   : > { %v1081_v56 = vsel %vm544_vm1, %v1076_v44, %v1080_v49  ;;  %v8072_v44 = vld [vmem:[%s7691_s4 + $0x88] sm:$0xf] }
 0x107   : > { %v1133_v24 = vshll.u32 %v5704_v37, 16  ;;  %v1131_v11 = vshrl.u32 %v5704_v37, 16 }
 0x108   : > { %964 = vrot.lane.b32.xlu1 %v943_v17, %s7361_s13  ;;  %962 = vrot.lane.b32.xlu0 %v940_v26, %s7361_s13  ;;  %v1066_v17 = vshll.u32 %v8017_v9, 16  ;;  %v1095_v26 = vshrl.u32 %v5701_v36, 16 }
 0x109   : > { %v1135_v12 = vrot.slane %v1133_v24, 1 }
 0x10a   : > { %v1100_v1 = vor.u32 %v1099_v27, %v1095_v26  ;;  %v5714_v27 = vcombine.low %v5642_v59, %v7989_v50  ;;  %v5724_v50 = vld [vmem:[%s7691_s4 + $0x84] sm:$0xf] }
 0x10b   : > { %v8089_v14 = vcombine.low %v5724_v50, %v8072_v44 }
 0x10c   : > { %968 = vrot.lane.b32.xlu1 %v949_v29, %s7361_s13  ;;  %966 = vrot.lane.b32.xlu0 %v946_v30, %s7361_s13  ;;  %v6830_v29 = vld [vmem:[%s7691_s4 + $0x5c] ss:$0 sps:$4 sm:$0x11]   ;;  %v5705_v30 = vcombine.low %v5632_v4, %v5633_v3  ;;  %v1194_v47 = vrot.slane %v5714_v27, 1 }
 0x10e   : > { %v1145_v60 = vshll.u32 %v5705_v30, 16  ;;  %v1143_v4 = vshrl.u32 %v5705_v30, 16 }
 0x110   : > { %972 = vrot.lane.b32.xlu1 %v955_v40, %s7361_s13  ;;  %970 = vrot.lane.b32.xlu0 %v952_v43, %s7361_s13  ;;  %v1064_v40 = vor.u32 %v1063_v13, %v1059_v33  ;;  %v1068_v43 = vrot.slane %v1066_v17, 1  ;;  %v1138_v33 = vshll.u32 %v6833_v22, 16  ;;  %v5722_v13 = vld [vmem:[%s7691_s4 + $0x78] sm:$0xf]  ;;  %v8057_v17 = vld [vmem:[%s7691_s4 + $0x7c] sm:$0xf] }
 0x112   : > { %v1069_v34 = vsel %vm544_vm1, %v1064_v40, %v1068_v43  ;;  %v2621_v40 = vld [vmem:[%s7699_s8] sm:$0xf]  ;;  %v8077_v43 = vld [vmem:[%s7699_s8 + $0x4] sm:$0xf] }
 0x114   : > { %976 = vrot.lane.b32.xlu1 %v961_v45, %s7361_s13  ;;  %974 = vrot.lane.b32.xlu0 %v958_v23, %s7361_s13  ;;  %v1104_v45 = vrot.slane %v1102_v35, 1  ;;  %v1088_v23 = vor.u32 %v1087_v32, %v1083_v25  ;;  %v5645_v35 = vld [vmem:[%s7691_s4 + $0x3c] sm:$0xe]  ;;  %v5644_v25 = vld [vmem:[%s7691_s4 + $0x30] sm:$0xe] }
 0x115   : > { %v5717_v49 = vcombine.low %v5645_v35, %v7993_v51  ;;  %v1195_v51 = vrot.slane %v8017_v9, 1  ;;  %v8134_v35 = vld [vmem:[%s7699_s8 + $0x14] ss:$0 sps:$4 sm:$0x11]  }
 0x118   : > { %1020 = vrot.lane.b32.xlu1 %v5699_v31, %s7362_s16  ;;  %1018 = vrot.lane.b32.xlu0 %v5698_v52, %s7362_s16  ;;  %v1126_v31 = vshll.u32 %v6830_v29, 16  ;;  %v1092_v52 = vrot.slane %v1090_v38, 1  ;;  %v8068_v38 = vcombine.low %v5722_v13, %v8057_v17  ;;  %v1552_v13 = vshrl.u32 %v8089_v14, 16 }
 0x11a   : > { %v1128_v2 = vrot.slane %v1126_v31, 1  ;;  %v1093_v3 = vsel %vm544_vm1, %v1088_v23, %v1092_v52  ;;  %v1198_v23 = vrot.slane %v8014_v5, 1  ;;  %v1542_v52 = vshll.u32 %v8068_v38, 16 }
 0x11b   : > { %v1204_v5 = vrot.slane %v8020_v63, 1  ;;  %v1196_v63 = vsel %vm681_vm0, %v1194_v47, %v1195_v51  ;;  %v5747_v51 = vld [vmem:[%s7691_s4 + $0x84] sm:$0xe] }
 0x11c   : > { %1024 = vrot.lane.b32.xlu1 %v5701_v36, %s7362_s16  ;;  %1022 = vrot.lane.b32.xlu0 %v5700_v58, %s7362_s16  ;;  %v1111_v36 = vrot.slane %v1109_v41, 1  ;;  %v5643_v58 = vld [vmem:[%s7691_s4 + $0x24] sm:$0xe]  ;;  %v1129_v32 = vsel %vm544_vm1, %v1124_v48, %v1128_v2  ;;  %v8114_v48 = vld [vmem:[%s7699_s8 + $0x8] ss:$0 sps:$4 sm:$0x11]  }
 0x11d   : > { %v5715_v26 = vcombine.low %v5643_v58, %v7985_v46  ;;  %v1140_v46 = vrot.slane %v1138_v33, 1  ;;  %v8106_v58 = vld [vmem:[%s7691_s4 + $0x8c] ss:$0 sps:$4 sm:$0x11]   ;;  %v1544_v2 = vrot.slane %v1542_v52, 1  ;;  %v2793_v27 = vshll.u32 %v8114_v48, 16 }
 0x11e   : > { %v1112_v6 = vor.u32 %v1111_v36, %v1107_v53  ;;  %v8095_v53 = vcombine.low %v2621_v40, %v8077_v43  ;;  %v1203_v36 = vrot.slane %v5717_v49, 1  ;;  %v2805_v40 = vshll.u32 %v8134_v35, 16 }
 0x11f   : > { %v1197_v24 = vrot.slane %v5715_v26, 1  ;;  %v2795_v50 = vrot.slane %v2793_v27, 1 }
 0x120   : > { %1028 = vrot.lane.b32.xlu1 %v5703_v0, %s7362_s16  ;;  %1026 = vrot.lane.b32.xlu0 %v5702_v8, %s7362_s16  ;;  %v1105_v0 = vsel %vm544_vm1, %v1100_v1, %v1104_v45  ;;  %v1147_v8 = vrot.slane %v1145_v60, 1  ;;  %v1117_v29 = vsel %vm544_vm1, %v1112_v6, %v1116_v7  ;;  %v5716_v60 = vcombine.low %v5644_v25, %v8001_v54  ;;  %v8081_v1 = vld [vmem:[%s7691_s4 + $0x80] ss:$0 sps:$4 sm:$0x11]   ;;  %v5646_v45 = vld [vmem:[%s7691_s4 + $0x48] sm:$0xe] }
 0x121   : > { %v5718_v9 = vcombine.low %v5646_v45, %v8011_v61  ;;  %v1547_v22 = vshll.u32 %v8081_v1, 16  ;;  %v1199_v59 = vsel %vm681_vm0, %v1197_v24, %v1198_v23  ;;  %v1540_v61 = vshrl.u32 %v8068_v38, 16 }
 0x122   : > { %v1148_v41 = vor.u32 %v1147_v8, %v1143_v4  ;;  %v2788_v19 = vshll.u32 %v8095_v53, 16 }
 0x123   : > { %v1549_v7 = vrot.slane %v1547_v22, 1  ;;  %v1206_v8 = vrot.slane %v5718_v9, 1  ;;  %v1545_v25 = vor.u32 %v1544_v2, %v1540_v61  ;;  %v1679_v61 = vrot.slane %v8106_v58, 1  ;;  %v2646_v2 = vld [vmem:[%s7699_s8 + $0xc] sm:$0xe] }
 0x124   : > { %1032 = vrot.lane.b32.xlu1 %v5705_v30, %s7362_s16  ;;  %1030 = vrot.lane.b32.xlu0 %v5704_v37, %s7362_s16  ;;  %v1152_v30 = vrot.slane %v1150_v15, 1  ;;  %v1136_v37 = vor.u32 %v1135_v12, %v1131_v11  ;;  %v1207_v15 = vrot.slane %v8040_v42, 1  ;;  %v1559_v11 = vshll.u32 %v8106_v58, 16 }
 0x125   : > { %v2786_v42 = vshrl.u32 %v8095_v53, 16  ;;  %v1550_v24 = vsel %vm544_vm1, %v1545_v25, %v1549_v7  ;;  %v2922_v7 = vrot.slane %v8114_v48, 1 }
 0x126   : > { %v1153_v54 = vsel %vm544_vm1, %v1148_v41, %v1152_v30  ;;  %v1141_v31 = vsel %vm544_vm1, %v1136_v37, %v1140_v46  ;;  %v5746_v41 = vld [vmem:[%s7691_s4 + $0x78] sm:$0xe]  ;;  %v1208_v30 = vsel %vm681_vm0, %v1206_v8, %v1207_v15  ;;  %v1561_v37 = vrot.slane %v1559_v11, 1  ;;  %v8179_v8 = vld [vmem:[%s7699_s8 + $0x10] sm:$0xf] }
 0x127   : > { %v5834_v47 = vcombine.low %v5746_v41, %v8057_v17  ;;  %v5835_v17 = vcombine.low %v5747_v51, %v8072_v44  ;;  %v5912_v44 = vld [vmem:[%s7699_s8 + $0xc] sm:$0xf]  ;;  %v2925_v41 = vrot.slane %v8134_v35, 1 }
 0x128   : > { %1156 = vrot.lane.b32.xlu1 %v1081_v56, %s7363_s17  ;;  %1154 = vrot.lane.b32.xlu0 %v1069_v34, %s7363_s17  ;;  %v8100_v56 = vld [vmem:[%s7699_s8 + $0x10] sm:$0xf]  ;;  %v1200_v34 = vrot.slane %v5716_v60, 1  ;;  %v6000_v48 = vcombine.low %v5912_v44, %v8179_v8  ;;  %v8227_v44 = vld [vmem:[%s7699_s8 + $0x20] ss:$0 sps:$4 sm:$0x11]  }
 0x129   : > { %v8119_v4 = vcombine.low %v2623_v55, %v8100_v56  ;;  %v5754_v55 = vld [vmem:[%s7691_s4 + $0x84] sm:$0xf]  ;;  %v1675_v22 = vrot.slane %v5834_v47, 1  ;;  %v8210_v47 = vld [vmem:[%s7691_s4 + $0x98] ss:$0 sps:$4 sm:$0x11]  }
 0x12a   : > { %v1202_v33 = vsel %vm681_vm0, %v1200_v34, %v1201_v57 }
 0x12b   : > { %v2798_v49 = vshrl.u32 %v8119_v4, 16 }
 0x12c   : > { %1160 = vrot.lane.b32.xlu1 %v1105_v0, %s7363_s17  ;;  %1158 = vrot.lane.b32.xlu0 %v1093_v3, %s7363_s17  ;;  %v1554_v0 = vshll.u32 %v8089_v14, 16  ;;  %v1205_v3 = vsel %vm681_vm0, %v1203_v36, %v1204_v5  ;;  %v2807_v36 = vrot.slane %v2805_v40, 1  ;;  %v1676_v5 = vrot.slane %v8081_v1, 1  ;;  %v5756_v1 = vld [vmem:[%s7691_s4 + $0x90] sm:$0xf] }
 0x12d   : > { %v3044_v40 = vshll.u32 %v6000_v48, 16 }
 0x12e   : > { %v1556_v26 = vrot.slane %v1554_v0, 1  ;;  %v1677_v58 = vsel %vm681_vm0, %v1675_v22, %v1676_v5  ;;  %v3042_v22 = vshrl.u32 %v6000_v48, 16 }
 0x130   : > { %1164 = vrot.lane.b32.xlu1 %v1129_v32, %s7363_s17  ;;  %1162 = vrot.lane.b32.xlu0 %v1117_v29, %s7363_s17  ;;  %v2790_v32 = vrot.slane %v2788_v19, 1  ;;  %v2800_v29 = vshll.u32 %v8119_v4, 16  ;;  %v1557_v46 = vor.u32 %v1556_v26, %v1552_v13  ;;  %v8171_v19 = vld [vmem:[%s7691_s4 + $0x94] sm:$0xf] }
 0x131   : > { %v5843_v27 = vcombine.low %v5756_v1, %v8171_v19 }
 0x132   : > { %v2791_v45 = vor.u32 %v2790_v32, %v2786_v42  ;;  %v2802_v23 = vrot.slane %v2800_v29, 1  ;;  %v1562_v52 = vsel %vm544_vm1, %v1557_v46, %v1561_v37  ;;  %v8193_v42 = vld [vmem:[%s7691_s4 + $0x8c] ss:$0 sps:$4 sm:$0x11]   ;;  %v5914_v46 = vld [vmem:[%s7699_s8 + $0x18] sm:$0xf] }
 0x133   : > { %v1808_v5 = vshrl.u32 %v5843_v27, 16 }
 0x134   : > { %1168 = vrot.lane.b32.xlu1 %v1153_v54, %s7363_s17  ;;  %1166 = vrot.lane.b32.xlu0 %v1141_v31, %s7363_s17  ;;  %v2645_v31 = vld [vmem:[%s7699_s8] sm:$0xe]  ;;  %v2796_v34 = vsel %vm544_vm1, %v2791_v45, %v2795_v50  ;;  %v2803_v57 = vor.u32 %v2802_v23, %v2798_v49  ;;  %v8204_v50 = vld [vmem:[%s7699_s8 + $0x1c] sm:$0xf]  ;;  %v1810_v49 = vshll.u32 %v5843_v27, 16  ;;  %v1803_v23 = vshll.u32 %v8193_v42, 16 }
 0x135   : > { %v8128_v12 = vpop.permute.xlu1 %708  ;;  %v6001_v51 = vcombine.low %v5914_v46, %v8204_v50  ;;  %v3061_v46 = vshll.u32 %v8227_v44, 16 }
 0x136   : > { %10851 = vst [vmem:[#allocation35_spill] sm:$0xff] %v8128_v12  ;;  %v2808_v15 = vsel %vm544_vm1, %v2803_v57, %v2807_v36  ;;  %v1805_v57 = vrot.slane %v1803_v23, 1 }
 0x137   : > { %v8122_v6 = vpop.permute.xlu0 %706 }
 0x138   : > { %10850 = vst [vmem:[#allocation34_spill] sm:$0xff] %v8122_v6  ;;  %1220 = vrot.lane.b32.xlu1 %v1199_v59, %s7364_s12  ;;  %1218 = vrot.lane.b32.xlu0 %v1196_v63, %s7364_s12  ;;  %v5992_v59 = vcombine.low %v2645_v31, %v8077_v43  ;;  %v8163_v63 = vld [vmem:[%s7691_s4 + $0x88] sm:$0xf]  ;;  %v8215_v31 = vld [vmem:[%s7699_s8 + $0x14] ss:$0 sps:$4 sm:$0x11]  }
 0x139   : > { %v5842_v43 = vcombine.low %v5754_v55, %v8163_v63  ;;  %v5778_v55 = vld [vmem:[%s7691_s4 + $0x84] sm:$0xe]  ;;  %v3049_v1 = vshll.u32 %v8215_v31, 16 }
 0x13a   : > { %v2921_v11 = vrot.slane %v5992_v59, 1  ;;  %v3046_v59 = vrot.slane %v3044_v40, 1  ;;  %v5937_v40 = vld [vmem:[%s7699_s8 + $0x18] sm:$0xe] }
 0x13b   : > { %v1798_v25 = vshll.u32 %v5842_v43, 16 }
 0x13c   : > { %1224 = vrot.lane.b32.xlu1 %v1205_v3, %s7364_s12  ;;  %1222 = vrot.lane.b32.xlu0 %v1202_v33, %s7364_s12  ;;  %v1678_v3 = vrot.slane %v5835_v17, 1  ;;  %v5993_v33 = vcombine.low %v2646_v2, %v8100_v56  ;;  %v2923_v56 = vsel %vm681_vm0, %v2921_v11, %v2922_v7  ;;  %v1812_v17 = vrot.slane %v1810_v49, 1 }
 0x13d   : > { %v8144_v60 = vpop.permute.xlu0 %641  ;;  %v1800_v45 = vrot.slane %v1798_v25, 1  ;;  %v1815_v2 = vshll.u32 %v8210_v47, 16  ;;  %v3054_v25 = vshrl.u32 %v6001_v51, 16 }
 0x13e   : > { %10852 = vst [vmem:[#allocation36_spill] sm:$0xff] %v8144_v60  ;;  %v8149_v54 = vpop.permute.xlu1 %645  ;;  %v1680_v32 = vsel %vm681_vm0, %v1678_v3, %v1679_v61  ;;  %v2924_v29 = vrot.slane %v5993_v33, 1  ;;  %v3056_v61 = vshll.u32 %v6001_v51, 16  ;;  %v1813_v11 = vor.u32 %v1812_v17, %v1808_v5  ;;  %v5952_v60 = vld [vmem:[%s7699_s8 + $0x48] sm:$0xf] }
 0x13f   : > { %10853 = vst [vmem:[#allocation37_spill] sm:$0xff] %v8149_v54  ;;  %v3047_v33 = vor.u32 %v3046_v59, %v3042_v22  ;;  %v3063_v17 = vrot.slane %v3061_v46, 1  ;;  %v1935_v22 = vrot.slane %v8210_v47, 1  ;;  %v6017_v59 = vcombine.low %v5937_v40, %v8204_v50  ;;  %v8275_v47 = vld [vmem:[%s7699_s8 + $0x1c] sm:$0xf] }
 0x140   : > { %1635 = vrot.lane.b32.xlu1 %v1550_v24, %s7358_s6  ;;  %1226 = vrot.lane.b32.xlu0 %v1208_v30, %s7364_s12  ;;  %v1796_v24 = vshrl.u32 %v5842_v43, 16  ;;  %v2926_v35 = vsel %vm681_vm0, %v2924_v29, %v2925_v41  ;;  %v3051_v29 = vrot.slane %v3049_v1, 1  ;;  %v3058_v41 = vrot.slane %v3056_v61, 1  ;;  %v5944_v1 = vld [vmem:[%s7699_s8 + $0x18] sm:$0xf] }
 0x141   : > { %v8158_v9 = vpop.permute.xlu0 %643 }
 0x142   : > { %10854 = vst [vmem:[#allocation38_spill] sm:$0xff] %v8158_v9  ;;  %v8165_v0 = vpop.permute.xlu1 %647  ;;  %v3059_v5 = vor.u32 %v3058_v41, %v3054_v25  ;;  %v3181_v41 = vrot.slane %v8227_v44, 1 }
 0x143   : > { %10855 = vst [vmem:[#allocation39_spill] sm:$0xff] %v8165_v0 }
 0x144   : > { %1637 = vrot.lane.b32.xlu1 %v1562_v52, %s7358_s6  ;;  %2881 = vrot.lane.b32.xlu0 %v2796_v34, %s7358_s6  ;;  %v1801_v34 = vor.u32 %v1800_v45, %v1796_v24  ;;  %v1932_v45 = vrot.slane %v8193_v42, 1 }
 0x146   : > { %v8184_v13 = vpop.permute.xlu1 %651  ;;  %v8186_v26 = vpop.permute.xlu0 %649 }
 0x147   : > { %10856 = vst [vmem:[#allocation40_spill] sm:$0xff] %v8184_v13  ;;  %10857 = vst [vmem:[#allocation41_spill] sm:$0xff] %v8186_v26  ;;  %v8396_v13 = vld [vmem:[%s7691_s4 + $0xa4] ss:$0 sps:$4 sm:$0x11]  }
 0x148   : > { %2883 = vrot.lane.b32.xlu1 %v2808_v15, %s7358_s6  ;;  %1699 = vrot.lane.b32.xlu0 %v1677_v58, %s7357_s29  ;;  %v5858_v15 = vcombine.low %v5778_v55, %v8163_v63  ;;  %v5779_v58 = vld [vmem:[%s7691_s4 + $0x90] sm:$0xe]  ;;  %v5938_v26 = vld [vmem:[%s7699_s8 + $0x24] sm:$0xe] }
 0x149   : > { %v5786_v55 = vld [vmem:[%s7691_s4 + $0x90] sm:$0xf] }
 0x14a   : > { %v8198_v30 = vpop.permute.xlu1 %655  ;;  %v8200_v37 = vpop.permute.xlu0 %653  ;;  %v1931_v24 = vrot.slane %v5858_v15, 1  ;;  %v3064_v15 = vsel %vm544_vm1, %v3059_v5, %v3063_v17  ;;  %v8303_v5 = vld [vmem:[%s7691_s4 + $0xa4] ss:$0 sps:$4 sm:$0x11]  }
 0x14b   : > { %10858 = vst [vmem:[#allocation42_spill] sm:$0xff] %v8198_v30  ;;  %10859 = vst [vmem:[#allocation43_spill] sm:$0xff] %v8200_v37  ;;  %v8333_v30 = vld [vmem:[%s7699_s8 + $0x1c] sm:$0xf] }
 0x14c   : > { %1701 = vrot.lane.b32.xlu1 %v1680_v32, %s7357_s29  ;;  %2945 = vrot.lane.b32.xlu0 %v2923_v56, %s7357_s29  ;;  %v5936_v32 = vld [vmem:[%s7699_s8 + $0xc] sm:$0xe]  ;;  %v1817_v56 = vrot.slane %v1815_v2, 1 }
 0x14e   : > { %v8217_v52 = vpop.permute.xlu1 %712  ;;  %v8219_v36 = vpop.permute.xlu0 %710  ;;  %v1818_v23 = vsel %vm544_vm1, %v1813_v11, %v1817_v56  ;;  %v8286_v56 = vld [vmem:[%s7699_s8 + $0x28] sm:$0xf] }
 0x14f   : > { %10860 = vst [vmem:[#allocation44_spill] sm:$0xff] %v8217_v52  ;;  %10861 = vst [vmem:[#allocation45_spill] sm:$0xff] %v8219_v36 }
 0x150   : > { %2947 = vrot.lane.b32.xlu1 %v2926_v35, %s7357_s29  ;;  %1755 = vrot.lane.b32.xlu0 %v5842_v43, %s7359_s7  ;;  %v1806_v43 = vsel %vm544_vm1, %v1801_v34, %v1805_v57  ;;  %v3052_v35 = vsel %vm544_vm1, %v3047_v33, %v3051_v29  ;;  %v8262_v57 = vld [vmem:[%s7691_s4 + $0xa0] sm:$0xf]  ;;  %v8278_v33 = vld [vmem:[%s7691_s4 + $0x98] ss:$0 sps:$4 sm:$0x11]  }
 0x152   : > { %v8229_v3 = vpop.permute.xlu1 %716  ;;  %v8231_v7 = vpop.permute.xlu0 %714 }
 0x153   : > { %10862 = vst [vmem:[#allocation46_spill] sm:$0xff] %v8229_v3  ;;  %10863 = vst [vmem:[#allocation47_spill] sm:$0xff] %v8231_v7 }
 0x154   : > { %1757 = vrot.lane.b32.xlu1 %v5843_v27, %s7359_s7  ;;  %3001 = vrot.lane.b32.xlu0 %v6000_v48, %s7359_s7  ;;  %v5859_v27 = vcombine.low %v5779_v58, %v8171_v19  ;;  %v6016_v48 = vcombine.low %v5936_v32, %v8179_v8  ;;  %v8254_v19 = vld [vmem:[%s7691_s4 + $0x94] sm:$0xf]  ;;  %v1933_v58 = vsel %vm681_vm0, %v1931_v24, %v1932_v45  ;;  %v5946_v32 = vld [vmem:[%s7699_s8 + $0x24] sm:$0xf]  ;;  %v2059_v45 = vshll.u32 %v8278_v33, 16 }
 0x155   : > { %v5866_v2 = vcombine.low %v5786_v55, %v8254_v19  ;;  %v8295_v24 = vcombine.low %v5946_v32, %v8286_v56  ;;  %v5726_v32 = vld [vmem:[%s7691_s4 + $0x90] sm:$0xf] }
 0x156   : > { %v8240_v63 = vpop.permute.xlu1 %720  ;;  %v8242_v49 = vpop.permute.xlu0 %718  ;;  %v1934_v42 = vrot.slane %v5859_v27, 1  ;;  %v3177_v61 = vrot.slane %v6016_v48, 1  ;;  %v6024_v27 = vcombine.low %v5944_v1, %v8275_v47 }
 0x157   : > { %10864 = vst [vmem:[#allocation48_spill] sm:$0xff] %v8240_v63  ;;  %10865 = vst [vmem:[#allocation49_spill] sm:$0xff] %v8242_v49  ;;  %v2054_v46 = vshll.u32 %v5866_v2, 16  ;;  %v2052_v55 = vshrl.u32 %v5866_v2, 16 }
 0x158   : > { %3003 = vrot.lane.b32.xlu1 %v6001_v51, %s7359_s7  ;;  %1891 = vrot.lane.b32.xlu0 %v1806_v43, %s7360_s18  ;;  %v5788_v51 = vld [vmem:[%s7691_s4 + $0x9c] sm:$0xf]  ;;  %v3178_v43 = vrot.slane %v8215_v31, 1  ;;  %v1936_v29 = vsel %vm681_vm0, %v1934_v42, %v1935_v22  ;;  %v3180_v31 = vrot.slane %v6017_v59, 1  ;;  %v3300_v17 = vshll.u32 %v6024_v27, 16 }
 0x159   : > { %v5867_v11 = vcombine.low %v5788_v51, %v8262_v57  ;;  %v2056_v51 = vrot.slane %v2054_v46, 1  ;;  %v8309_v42 = vld [vmem:[%s7699_s8 + $0x20] ss:$0 sps:$4 sm:$0x11]   ;;  %v5810_v22 = vld [vmem:[%s7691_s4 + $0x90] sm:$0xe] }
 0x15a   : > { %v8256_v34 = vpop.permute.xlu1 %764  ;;  %v8258_v8 = vpop.permute.xlu0 %762  ;;  %v3179_v48 = vsel %vm681_vm0, %v3177_v61, %v3178_v43  ;;  %v3182_v44 = vsel %vm681_vm0, %v3180_v31, %v3181_v41  ;;  %v3312_v59 = vshll.u32 %v8295_v24, 16  ;;  %v2061_v61 = vrot.slane %v2059_v45, 1  ;;  %v8323_v46 = vld [vmem:[%s7699_s8 + $0x2c] ss:$0 sps:$4 sm:$0x11]  }
 0x15b   : > { %10866 = vst [vmem:[#allocation50_spill] sm:$0xff] %v8256_v34  ;;  %10867 = vst [vmem:[#allocation51_spill] sm:$0xff] %v8258_v8  ;;  %v2066_v40 = vshll.u32 %v5867_v11, 16  ;;  %v2064_v1 = vshrl.u32 %v5867_v11, 16  ;;  %v2071_v31 = vshll.u32 %v8303_v5, 16  ;;  %v3298_v41 = vshrl.u32 %v6024_v27, 16 }
 0x15c   : > { %1893 = vrot.lane.b32.xlu1 %v1818_v23, %s7360_s18  ;;  %3137 = vrot.lane.b32.xlu0 %v3052_v35, %s7360_s18  ;;  %v3302_v45 = vrot.slane %v3300_v17, 1  ;;  %v2057_v63 = vor.u32 %v2056_v51, %v2052_v55  ;;  %v3310_v55 = vshrl.u32 %v8295_v24, 16  ;;  %v3317_v51 = vshll.u32 %v8323_v46, 16  ;;  %v8795_v8 = vld [vmem:[%s7699_s8 + $0x50] ss:$0 sps:$4 sm:$0x11]  }
 0x15d   : > { %v2073_v17 = vrot.slane %v2071_v31, 1  ;;  %v3314_v3 = vrot.slane %v3312_v59, 1 }
 0x15e   : > { %v8280_v50 = vpop.permute.xlu1 %768  ;;  %v8282_v25 = vpop.permute.xlu0 %766 }
 0x15f   : > { %10868 = vst [vmem:[#allocation52_spill] sm:$0xff] %v8280_v50  ;;  %10869 = vst [vmem:[#allocation53_spill] sm:$0xff] %v8282_v25  ;;  %v3315_v39 = vor.u32 %v3314_v3, %v3310_v55  ;;  %v2627_v3 = vld [vmem:[%s7699_s8 + $0x24] sm:$0xf]  ;;  %v5780_v50 = vld [vmem:[%s7691_s4 + $0x9c] sm:$0xe] }
 0x160   : > { %3139 = vrot.lane.b32.xlu1 %v3064_v15, %s7360_s18  ;;  %1955 = vrot.lane.b32.xlu0 %v1933_v58, %s7361_s13  ;;  %v2068_v15 = vrot.slane %v2066_v40, 1  ;;  %v3305_v40 = vshll.u32 %v8309_v42, 16 }
 0x162   : > { %v8298_v23 = vpop.permute.xlu1 %772  ;;  %v8300_v35 = vpop.permute.xlu0 %770  ;;  %v3307_v49 = vrot.slane %v3305_v40, 1 }
 0x163   : > { %10870 = vst [vmem:[#allocation54_spill] sm:$0xff] %v8298_v23  ;;  %10871 = vst [vmem:[#allocation55_spill] sm:$0xff] %v8300_v35 }
 0x164   : > { %1957 = vrot.lane.b32.xlu1 %v1936_v29, %s7361_s13  ;;  %3201 = vrot.lane.b32.xlu0 %v3179_v48, %s7361_s13  ;;  %v8319_v29 = vld [vmem:[%s7691_s4 + $0x94] sm:$0xf] }
 0x165   : > { %v6931_v48 = vld [vmem:[#allocation8 + $0x14] sm:$0xff]  }
 0x166   : > { %v8313_v58 = vpop.permute.xlu1 %776  ;;  %v8315_v43 = vpop.permute.xlu0 %774  ;;  %6410 = vmatprep.subr.bf16.mxu0 %v6931_v48  ;;  %6476 = vmatprep.subr.bf16.mxu1 %v6931_v48 }
 0x167   : > { %10872 = vst [vmem:[#allocation56_spill] sm:$0xff] %v8313_v58  ;;  %10873 = vst [vmem:[#allocation57_spill] sm:$0xff] %v8315_v43  ;;  %v8329_v58 = vcombine.low %v5726_v32, %v8319_v29  ;;  %v5882_v43 = vcombine.low %v5810_v22, %v8254_v19  ;;  %6411 = vmatpush3.bf16.msra.mxu0 %v6931_v48  ;;  %6477 = vmatpush3.bf16.msra.mxu1 %v6931_v48  ;;  %v6934_v32 = vld [vmem:[#allocation8 + $0x1c] sm:$0xff]   ;;  %v5968_v19 = vld [vmem:[%s7699_s8 + $0x18] sm:$0xe] }
 0x168   : > { %3203 = vrot.lane.b32.xlu1 %v3182_v44, %s7361_s13  ;;  %2011 = vrot.lane.b32.xlu0 %v5866_v2, %s7362_s16  ;;  %v2069_v2 = vor.u32 %v2068_v15, %v2064_v1  ;;  %v3303_v22 = vor.u32 %v3302_v45, %v3298_v41  ;;  %v8346_v48 = vcombine.low %v2625_v10, %v8333_v30  ;;  %v8350_v15 = vld [vmem:[%s7691_s4 + $0x98] ss:$0 sps:$4 sm:$0x11]   ;;  %v8360_v41 = vld [vmem:[%s7691_s4 + $0xa0] sm:$0xf] }
 0x169   : > { %v2062_v1 = vsel %vm544_vm1, %v2057_v63, %v2061_v61  ;;  %v1566_v31 = vshll.u32 %v8329_v58, 16  ;;  %6412 = vmatprep.subr.bf16.mxu0 %v6934_v32  ;;  %6478 = vmatprep.subr.bf16.mxu1 %v6934_v32  ;;  %v6040_v10 = vcombine.low %v5968_v19, %v8275_v47  ;;  %v3319_v63 = vrot.slane %v3317_v51, 1 }
 0x16a   : > { %v8336_v23 = vpop.permute.xlu1 %900  ;;  %v8338_v44 = vpop.permute.xlu0 %898  ;;  %10876 = vst [vmem:[#allocation60_spill] sm:$0xff] %v8346_v48  ;;  %v2187_v59 = vrot.slane %v5882_v43, 1  ;;  %v2188_v61 = vrot.slane %v8278_v33, 1  ;;  %v2074_v45 = vsel %vm544_vm1, %v2069_v2, %v2073_v17  ;;  %v3308_v40 = vsel %vm544_vm1, %v3303_v22, %v3307_v49  ;;  %v8386_v17 = vld [vmem:[%s7699_s8 + $0x28] sm:$0xf] }
 0x16b   : > { %10874 = vst [vmem:[#allocation58_spill] sm:$0xff] %v8336_v23  ;;  %10875 = vst [vmem:[#allocation59_spill] sm:$0xff] %v8338_v44  ;;  %6413 = vmatpush3.bf16.msra.mxu0 %v6934_v32  ;;  %6479 = vmatpush3.bf16.msra.mxu1 %v6934_v32  ;;  %v8370_v32 = vld [vmem:[%s7699_s8 + $0x20] ss:$0 sps:$4 sm:$0x11]   ;;  %v2812_v47 = vshll.u32 %v8346_v48, 16 }
 0x16c   : > { %2013 = vrot.lane.b32.xlu1 %v5867_v11, %s7362_s16  ;;  %3257 = vrot.lane.b32.xlu0 %v6024_v27, %s7362_s16  ;;  %v5728_v27 = vld [vmem:[%s7691_s4 + $0x9c] sm:$0xf]  ;;  %v1564_v43 = vshrl.u32 %v8329_v58, 16  ;;  %v1568_v51 = vrot.slane %v1566_v31, 1  ;;  %v1571_v33 = vshll.u32 %v8350_v15, 16  ;;  %v2189_v55 = vsel %vm681_vm0, %v2187_v59, %v2188_v61 }
 0x16d   : > { %v8376_v19 = vcombine.low %v5728_v27, %v8360_v41  ;;  %v3433_v22 = vrot.slane %v6040_v10, 1  ;;  %v3434_v31 = vrot.slane %v8309_v42, 1  ;;  %v3320_v27 = vsel %vm544_vm1, %v3315_v39, %v3319_v63 }
 0x16e   : > { %v8354_v11 = vpop.permute.xlu1 %904  ;;  %v8356_v37 = vpop.permute.xlu0 %902  ;;  %v8400_v42 = vcombine.low %v2627_v3, %v8386_v17  ;;  %v8413_v3 = vld [vmem:[%s7699_s8 + $0x2c] ss:$0 sps:$4 sm:$0x11]  }
 0x16f   : > { %10877 = vst [vmem:[#allocation61_spill] sm:$0xff] %v8354_v11  ;;  %10878 = vst [vmem:[#allocation62_spill] sm:$0xff] %v8356_v37  ;;  %v1573_v11 = vrot.slane %v1571_v33, 1  ;;  %v1578_v10 = vshll.u32 %v8376_v19, 16  ;;  %v1583_v33 = vshll.u32 %v8396_v13, 16 }
 0x170   : > { %3259 = vrot.lane.b32.xlu1 %v8295_v24, %s7362_s16  ;;  %2147 = vrot.lane.b32.xlu0 %v2062_v1, %s7363_s17  ;;  %10879 = vst [vmem:[#allocation63_spill] sm:$0xff] %v8376_v19  ;;  %v5883_v24 = vcombine.low %v5811_v16, %v8262_v57  ;;  %v5969_v1 = vld [vmem:[%s7699_s8 + $0x24] sm:$0xe]  ;;  %v2810_v16 = vshrl.u32 %v8346_v48, 16  ;;  %v2814_v57 = vrot.slane %v2812_v47, 1  ;;  %10882 = vst [vmem:[#allocation66_spill] sm:$0xff] %v8400_v42 }
 0x171   : > { %v6041_v63 = vcombine.low %v5969_v1, %v8286_v56  ;;  %v1580_v56 = vrot.slane %v1578_v10, 1  ;;  %v5748_v1 = vld [vmem:[%s7691_s4 + $0x90] sm:$0xe]  ;;  %v2822_v10 = vshrl.u32 %v8400_v42, 16 }
 0x172   : > { %v8380_v2 = vpop.permute.xlu1 %908  ;;  %v8382_v49 = vpop.permute.xlu0 %906  ;;  %v2190_v39 = vrot.slane %v5883_v24, 1  ;;  %v2815_v47 = vor.u32 %v2814_v57, %v2810_v16  ;;  %v3435_v24 = vsel %vm681_vm0, %v3433_v22, %v3434_v31  ;;  %v3437_v22 = vrot.slane %v8323_v46, 1  ;;  %v8915_v48 = vld [vmem:[%s7691_s4 + $0xc8] ss:$0 sps:$4 sm:$0x11]  }
 0x173   : > { %10880 = vst [vmem:[#allocation64_spill] sm:$0xff] %v8380_v2  ;;  %10881 = vst [vmem:[#allocation65_spill] sm:$0xff] %v8382_v49  ;;  %v2817_v2 = vshll.u32 %v8370_v32, 16  ;;  %v1569_v49 = vor.u32 %v1568_v51, %v1564_v43  ;;  %v1576_v51 = vshrl.u32 %v8376_v19, 16  ;;  %v5836_v31 = vcombine.low %v5748_v1, %v8319_v29  ;;  %v2648_v1 = vld [vmem:[%s7699_s8 + $0x24] sm:$0xe] }
 0x174   : > { %2149 = vrot.lane.b32.xlu1 %v2074_v45, %s7363_s17  ;;  %3393 = vrot.lane.b32.xlu0 %v3308_v40, %s7363_s17  ;;  %v2191_v45 = vrot.slane %v8303_v5, 1  ;;  %v6937_v40 = vld [vmem:[#allocation8 + $0x24] ss:$0 sps:$4 sm:$0x33]   ;;  %v2824_v5 = vshll.u32 %v8400_v42, 16 }
 0x175   : > { %v2819_v43 = vrot.slane %v2817_v2, 1  ;;  %6606 = vmatprep.subr.msk.bf16.mxu0 %vm2387_vm2, %v6937_v40  ;;  %v2389_v16 = vsel %vm2387_vm2, %v6937_v40, 0  ;;  %6609 = vmatprep.subr.msk.bf16.mxu1 %vm2387_vm2, %v6937_v40  ;;  %v1581_v57 = vor.u32 %v1580_v56, %v1576_v51  ;;  %v1681_v46 = vrot.slane %v5836_v31, 1  ;;  %v8463_v31 = vld [vmem:[%s7691_s4 + $0xac] sm:$0xf] }
 0x176   : > { %v8402_v59 = vpop.permute.xlu1 %912  ;;  %v8404_v61 = vpop.permute.xlu0 %910  ;;  %v2192_v2 = vsel %vm681_vm0, %v2190_v39, %v2191_v45  ;;  %v2826_v39 = vrot.slane %v2824_v5, 1  ;;  %v5749_v45 = vld [vmem:[%s7691_s4 + $0x9c] sm:$0xe]  ;;  %6415 = vmatpush3.bf16.msra.mxu0 %v2389_v16  ;;  %6481 = vmatpush3.bf16.msra.mxu1 %v2389_v16 }
 0x177   : > { %10883 = vst [vmem:[#allocation67_spill] sm:$0xff] %v8402_v59  ;;  %10884 = vst [vmem:[#allocation68_spill] sm:$0xff] %v8404_v61  ;;  %v1574_v59 = vsel %vm544_vm1, %v1569_v49, %v1573_v11  ;;  %v2820_v11 = vsel %vm544_vm1, %v2815_v47, %v2819_v43  ;;  %v1585_v49 = vrot.slane %v1583_v33, 1  ;;  %v2647_v47 = vld [vmem:[%s7699_s8 + $0x18] sm:$0xe]  ;;  %v1682_v43 = vrot.slane %v8350_v15, 1 }
 0x178   : > { %3395 = vrot.lane.b32.xlu1 %v3320_v27, %s7363_s17  ;;  %2211 = vrot.lane.b32.xlu0 %v2189_v55, %s7364_s12  ;;  %v3436_v55 = vrot.slane %v6041_v63, 1  ;;  %v2829_v63 = vshll.u32 %v8413_v3, 16  ;;  %v5837_v51 = vcombine.low %v5749_v45, %v8360_v41  ;;  %v5994_v5 = vcombine.low %v2647_v47, %v8333_v30 }
 0x179   : > { %v1586_v33 = vsel %vm544_vm1, %v1581_v57, %v1585_v49  ;;  %v1685_v15 = vrot.slane %v8396_v13, 1  ;;  %v1683_v41 = vsel %vm681_vm0, %v1681_v46, %v1682_v43  ;;  %v2928_v49 = vrot.slane %v8370_v32, 1  ;;  %v8477_v32 = vld [vmem:[%s7691_s4 + $0xa4] ss:$0 sps:$4 sm:$0x11]  }
 0x17a   : > { %v8419_v61 = vpop.permute.xlu1 %964  ;;  %v8421_v27 = vpop.permute.xlu0 %962  ;;  %v3438_v29 = vsel %vm681_vm0, %v3436_v55, %v3437_v22  ;;  %v2831_v56 = vrot.slane %v2829_v63, 1  ;;  %v5758_v55 = vld [vmem:[%s7691_s4 + $0x9c] sm:$0xf]  ;;  %v1684_v30 = vrot.slane %v5837_v51, 1  ;;  %v5760_v22 = vld [vmem:[%s7691_s4 + $0xa8] sm:$0xf] }
 0x17b   : > { %10885 = vst [vmem:[#allocation69_spill] sm:$0xff] %v8419_v61  ;;  %10886 = vst [vmem:[#allocation70_spill] sm:$0xff] %v8421_v27  ;;  %v5916_v63 = vld [vmem:[%s7699_s8 + $0x24] sm:$0xf]  ;;  %v5845_v46 = vcombine.low %v5760_v22, %v8463_v31  ;;  %v2931_v43 = vrot.slane %v8413_v3, 1 }
 0x17c   : > { %1639 = vrot.lane.b32.xlu1 %v1574_v59, %s7358_s6  ;;  %3457 = vrot.lane.b32.xlu0 %v3435_v24, %s7364_s12  ;;  %v2827_v24 = vor.u32 %v2826_v39, %v2822_v10  ;;  %v2927_v10 = vrot.slane %v5994_v5, 1  ;;  %v5995_v39 = vcombine.low %v2648_v1, %v8386_v17  ;;  %v1686_v17 = vsel %vm681_vm0, %v1684_v30, %v1685_v15  ;;  %v8488_v5 = vld [vmem:[%s7699_s8 + $0x34] sm:$0xf]  ;;  %v8499_v30 = vld [vmem:[%s7699_s8 + $0x2c] ss:$0 sps:$4 sm:$0x11]  }
 0x17d   : > { %v1834_v15 = vshll.u32 %v5845_v46, 16 }
 0x17e   : > { %v8435_v59 = vpop.permute.xlu1 %968  ;;  %v8437_v40 = vpop.permute.xlu0 %966  ;;  %v2832_v57 = vsel %vm544_vm1, %v2827_v24, %v2831_v56  ;;  %v2929_v51 = vsel %vm681_vm0, %v2927_v10, %v2928_v49  ;;  %v5918_v56 = vld [vmem:[%s7699_s8 + $0x30] sm:$0xf] }
 0x17f   : > { %10887 = vst [vmem:[#allocation71_spill] sm:$0xff] %v8435_v59  ;;  %10888 = vst [vmem:[#allocation72_spill] sm:$0xff] %v8437_v40  ;;  %v6003_v3 = vcombine.low %v5918_v56, %v8488_v5  ;;  %v1836_v59 = vrot.slane %v1834_v15, 1 }
 0x180   : > { %2885 = vrot.lane.b32.xlu1 %v2820_v11, %s7358_s6  ;;  %2213 = vrot.lane.b32.xlu0 %v2192_v2, %s7364_s12  ;;  %v8454_v11 = vld [vmem:[%s7691_s4 + $0xa0] sm:$0xf] }
 0x181   : > { %v5844_v13 = vcombine.low %v5758_v55, %v8454_v11  ;;  %v3078_v7 = vshrl.u32 %v6003_v3, 16 }
 0x182   : > { %v8448_v16 = vpop.permute.xlu1 %972  ;;  %v8450_v2 = vpop.permute.xlu0 %970 }
 0x183   : > { %10889 = vst [vmem:[#allocation73_spill] sm:$0xff] %v8448_v16  ;;  %10890 = vst [vmem:[#allocation74_spill] sm:$0xff] %v8450_v2  ;;  %v1822_v1 = vshll.u32 %v5844_v13, 16  ;;  %v1820_v10 = vshrl.u32 %v5844_v13, 16  ;;  %v1832_v2 = vshrl.u32 %v5845_v46, 16 }
 0x184   : > { %1641 = vrot.lane.b32.xlu1 %v1586_v33, %s7358_s6  ;;  %3459 = vrot.lane.b32.xlu0 %v3438_v29, %s7364_s12  ;;  %v8474_v29 = vld [vmem:[%s7699_s8 + $0x28] sm:$0xf]  ;;  %v2930_v33 = vrot.slane %v5995_v39, 1 }
 0x185   : > { %v6002_v24 = vcombine.low %v5916_v63, %v8474_v29  ;;  %v1824_v39 = vrot.slane %v1822_v1, 1 }
 0x186   : > { %v8469_v45 = vpop.permute.xlu1 %976  ;;  %v8471_v47 = vpop.permute.xlu0 %974  ;;  %v2932_v49 = vsel %vm681_vm0, %v2930_v33, %v2931_v43  ;;  %v8514_v43 = vld [vmem:[%s7699_s8 + $0x38] ss:$0 sps:$4 sm:$0x11]   ;;  %v3080_v33 = vshll.u32 %v6003_v3, 16 }
 0x187   : > { %10891 = vst [vmem:[#allocation75_spill] sm:$0xff] %v8469_v45  ;;  %10892 = vst [vmem:[#allocation76_spill] sm:$0xff] %v8471_v47  ;;  %v3068_v63 = vshll.u32 %v6002_v24, 16  ;;  %v1825_v56 = vor.u32 %v1824_v39, %v1820_v10  ;;  %v3066_v1 = vshrl.u32 %v6002_v24, 16 }
 0x188   : > { %2887 = vrot.lane.b32.xlu1 %v2832_v57, %s7358_s6  ;;  %1703 = vrot.lane.b32.xlu0 %v1683_v41, %s7357_s29  ;;  %v1827_v57 = vshll.u32 %v8477_v32, 16  ;;  %v8496_v41 = vld [vmem:[%s7691_s4 + $0xb0] ss:$0 sps:$4 sm:$0x11]   ;;  %v3082_v39 = vrot.slane %v3080_v33, 1 }
 0x18a   : > { %v8490_v55 = vpop.permute.xlu1 %1020  ;;  %v8492_v22 = vpop.permute.xlu0 %1018  ;;  %v1829_v16 = vrot.slane %v1827_v57, 1 }
 0x18b   : > { %10893 = vst [vmem:[#allocation77_spill] sm:$0xff] %v8490_v55  ;;  %10894 = vst [vmem:[#allocation78_spill] sm:$0xff] %v8492_v22 }
 0x18c   : > { %1705 = vrot.lane.b32.xlu1 %v1686_v17, %s7357_s29  ;;  %2949 = vrot.lane.b32.xlu0 %v2929_v51, %s7357_s29  ;;  %v1839_v17 = vshll.u32 %v8496_v41, 16  ;;  %v3073_v51 = vshll.u32 %v8499_v30, 16 }
 0x18e   : > { %v8505_v45 = vpop.permute.xlu1 %1024  ;;  %v8507_v47 = vpop.permute.xlu0 %1022  ;;  %v1841_v15 = vrot.slane %v1839_v17, 1  ;;  %v3075_v10 = vrot.slane %v3073_v51, 1  ;;  %v5860_v17 = vcombine.low %v5780_v50, %v8454_v11  ;;  %v1938_v50 = vrot.slane %v8477_v32, 1 }
 0x18f   : > { %10895 = vst [vmem:[#allocation79_spill] sm:$0xff] %v8505_v45  ;;  %10896 = vst [vmem:[#allocation80_spill] sm:$0xff] %v8507_v47  ;;  %v3070_v45 = vrot.slane %v3068_v63, 1  ;;  %v3085_v63 = vshll.u32 %v8514_v43, 16  ;;  %v5790_v47 = vld [vmem:[%s7691_s4 + $0xa8] sm:$0xf] }
 0x190   : > { %2951 = vrot.lane.b32.xlu1 %v2932_v49, %s7357_s29  ;;  %1759 = vrot.lane.b32.xlu0 %v5844_v13, %s7359_s7  ;;  %v5781_v49 = vld [vmem:[%s7691_s4 + $0xa8] sm:$0xe]  ;;  %v1837_v13 = vor.u32 %v1836_v59, %v1832_v2  ;;  %v8535_v59 = vld [vmem:[%s7691_s4 + $0xac] sm:$0xf]  ;;  %v3083_v2 = vor.u32 %v3082_v39, %v3078_v7 }
 0x191   : > { %v5861_v11 = vcombine.low %v5781_v49, %v8463_v31  ;;  %v3087_v33 = vrot.slane %v3085_v63, 1  ;;  %v5948_v7 = vld [vmem:[%s7699_s8 + $0x30] sm:$0xf]  ;;  %v5868_v31 = vcombine.low %v5790_v47, %v8535_v59  ;;  %v3184_v47 = vrot.slane %v8499_v30, 1 }
 0x192   : > { %v8516_v35 = vpop.permute.xlu1 %1028  ;;  %v8518_v57 = vpop.permute.xlu0 %1026  ;;  %v8569_v39 = vld [vmem:[%s7691_s4 + $0xbc] ss:$0 sps:$4 sm:$0x11]  }
 0x193   : > { %10897 = vst [vmem:[#allocation81_spill] sm:$0xff] %v8516_v35  ;;  %10898 = vst [vmem:[#allocation82_spill] sm:$0xff] %v8518_v57  ;;  %v1830_v35 = vsel %vm544_vm1, %v1825_v56, %v1829_v16  ;;  %v3071_v57 = vor.u32 %v3070_v45, %v3066_v1  ;;  %v1842_v16 = vsel %vm544_vm1, %v1837_v13, %v1841_v15  ;;  %v5792_v45 = vld [vmem:[%s7691_s4 + $0xb4] sm:$0xf]  ;;  %v1937_v56 = vrot.slane %v5860_v17, 1 }
 0x194   : > { %1761 = vrot.lane.b32.xlu1 %v5845_v46, %s7359_s7  ;;  %3005 = vrot.lane.b32.xlu0 %v6002_v24, %s7359_s7  ;;  %v5939_v46 = vld [vmem:[%s7699_s8 + $0x30] sm:$0xe]  ;;  %v8544_v24 = vld [vmem:[%s7691_s4 + $0xb8] sm:$0xf]  ;;  %v6018_v1 = vcombine.low %v5938_v26, %v8474_v29  ;;  %v1940_v26 = vrot.slane %v5861_v11, 1  ;;  %v1941_v29 = vrot.slane %v8496_v41, 1  ;;  %v3088_v13 = vsel %vm544_vm1, %v3083_v2, %v3087_v33 }
 0x195   : > { %v3076_v51 = vsel %vm544_vm1, %v3071_v57, %v3075_v10  ;;  %v8554_v15 = vld [vmem:[%s7699_s8 + $0x34] sm:$0xf]  ;;  %v6019_v32 = vcombine.low %v5939_v46, %v8488_v5  ;;  %v5869_v49 = vcombine.low %v5792_v45, %v8544_v24  ;;  %v8560_v57 = vld [vmem:[%s7691_s4 + $0xb0] ss:$0 sps:$4 sm:$0x11]   ;;  %v1939_v10 = vsel %vm681_vm0, %v1937_v56, %v1938_v50 }
 0x196   : > { %v8527_v52 = vpop.permute.xlu1 %1032  ;;  %v8529_v62 = vpop.permute.xlu0 %1030  ;;  %v3183_v5 = vrot.slane %v6018_v1, 1  ;;  %v6026_v46 = vcombine.low %v5948_v7, %v8554_v15  ;;  %v3187_v11 = vrot.slane %v8514_v43, 1  ;;  %v5950_v41 = vld [vmem:[%s7699_s8 + $0x3c] sm:$0xf]  ;;  %v8579_v45 = vld [vmem:[%s7699_s8 + $0x40] sm:$0xf]  ;;  %v1942_v56 = vsel %vm681_vm0, %v1940_v26, %v1941_v29 }
 0x197   : > { %10899 = vst [vmem:[#allocation83_spill] sm:$0xff] %v8527_v52  ;;  %10900 = vst [vmem:[#allocation84_spill] sm:$0xff] %v8529_v62  ;;  %v2078_v2 = vshll.u32 %v5868_v31, 16  ;;  %v2090_v50 = vshll.u32 %v5869_v49, 16  ;;  %v2076_v30 = vshrl.u32 %v5868_v31, 16  ;;  %v2095_v62 = vshll.u32 %v8569_v39, 16 }
 0x198   : > { %3007 = vrot.lane.b32.xlu1 %v6003_v3, %s7359_s7  ;;  %1895 = vrot.lane.b32.xlu0 %v1830_v35, %s7360_s18  ;;  %v8585_v33 = vld [vmem:[%s7699_s8 + $0x38] ss:$0 sps:$4 sm:$0x11]   ;;  %v3185_v1 = vsel %vm681_vm0, %v3183_v5, %v3184_v47  ;;  %v6027_v26 = vcombine.low %v5950_v41, %v8579_v45 }
 0x199   : > { %v2092_v52 = vrot.slane %v2090_v50, 1  ;;  %v8604_v50 = vld [vmem:[%s7699_s8 + $0x44] ss:$0 sps:$4 sm:$0x11]   ;;  %v2097_v28 = vrot.slane %v2095_v62, 1 }
 0x19a   : > { %v8548_v3 = vpop.permute.xlu1 %1156  ;;  %v8550_v35 = vpop.permute.xlu0 %1154  ;;  %v3336_v41 = vshll.u32 %v6027_v26, 16 }
 0x19b   : > { %10901 = vst [vmem:[#allocation85_spill] sm:$0xff] %v8548_v3  ;;  %10902 = vst [vmem:[#allocation86_spill] sm:$0xff] %v8550_v35 }
 0x19c   : > { %1897 = vrot.lane.b32.xlu1 %v1842_v16, %s7360_s18  ;;  %3141 = vrot.lane.b32.xlu0 %v3076_v51, %s7360_s18  ;;  %v3186_v16 = vrot.slane %v6019_v32, 1  ;;  %v2083_v51 = vshll.u32 %v8560_v57, 16  ;;  %v2088_v32 = vshrl.u32 %v5869_v49, 16 }
 0x19e   : > { %v8571_v63 = vpop.permute.xlu1 %1160  ;;  %v8573_v17 = vpop.permute.xlu0 %1158  ;;  %v3188_v29 = vsel %vm681_vm0, %v3186_v16, %v3187_v11  ;;  %v2085_v11 = vrot.slane %v2083_v51, 1  ;;  %v2093_v0 = vor.u32 %v2092_v52, %v2088_v32  ;;  %v3338_v51 = vrot.slane %v3336_v41, 1  ;;  %v8633_v52 = vld [vmem:[%s7691_s4 + $0xb0] ss:$0 sps:$4 sm:$0x11]  }
 0x19f   : > { %10903 = vst [vmem:[#allocation87_spill] sm:$0xff] %v8571_v63  ;;  %10904 = vst [vmem:[#allocation88_spill] sm:$0xff] %v8573_v17  ;;  %v3322_v63 = vshrl.u32 %v6026_v46, 16  ;;  %v5730_v17 = vld [vmem:[%s7691_s4 + $0xa8] sm:$0xf]  ;;  %v2194_v41 = vrot.slane %v8560_v57, 1 }
 0x1a0   : > { %3143 = vrot.lane.b32.xlu1 %v3088_v13, %s7360_s18  ;;  %1959 = vrot.lane.b32.xlu0 %v1939_v10, %s7361_s13  ;;  %v3324_v13 = vshll.u32 %v6026_v46, 16  ;;  %v2080_v10 = vrot.slane %v2078_v2, 1  ;;  %v3329_v2 = vshll.u32 %v8585_v33, 16  ;;  %v2098_v32 = vsel %vm544_vm1, %v2093_v0, %v2097_v28  ;;  %v5813_v0 = vld [vmem:[%s7691_s4 + $0xb4] sm:$0xe] }
 0x1a1   : > { %v1595_v57 = vshll.u32 %v8633_v52, 16 }
 0x1a2   : > { %v8589_v7 = vpop.permute.xlu1 %1164  ;;  %v8591_v43 = vpop.permute.xlu0 %1162  ;;  %v2081_v16 = vor.u32 %v2080_v10, %v2076_v30  ;;  %v3341_v10 = vshll.u32 %v8604_v50, 16 }
 0x1a3   : > { %10905 = vst [vmem:[#allocation89_spill] sm:$0xff] %v8589_v7  ;;  %10906 = vst [vmem:[#allocation90_spill] sm:$0xff] %v8591_v43  ;;  %v3326_v7 = vrot.slane %v3324_v13, 1  ;;  %v5812_v43 = vld [vmem:[%s7691_s4 + $0xa8] sm:$0xe] }
 0x1a4   : > { %1961 = vrot.lane.b32.xlu1 %v1942_v56, %s7361_s13  ;;  %3205 = vrot.lane.b32.xlu0 %v3185_v1, %s7361_s13  ;;  %v8609_v56 = vld [vmem:[%s7691_s4 + $0xac] sm:$0xf]  ;;  %v8618_v13 = vld [vmem:[%s7699_s8 + $0x34] sm:$0xf]  ;;  %v5884_v30 = vcombine.low %v5812_v43, %v8535_v59  ;;  %v2086_v62 = vsel %vm544_vm1, %v2081_v16, %v2085_v11 }
 0x1a5   : > { %v8614_v1 = vcombine.low %v5730_v17, %v8609_v56  ;;  %v3334_v17 = vshrl.u32 %v6027_v26, 16  ;;  %v8643_v43 = vld [vmem:[%s7691_s4 + $0xb8] sm:$0xf] }
 0x1a6   : > { %v8598_v5 = vpop.permute.xlu1 %1168  ;;  %v8600_v47 = vpop.permute.xlu0 %1166  ;;  %v8649_v16 = vld [vmem:[%s7699_s8 + $0x38] ss:$0 sps:$4 sm:$0x11]  }
 0x1a7   : > { %10907 = vst [vmem:[#allocation91_spill] sm:$0xff] %v8598_v5  ;;  %10908 = vst [vmem:[#allocation92_spill] sm:$0xff] %v8600_v47  ;;  %v2629_v5 = vld [vmem:[%s7699_s8 + $0x30] sm:$0xf]  ;;  %v3339_v11 = vor.u32 %v3338_v51, %v3334_v17  ;;  %v2631_v17 = vld [vmem:[%s7699_s8 + $0x3c] sm:$0xf] }
 0x1a8   : > { %3207 = vrot.lane.b32.xlu1 %v3188_v29, %s7361_s13  ;;  %2015 = vrot.lane.b32.xlu0 %v5868_v31, %s7362_s16  ;;  %10909 = vst [vmem:[#allocation93_spill] sm:$0xff] %v8614_v1  ;;  %v3327_v29 = vor.u32 %v3326_v7, %v3322_v63  ;;  %v3331_v31 = vrot.slane %v3329_v2, 1  ;;  %v1590_v63 = vshll.u32 %v8614_v1, 16  ;;  %v5970_v7 = vld [vmem:[%s7699_s8 + $0x30] sm:$0xe]  ;;  %v2193_v2 = vrot.slane %v5884_v30, 1 }
 0x1a9   : > { %v8667_v51 = vld [vmem:[%s7699_s8 + $0x40] sm:$0xf] }
 0x1aa   : > { %v8620_v47 = vpop.permute.xlu1 %1220  ;;  %v8622_v3 = vpop.permute.xlu0 %1218 }
 0x1ab   : > { %10910 = vst [vmem:[#allocation94_spill] sm:$0xff] %v8620_v47  ;;  %10911 = vst [vmem:[#allocation95_spill] sm:$0xff] %v8622_v3  ;;  %v8629_v47 = vcombine.low %v2629_v5, %v8618_v13  ;;  %v3332_v5 = vsel %vm544_vm1, %v3327_v29, %v3331_v31  ;;  %v1588_v29 = vshrl.u32 %v8614_v1, 16  ;;  %v1592_v31 = vrot.slane %v1590_v63, 1  ;;  %v8902_v1 = vld [vmem:[%s7691_s4 + $0xc4] sm:$0xf] }
 0x1ac   : > { %2017 = vrot.lane.b32.xlu1 %v5869_v49, %s7362_s16  ;;  %3261 = vrot.lane.b32.xlu0 %v6026_v46, %s7362_s16  ;;  %v5732_v46 = vld [vmem:[%s7691_s4 + $0xb4] sm:$0xf]  ;;  %v5885_v63 = vcombine.low %v5813_v0, %v8544_v24  ;;  %v8683_v24 = vcombine.low %v2631_v17, %v8667_v51 }
 0x1ad   : > { %10912 = vst [vmem:[#allocation96_spill] sm:$0xff] %v8629_v47  ;;  %v2836_v28 = vshll.u32 %v8629_v47, 16  ;;  %v8659_v30 = vcombine.low %v5732_v46, %v8643_v43  ;;  %v2834_v40 = vshrl.u32 %v8629_v47, 16  ;;  %v1593_v37 = vor.u32 %v1592_v31, %v1588_v29  ;;  %v8885_v47 = vld [vmem:[%s7699_s8 + $0x5c] ss:$0 sps:$4 sm:$0x11]  }
 0x1ae   : > { %v8637_v59 = vpop.permute.xlu1 %1224  ;;  %v8639_v49 = vpop.permute.xlu0 %1222  ;;  %10917 = vst [vmem:[#allocation101_spill] sm:$0xff] %v8683_v24 }
 0x1af   : > { %10913 = vst [vmem:[#allocation97_spill] sm:$0xff] %v8637_v59  ;;  %10914 = vst [vmem:[#allocation98_spill] sm:$0xff] %v8639_v49  ;;  %v3343_v59 = vrot.slane %v3341_v10, 1  ;;  %v6042_v49 = vcombine.low %v5970_v7, %v8554_v15  ;;  %v2195_v15 = vsel %vm681_vm0, %v2193_v2, %v2194_v41  ;;  %v3440_v10 = vrot.slane %v8585_v33, 1  ;;  %v5971_v41 = vld [vmem:[%s7699_s8 + $0x3c] sm:$0xe] }
 0x1b0   : > { %3263 = vrot.lane.b32.xlu1 %v6027_v26, %s7362_s16  ;;  %2151 = vrot.lane.b32.xlu0 %v2086_v62, %s7363_s17  ;;  %10915 = vst [vmem:[#allocation99_spill] sm:$0xff] %v8659_v30  ;;  %v2841_v62 = vshll.u32 %v8649_v16, 16  ;;  %v8674_v7 = vld [vmem:[%s7691_s4 + $0xbc] ss:$0 sps:$4 sm:$0x11]   ;;  %v2838_v61 = vrot.slane %v2836_v28, 1  ;;  %v6043_v31 = vcombine.low %v5971_v41, %v8579_v45 }
 0x1b1   : > { %v3344_v46 = vsel %vm544_vm1, %v3339_v11, %v3343_v59  ;;  %v1597_v2 = vrot.slane %v1595_v57, 1  ;;  %v1602_v33 = vshll.u32 %v8659_v30, 16  ;;  %v2197_v59 = vrot.slane %v8569_v39, 1  ;;  %v8696_v57 = vld [vmem:[%s7699_s8 + $0x44] ss:$0 sps:$4 sm:$0x11]  }
 0x1b2   : > { %v8661_v55 = vpop.permute.xlu1 %1635  ;;  %v8663_v26 = vpop.permute.xlu0 %1226  ;;  %v2839_v28 = vor.u32 %v2838_v61, %v2834_v40  ;;  %v2843_v29 = vrot.slane %v2841_v62, 1  ;;  %v2848_v39 = vshll.u32 %v8683_v24, 16  ;;  %v3442_v45 = vrot.slane %v6043_v31, 1 }
 0x1b3   : > { %10916 = vst [vmem:[#allocation100_spill] sm:$0xff] %v8663_v26  ;;  %v3439_v26 = vrot.slane %v6042_v49, 1  ;;  %v1607_v49 = vshll.u32 %v8674_v7, 16  ;;  %v1598_v17 = vsel %vm544_vm1, %v1593_v37, %v1597_v2  ;;  %v1604_v23 = vrot.slane %v1602_v33, 1 }
 0x1b4   : > { %2153 = vrot.lane.b32.xlu1 %v2098_v32, %s7363_s17  ;;  %3397 = vrot.lane.b32.xlu0 %v3332_v5, %s7363_s17  ;;  %v2196_v5 = vrot.slane %v5885_v63, 1  ;;  %v1600_v63 = vshrl.u32 %v8659_v30, 16  ;;  %v2844_v37 = vsel %vm544_vm1, %v2839_v28, %v2843_v29  ;;  %v2853_v62 = vshll.u32 %v8696_v57, 16 }
 0x1b5   : > { %v3441_v11 = vsel %vm681_vm0, %v3439_v26, %v3440_v10  ;;  %v5750_v26 = vld [vmem:[%s7691_s4 + $0xa8] sm:$0xe]  ;;  %v1609_v40 = vrot.slane %v1607_v49, 1  ;;  %v3443_v10 = vrot.slane %v8604_v50, 1  ;;  %v2846_v2 = vshrl.u32 %v8683_v24, 16 }
 0x1b6   : > { %v8685_v0 = vpop.permute.xlu1 %1637  ;;  %v8687_v32 = vpop.permute.xlu0 %2881  ;;  %v2198_v61 = vsel %vm681_vm0, %v2196_v5, %v2197_v59  ;;  %v2850_v33 = vrot.slane %v2848_v39, 1  ;;  %v5838_v41 = vcombine.low %v5750_v26, %v8609_v56  ;;  %v5751_v5 = vld [vmem:[%s7691_s4 + $0xb4] sm:$0xe]  ;;  %v2649_v59 = vld [vmem:[%s7699_s8 + $0x30] sm:$0xe]  ;;  %v2855_v50 = vrot.slane %v2853_v62, 1 }
 0x1b7   : > { %v5839_v28 = vcombine.low %v5751_v5, %v8643_v43  ;;  %v5996_v29 = vcombine.low %v2649_v59, %v8618_v13  ;;  %v2650_v39 = vld [vmem:[%s7699_s8 + $0x3c] sm:$0xe]  ;;  %v1691_v43 = vrot.slane %v8674_v7, 1 }
 0x1b8   : > { %3399 = vrot.lane.b32.xlu1 %v3344_v46, %s7363_s17  ;;  %2215 = vrot.lane.b32.xlu0 %v2195_v15, %s7364_s12  ;;  %v1605_v46 = vor.u32 %v1604_v23, %v1600_v63  ;;  %v3444_v23 = vsel %vm681_vm0, %v3442_v45, %v3443_v10  ;;  %v2851_v31 = vor.u32 %v2850_v33, %v2846_v2  ;;  %v1688_v63 = vrot.slane %v8633_v52, 1  ;;  %v8734_v45 = vld [vmem:[%s7691_s4 + $0xb8] sm:$0xf]  ;;  %v5764_v33 = vld [vmem:[%s7691_s4 + $0xc0] sm:$0xf] }
 0x1b9   : > { %v1690_v13 = vrot.slane %v5839_v28, 1  ;;  %v2933_v52 = vrot.slane %v5996_v29, 1  ;;  %v5920_v59 = vld [vmem:[%s7699_s8 + $0x3c] sm:$0xf]  ;;  %v5922_v28 = vld [vmem:[%s7699_s8 + $0x48] sm:$0xf] }
 0x1ba   : > { %v8701_v3 = vpop.permute.xlu1 %2883  ;;  %v8703_v15 = vpop.permute.xlu0 %1699  ;;  %v1610_v56 = vsel %vm544_vm1, %v1605_v46, %v1609_v40  ;;  %v5997_v40 = vcombine.low %v2650_v39, %v8667_v51  ;;  %v2856_v10 = vsel %vm544_vm1, %v2851_v31, %v2855_v50  ;;  %v2934_v46 = vrot.slane %v8649_v16, 1  ;;  %v8754_v51 = vld [vmem:[%s7699_s8 + $0x40] sm:$0xf] }
 0x1bb   : > { %v1692_v29 = vsel %vm681_vm0, %v1690_v13, %v1691_v43  ;;  %v6004_v31 = vcombine.low %v5920_v59, %v8754_v51 }
 0x1bc   : > { %1643 = vrot.lane.b32.xlu1 %v1598_v17, %s7358_s6  ;;  %3461 = vrot.lane.b32.xlu0 %v3441_v11, %s7364_s12  ;;  %v1687_v17 = vrot.slane %v5838_v41, 1  ;;  %v8746_v41 = vld [vmem:[%s7691_s4 + $0xc4] sm:$0xf]  ;;  %v2936_v16 = vrot.slane %v5997_v40, 1 }
 0x1bd   : > { %v5847_v50 = vcombine.low %v5764_v33, %v8746_v41  ;;  %v3092_v59 = vshll.u32 %v6004_v31, 16 }
 0x1be   : > { %v8716_v49 = vpop.permute.xlu1 %1701  ;;  %v8718_v11 = vpop.permute.xlu0 %2945  ;;  %v1689_v62 = vsel %vm681_vm0, %v1687_v17, %v1688_v63  ;;  %v8765_v17 = vld [vmem:[%s7699_s8 + $0x4c] sm:$0xf]  ;;  %v8768_v63 = vld [vmem:[%s7691_s4 + $0xbc] ss:$0 sps:$4 sm:$0x11]  }
 0x1bf   : > { %v6005_v43 = vcombine.low %v5922_v28, %v8765_v17  ;;  %v1851_v33 = vshll.u32 %v8768_v63, 16  ;;  %v3090_v28 = vshrl.u32 %v6004_v31, 16  ;;  %v3094_v44 = vrot.slane %v3092_v59, 1 }
 0x1c0   : > { %2889 = vrot.lane.b32.xlu1 %v2844_v37, %s7358_s6  ;;  %2217 = vrot.lane.b32.xlu0 %v2198_v61, %s7364_s12  ;;  %v5762_v61 = vld [vmem:[%s7691_s4 + $0xb4] sm:$0xf] }
 0x1c1   : > { %v5846_v2 = vcombine.low %v5762_v61, %v8734_v45  ;;  %v1853_v27 = vrot.slane %v1851_v33, 1  ;;  %v3104_v34 = vshll.u32 %v6005_v43, 16  ;;  %v3102_v36 = vshrl.u32 %v6005_v43, 16  ;;  %v8806_v33 = vld [vmem:[%s7691_s4 + $0xc4] sm:$0xf] }
 0x1c2   : > { %v8728_v26 = vpop.permute.xlu1 %2947  ;;  %v8730_v37 = vpop.permute.xlu0 %1755  ;;  %v3095_v20 = vor.u32 %v3094_v44, %v3090_v28  ;;  %v1944_v44 = vrot.slane %v8768_v63, 1  ;;  %v8826_v28 = vld [vmem:[%s7691_s4 + $0xd0] sm:$0xf]  ;;  %v8837_v63 = vld [vmem:[%s7699_s8 + $0x4c] sm:$0xf] }
 0x1c3   : > { %v1846_v39 = vshll.u32 %v5846_v2, 16  ;;  %v3106_v9 = vrot.slane %v3104_v34, 1  ;;  %v8858_v54 = vcombine.low %v5952_v60, %v8837_v63 }
 0x1c4   : > { %1645 = vrot.lane.b32.xlu1 %v1610_v56, %s7358_s6  ;;  %3463 = vrot.lane.b32.xlu0 %v3444_v23, %s7364_s12  ;;  %v2937_v23 = vrot.slane %v8696_v57, 1  ;;  %v2935_v56 = vsel %vm681_vm0, %v2933_v52, %v2934_v46  ;;  %v8775_v57 = vld [vmem:[%s7691_s4 + $0xc8] ss:$0 sps:$4 sm:$0x11]   ;;  %v1858_v52 = vshll.u32 %v5847_v50, 16 }
 0x1c5   : > { %v1848_v46 = vrot.slane %v1846_v39, 1  ;;  %v5782_v39 = vld [vmem:[%s7691_s4 + $0xb4] sm:$0xe] }
 0x1c6   : > { %v8748_v5 = vpop.permute.xlu1 %1757  ;;  %v8750_v7 = vpop.permute.xlu0 %3001  ;;  %v2938_v13 = vsel %vm681_vm0, %v2936_v16, %v2937_v23  ;;  %v1856_v16 = vshrl.u32 %v5847_v50, 16  ;;  %v1860_v23 = vrot.slane %v1858_v52, 1 }
 0x1c8   : > { %2891 = vrot.lane.b32.xlu1 %v2856_v10, %s7358_s6  ;;  %1707 = vrot.lane.b32.xlu0 %v1689_v62, %s7357_s29  ;;  %v8782_v10 = vld [vmem:[%s7699_s8 + $0x44] ss:$0 sps:$4 sm:$0x11]   ;;  %v1844_v62 = vshrl.u32 %v5846_v2, 16  ;;  %v1861_v52 = vor.u32 %v1860_v23, %v1856_v16  ;;  %v5940_v16 = vld [vmem:[%s7699_s8 + $0x3c] sm:$0xe] }
 0x1c9   : > { %v5796_v23 = vld [vmem:[%s7691_s4 + $0xcc] sm:$0xf] }
 0x1ca   : > { %v8770_v61 = vpop.permute.xlu1 %3003  ;;  %v8772_v40 = vpop.permute.xlu0 %1891  ;;  %v1849_v25 = vor.u32 %v1848_v46, %v1844_v62  ;;  %v5862_v62 = vcombine.low %v5782_v39, %v8734_v45  ;;  %v5794_v46 = vld [vmem:[%s7691_s4 + $0xc0] sm:$0xf]  ;;  %v3107_v39 = vor.u32 %v3106_v9, %v3102_v36 }
 0x1cb   : > { %v8817_v45 = vcombine.low %v5794_v46, %v8806_v33  ;;  %v6020_v46 = vcombine.low %v5940_v16, %v8754_v51  ;;  %v1947_v51 = vrot.slane %v8775_v57, 1 }
 0x1cc   : > { %1709 = vrot.lane.b32.xlu1 %v1692_v29, %s7357_s29  ;;  %2953 = vrot.lane.b32.xlu0 %v2935_v56, %s7357_s29  ;;  %v1863_v29 = vshll.u32 %v8775_v57, 16  ;;  %v3097_v56 = vshll.u32 %v8782_v10, 16  ;;  %v1854_v59 = vsel %vm544_vm1, %v1849_v25, %v1853_v27  ;;  %v1943_v25 = vrot.slane %v5862_v62, 1 }
 0x1cd   : > { %v5863_v27 = vcombine.low %v5783_v18, %v8746_v41  ;;  %v8843_v18 = vcombine.low %v5796_v23, %v8826_v28  ;;  %v5954_v41 = vld [vmem:[%s7699_s8 + $0x54] sm:$0xf]  ;;  %v3190_v62 = vrot.slane %v8782_v10, 1  ;;  %v3189_v16 = vrot.slane %v6020_v46, 1 }
 0x1ce   : > { %v8785_v35 = vpop.permute.xlu1 %1893  ;;  %v8787_v22 = vpop.permute.xlu0 %3137  ;;  %v3099_v12 = vrot.slane %v3097_v56, 1  ;;  %v1945_v9 = vsel %vm681_vm0, %v1943_v25, %v1944_v44  ;;  %v2100_v10 = vshrl.u32 %v8817_v45, 16 }
 0x1cf   : > { %v1946_v36 = vrot.slane %v5863_v27, 1  ;;  %v2114_v60 = vshll.u32 %v8843_v18, 16  ;;  %v3191_v46 = vsel %vm681_vm0, %v3189_v16, %v3190_v62  ;;  %v2228_v62 = vsel %vm1234_vm3, %v8068_v38, %v8661_v55 }
 0x1d0   : > { %2955 = vrot.lane.b32.xlu1 %v2938_v13, %s7357_s29  ;;  %1763 = vrot.lane.b32.xlu0 %v5846_v2, %s7359_s7  ;;  %v1865_v2 = vrot.slane %v1863_v29, 1  ;;  %v3109_v29 = vshll.u32 %v8795_v8, 16  ;;  %v3100_v56 = vsel %vm544_vm1, %v3095_v20, %v3099_v12  ;;  %v8847_v20 = vld [vmem:[%s7699_s8 + $0x58] sm:$0xf]  ;;  %v2102_v12 = vshll.u32 %v8817_v45, 16 }
 0x1d1   : > { %v8865_v44 = vcombine.low %v5954_v41, %v8847_v20  ;;  %v3348_v41 = vshll.u32 %v8858_v54, 16 }
 0x1d2   : > { %v8797_v6 = vpop.permute.xlu1 %3139  ;;  %v8799_v13 = vpop.permute.xlu0 %1955  ;;  %v1866_v34 = vsel %vm544_vm1, %v1861_v52, %v1865_v2  ;;  %v8840_v52 = vld [vmem:[%s7691_s4 + $0xc8] ss:$0 sps:$4 sm:$0x11]   ;;  %v2104_v27 = vrot.slane %v2102_v12, 1 }
 0x1d3   : > { %v2107_v57 = vshll.u32 %v8840_v52, 16 }
 0x1d4   : > { %1765 = vrot.lane.b32.xlu1 %v5847_v50, %s7359_s7  ;;  %3009 = vrot.lane.b32.xlu0 %v6004_v31, %s7359_s7 }
 0x1d5   : > { %v2109_v30 = vrot.slane %v2107_v57, 1 }
 0x1d6   : > { %v8811_v50 = vpop.permute.xlu1 %1957  ;;  %v8813_v31 = vpop.permute.xlu0 %3201 }
 0x1d8   : > { %3011 = vrot.lane.b32.xlu1 %v6005_v43, %s7359_s7  ;;  %1899 = vrot.lane.b32.xlu0 %v1854_v59, %s7360_s18  ;;  %v3111_v43 = vrot.slane %v3109_v29, 1  ;;  %v5941_v59 = vld [vmem:[%s7699_s8 + $0x48] sm:$0xe] }
 0x1d9   : > { %v6021_v23 = vcombine.low %v5941_v59, %v8765_v17  ;;  %v3193_v17 = vrot.slane %v8795_v8, 1  ;;  %v2105_v8 = vor.u32 %v2104_v27, %v2100_v10  ;;  %v3346_v10 = vshrl.u32 %v8858_v54, 16 }
 0x1da   : > { %v8832_v21 = vpop.permute.xlu1 %3203  ;;  %v8834_v2 = vpop.permute.xlu0 %2011  ;;  %v3112_v29 = vsel %vm544_vm1, %v3107_v39, %v3111_v43  ;;  %v8877_v39 = vld [vmem:[%s7699_s8 + $0x50] ss:$0 sps:$4 sm:$0x11]   ;;  %v1948_v43 = vsel %vm681_vm0, %v1946_v36, %v1947_v51  ;;  %v2116_v36 = vrot.slane %v2114_v60, 1  ;;  %v3350_v27 = vrot.slane %v3348_v41, 1 }
 0x1db   : > { %v3192_v59 = vrot.slane %v6021_v23, 1  ;;  %v3353_v16 = vshll.u32 %v8877_v39, 16  ;;  %v2244_v23 = vsel %vm1251_vm4, %v2228_v62, %v8703_v15  ;;  %v5734_v60 = vld [vmem:[%s7691_s4 + $0xc0] sm:$0xf]  ;;  %v3365_v15 = vshll.u32 %v8885_v47, 16 }
 0x1dc   : > { %1901 = vrot.lane.b32.xlu1 %v1866_v34, %s7360_s18  ;;  %3145 = vrot.lane.b32.xlu0 %v3100_v56, %s7360_s18  ;;  %v8870_v56 = vld [vmem:[%s7691_s4 + $0xd4] ss:$0 sps:$4 sm:$0x11]   ;;  %v2260_v38 = vsel %vm1268_vm5, %v2244_v23, %v8730_v37  ;;  %v5814_v62 = vld [vmem:[%s7691_s4 + $0xc0] sm:$0xe]  ;;  %v3474_v37 = vsel %vm1234_vm3, %v8095_v53, %v8687_v32  ;;  %v3351_v32 = vor.u32 %v3350_v27, %v3346_v10 }
 0x1dd   : > { %v2119_v51 = vshll.u32 %v8870_v56, 16  ;;  %v3194_v57 = vsel %vm681_vm0, %v3192_v59, %v3193_v17  ;;  %v2276_v17 = vsel %vm1285_vm6, %v2260_v38, %v8772_v40  ;;  %v2110_v59 = vsel %vm544_vm1, %v2105_v8, %v2109_v30 }
 0x1de   : > { %v8860_v34 = vpop.permute.xlu1 %2013  ;;  %v8862_v25 = vpop.permute.xlu0 %3257  ;;  %v3355_v40 = vrot.slane %v3353_v16, 1  ;;  %v8926_v30 = vcombine.low %v5734_v60, %v8902_v1  ;;  %v3490_v8 = vsel %vm1251_vm4, %v3474_v37, %v8718_v11  ;;  %v3367_v23 = vrot.slane %v3365_v15, 1  ;;  %v8940_v60 = vld [vmem:[%s7699_s8 + $0x4c] sm:$0xf]  ;;  %v8979_v15 = vld [vmem:[%s7691_s4 + $0xd0] sm:$0xf] }
 0x1df   : > { %v2121_v19 = vrot.slane %v2119_v51, 1  ;;  %v3476_v37 = vsel %vm1234_vm3, %v8119_v4, %v8701_v3 }
 0x1e0   : > { %3147 = vrot.lane.b32.xlu1 %v3112_v29, %s7360_s18  ;;  %1963 = vrot.lane.b32.xlu0 %v1945_v9, %s7361_s13  ;;  %v3360_v9 = vshll.u32 %v8865_v44, 16  ;;  %v2112_v29 = vshrl.u32 %v8843_v18, 16 }
 0x1e2   : > { %v8882_v12 = vpop.permute.xlu1 %3259  ;;  %v2148_v24 = vpop.permute.xlu0 %2147  ;;  %v3362_v42 = vrot.slane %v3360_v9, 1  ;;  %v2117_v41 = vor.u32 %v2116_v36, %v2112_v29  ;;  %v2292_v9 = vsel %vm1302_vm7, %v2276_v17, %v8799_v13  ;;  %v5886_v29 = vcombine.low %v5814_v62, %v8806_v33 }
 0x1e3   : > { %v2308_v53 = vsel %vm1319_vm8, %v2292_v9, %v8834_v2  ;;  %v3506_v13 = vsel %vm1268_vm5, %v3490_v8, %v8750_v7  ;;  %v2200_v33 = vrot.slane %v8840_v52, 1  ;;  %v1619_v7 = vshll.u32 %v8915_v48, 16  ;;  %v5815_v8 = vld [vmem:[%s7691_s4 + $0xcc] sm:$0xe] }
 0x1e4   : > { %1965 = vrot.lane.b32.xlu1 %v1948_v43, %s7361_s13  ;;  %3209 = vrot.lane.b32.xlu0 %v3191_v46, %s7361_s13  ;;  %v3358_v46 = vshrl.u32 %v8865_v44, 16  ;;  %v2324_v36 = vsel %vm1336_vm9, %v2308_v53, %v2148_v24  ;;  %v3522_v11 = vsel %vm1285_vm6, %v3506_v13, %v8787_v22  ;;  %v2230_v24 = vsel %vm1234_vm3, %v8089_v14, %v8685_v0  ;;  %v9020_v13 = vld [vmem:[%s7699_s8 + $0x58] sm:$0xf] }
 0x1e5   : > { %v2122_v22 = vsel %vm544_vm1, %v2117_v41, %v2121_v19  ;;  %v1614_v52 = vshll.u32 %v8926_v30, 16  ;;  %v2246_v10 = vsel %vm1251_vm4, %v2230_v24, %v8716_v49  ;;  %v3356_v0 = vsel %vm544_vm1, %v3351_v32, %v3355_v40 }
 0x1e6   : > { %v8906_v55 = vpop.permute.xlu1 %2149  ;;  %v3394_v43 = vpop.permute.xlu0 %3393  ;;  %v3363_v16 = vor.u32 %v3362_v42, %v3358_v46  ;;  %v3538_v42 = vsel %vm1302_vm7, %v3522_v11, %v8813_v31  ;;  %v5972_v31 = vld [vmem:[%s7699_s8 + $0x48] sm:$0xe]  ;;  %v2262_v19 = vsel %vm1268_vm5, %v2246_v10, %v8748_v5  ;;  %v2199_v38 = vrot.slane %v5886_v29, 1  ;;  %v5736_v46 = vld [vmem:[%s7691_s4 + $0xcc] sm:$0xf] }
 0x1e7   : > { %v3554_v14 = vsel %vm1319_vm8, %v3538_v42, %v8862_v25  ;;  %v2278_v62 = vsel %vm1285_vm6, %v2262_v19, %v8785_v35  ;;  %v1612_v5 = vshrl.u32 %v8926_v30, 16  ;;  %v1621_v41 = vrot.slane %v1619_v7, 1  ;;  %v2635_v29 = vld [vmem:[%s7699_s8 + $0x54] sm:$0xf] }
 0x1e8   : > { %3211 = vrot.lane.b32.xlu1 %v3194_v57, %s7361_s13  ;;  %2019 = vrot.lane.b32.xlu0 %v8817_v45, %s7362_s16  ;;  %v2633_v57 = vld [vmem:[%s7699_s8 + $0x48] sm:$0xf]  ;;  %v3368_v25 = vsel %vm544_vm1, %v3363_v16, %v3367_v23  ;;  %v2294_v9 = vsel %vm1302_vm7, %v2278_v62, %v8811_v50  ;;  %v1616_v35 = vrot.slane %v1614_v52, 1  ;;  %v6044_v40 = vcombine.low %v5972_v31, %v8837_v63  ;;  %v9035_v11 = vld [vmem:[%s7691_s4 + $0xd4] ss:$0 sps:$4 sm:$0x11]  }
 0x1e9   : > { %v3492_v53 = vsel %vm1251_vm4, %v3476_v37, %v8728_v26  ;;  %v2310_v4 = vsel %vm1319_vm8, %v2294_v9, %v8860_v34  ;;  %v9008_v50 = vcombine.low %v5736_v46, %v8979_v15  ;;  %v2201_v34 = vsel %vm681_vm0, %v2199_v38, %v2200_v33  ;;  %v5752_v46 = vld [vmem:[%s7691_s4 + $0xc0] sm:$0xe] }
 0x1ea   : > { %v8936_v51 = vpop.permute.xlu1 %3395  ;;  %v2212_v45 = vpop.permute.xlu0 %2211  ;;  %v2326_v63 = vsel %vm1336_vm9, %v2310_v4, %v8906_v55  ;;  %v3446_v32 = vrot.slane %v8877_v39, 1  ;;  %v1617_v39 = vor.u32 %v1616_v35, %v1612_v5  ;;  %v3445_v23 = vrot.slane %v6044_v40, 1 }
 0x1eb   : > { %v8945_v2 = vsel %vm1353_vm10, %v2324_v36, %v2212_v45  ;;  %v5887_v45 = vcombine.low %v5815_v8, %v8826_v28  ;;  %v1626_v33 = vshll.u32 %v9008_v50, 16  ;;  %v9044_v7 = vcombine.low %v2635_v29, %v9020_v13 }
 0x1ec   : > { %10918 = vst [vmem:[#allocation102_spill] sm:$0xff] %v8945_v2  ;;  %2021 = vrot.lane.b32.xlu1 %v8843_v18, %s7362_s16  ;;  %3265 = vrot.lane.b32.xlu0 %v8858_v54, %s7362_s16  ;;  %v8969_v54 = vcombine.low %v2633_v57, %v8940_v60  ;;  %v3570_v18 = vsel %vm1336_vm9, %v3554_v14, %v3394_v43  ;;  %v8988_v43 = vld [vmem:[%s7699_s8 + $0x50] ss:$0 sps:$4 sm:$0x11]   ;;  %v2203_v14 = vrot.slane %v8870_v56, 1  ;;  %v1624_v56 = vshrl.u32 %v9008_v50, 16 }
 0x1ed   : > { %6416 = vmatprep.mubr.msk.bf16.mxu0 %vm2370_vm11, %v8945_v2  ;;  %v2865_v55 = vshll.u32 %v8988_v43, 16  ;;  %v2202_v10 = vrot.slane %v5887_v45, 1  ;;  %v3447_v31 = vsel %vm681_vm0, %v3445_v23, %v3446_v32  ;;  %v1628_v38 = vrot.slane %v1626_v33, 1 }
 0x1ee   : > { %v8974_v27 = vpop.permute.xlu1 %1639  ;;  %v3458_v49 = vpop.permute.xlu0 %3457  ;;  %v2860_v3 = vshll.u32 %v8969_v54, 16  ;;  %v2858_v57 = vshrl.u32 %v8969_v54, 16  ;;  %v5840_v40 = vcombine.low %v5752_v46, %v8902_v1  ;;  %v2870_v4 = vshrl.u32 %v9044_v7, 16  ;;  %v5926_v46 = vld [vmem:[%s7699_s8 + $0x60] sm:$0xf] }
 0x1ef   : > { %v8984_v17 = vsel %vm1353_vm10, %v3570_v18, %v3458_v49  ;;  %v9061_v18 = vld [vmem:[%s7699_s8 + $0x5c] ss:$0 sps:$4 sm:$0x11]   ;;  %v1694_v29 = vrot.slane %v8915_v48, 1 }
 0x1f0   : > { %10919 = vst [vmem:[#allocation103_spill] sm:$0xff] %v8984_v17  ;;  %3267 = vrot.lane.b32.xlu1 %v8865_v44, %s7362_s16  ;;  %2155 = vrot.lane.b32.xlu0 %v2110_v59, %s7363_s17  ;;  %v3508_v44 = vsel %vm1268_vm5, %v3492_v53, %v8770_v61  ;;  %v2862_v28 = vrot.slane %v2860_v3, 1  ;;  %v2877_v35 = vshll.u32 %v9061_v18, 16  ;;  %v1629_v53 = vor.u32 %v1628_v38, %v1624_v56 }
 0x1f1   : > { %6482 = vmatprep.mubr.msk.bf16.mxu1 %vm2370_vm11, %v8984_v17  ;;  %v3524_v36 = vsel %vm1285_vm6, %v3508_v44, %v8797_v6  ;;  %v1693_v32 = vrot.slane %v5840_v40, 1 }
 0x1f2   : > { %v9014_v59 = vpop.permute.xlu1 %2885  ;;  %v2214_v26 = vpop.permute.xlu0 %2213  ;;  %v3540_v16 = vsel %vm1302_vm7, %v3524_v36, %v8832_v21  ;;  %v5973_v21 = vld [vmem:[%s7699_s8 + $0x54] sm:$0xe]  ;;  %v2863_v49 = vor.u32 %v2862_v28, %v2858_v57  ;;  %v9100_v28 = vld [vmem:[%s7691_s4 + $0xd0] sm:$0xf] }
 0x1f3   : > { %v9025_v61 = vsel %vm1353_vm10, %v2326_v63, %v2214_v26  ;;  %v3556_v6 = vsel %vm1319_vm8, %v3540_v16, %v8882_v12  ;;  %v2867_v12 = vrot.slane %v2865_v55, 1  ;;  %v6045_v19 = vcombine.low %v5973_v21, %v8847_v20  ;;  %v5753_v63 = vld [vmem:[%s7691_s4 + $0xcc] sm:$0xe]  ;;  %v2651_v26 = vld [vmem:[%s7699_s8 + $0x48] sm:$0xe] }
 0x1f4   : > { %10920 = vst [vmem:[#allocation104_spill] sm:$0xff] %v9025_v61  ;;  %2157 = vrot.lane.b32.xlu1 %v2122_v22, %s7363_s17  ;;  %3401 = vrot.lane.b32.xlu0 %v3356_v0, %s7363_s17  ;;  %v3572_v24 = vsel %vm1336_vm9, %v3556_v6, %v8936_v51  ;;  %v1622_v0 = vsel %vm544_vm1, %v1617_v39, %v1621_v41  ;;  %v1631_v51 = vshll.u32 %v9035_v11, 16  ;;  %v3449_v41 = vrot.slane %v8885_v47, 1  ;;  %v2652_v39 = vld [vmem:[%s7699_s8 + $0x54] sm:$0xe] }
 0x1f5   : > { %6417 = vmatmul.mubr.msk.bf16.vlgmr.msra.gmra.mrb[0].mxu0 %vm2370_vm11, %v9025_v61  ;;  %v2204_v20 = vsel %vm681_vm0, %v2202_v10, %v2203_v14  ;;  %v3448_v9 = vrot.slane %v6045_v19, 1  ;;  %v2868_v8 = vsel %vm544_vm1, %v2863_v49, %v2867_v12  ;;  %v5841_v45 = vcombine.low %v5753_v63, %v8979_v15  ;;  %v5766_v6 = vld [vmem:[%s7691_s4 + $0xcc] sm:$0xf]  ;;  %v5768_v10 = vld [vmem:[%s7691_s4 + $0xd8] sm:$0xf] }
 0x1f6   : > { %v9048_v42 = vpop.permute.xlu1 %1641  ;;  %v3460_v22 = vpop.permute.xlu0 %3459  ;;  %v1633_v37 = vrot.slane %v1631_v51, 1  ;;  %v5998_v16 = vcombine.low %v2651_v26, %v8940_v60  ;;  %v1695_v48 = vsel %vm681_vm0, %v1693_v32, %v1694_v29  ;;  %v1697_v60 = vrot.slane %v9035_v11, 1  ;;  %v9112_v14 = vld [vmem:[%s7691_s4 + $0xdc] sm:$0xf]  ;;  %v5924_v11 = vld [vmem:[%s7699_s8 + $0x54] sm:$0xf] }
 0x1f7   : > { %v9051_v52 = vsel %vm1353_vm10, %v3572_v24, %v3460_v22  ;;  %v3450_v1 = vsel %vm681_vm0, %v3448_v9, %v3449_v41  ;;  %v2940_v15 = vrot.slane %v8988_v43, 1  ;;  %v5999_v33 = vcombine.low %v2652_v39, %v9020_v13  ;;  %v9120_v43 = vld [vmem:[%s7699_s8 + $0x58] sm:$0xf]  ;;  %v9127_v49 = vld [vmem:[%s7691_s4 + $0xd4] ss:$0 sps:$4 sm:$0x11]  }
 0x1f8   : > { %10921 = vst [vmem:[#allocation105_spill] sm:$0xff] %v9051_v52  ;;  %3403 = vrot.lane.b32.xlu1 %v3368_v25, %s7363_s17  ;;  %2219 = vrot.lane.b32.xlu0 %v2201_v34, %s7364_s12  ;;  %v2872_v25 = vshll.u32 %v9044_v7, 16  ;;  %v2879_v34 = vrot.slane %v2877_v35, 1  ;;  %v1634_v36 = vsel %vm544_vm1, %v1629_v53, %v1633_v37  ;;  %v1696_v24 = vrot.slane %v5841_v45, 1  ;;  %v10922_v61 = vld [vmem:[#allocation60_spill] sm:$0xff] }
 0x1f9   : > { %6483 = vmatmul.mubr.msk.bf16.vlgmr.msra.gmra.mrb[0].mxu1 %vm2370_vm11, %v9051_v52  ;;  %v2939_v22 = vrot.slane %v5998_v16, 1  ;;  %v5848_v12 = vcombine.low %v5766_v6, %v9100_v28  ;;  %v2942_v13 = vrot.slane %v5999_v33, 1  ;;  %v2943_v51 = vrot.slane %v9061_v18, 1  ;;  %v9141_v18 = vld [vmem:[%s7691_s4 + $0xe0] ss:$0 sps:$4 sm:$0x11]  }
 0x1fa   : > { %v9068_v62 = vpop.permute.xlu1 %2887  ;;  %v9070_v5 = vpop.permute.xlu0 %1703  ;;  %v2874_v3 = vrot.slane %v2872_v25, 1  ;;  %v5849_v19 = vcombine.low %v5768_v10, %v9112_v14  ;;  %v1698_v56 = vsel %vm681_vm0, %v1696_v24, %v1697_v60  ;;  %v6006_v25 = vcombine.low %v5924_v11, %v9120_v43  ;;  %v9149_v63 = vld [vmem:[%s7699_s8 + $0x5c] ss:$0 sps:$4 sm:$0x11]  }
 0x1fb   : > { %v2941_v38 = vsel %vm681_vm0, %v2939_v22, %v2940_v15  ;;  %v1870_v41 = vshll.u32 %v5848_v12, 16  ;;  %v1875_v40 = vshll.u32 %v9127_v49, 16  ;;  %v2944_v53 = vsel %vm681_vm0, %v2942_v13, %v2943_v51  ;;  %v9159_v45 = vld [vmem:[%s7699_s8 + $0x68] ss:$0 sps:$4 sm:$0x11]  }
 0x1fc   : > { %1647 = vrot.lane.b32.xlu1 %v1622_v0, %s7358_s6  ;;  %3465 = vrot.lane.b32.xlu0 %v3447_v31, %s7364_s12  ;;  %v2875_v55 = vor.u32 %v2874_v3, %v2870_v4  ;;  %v1868_v4 = vshrl.u32 %v5848_v12, 16  ;;  %v3116_v26 = vshll.u32 %v6006_v25, 16  ;;  %v1880_v32 = vshrl.u32 %v5849_v19, 16 }
 0x1fd   : > { %v1872_v3 = vrot.slane %v1870_v41, 1  ;;  %v1887_v29 = vshll.u32 %v9141_v18, 16  ;;  %v3114_v6 = vshrl.u32 %v6006_v25, 16  ;;  %v3121_v60 = vshll.u32 %v9149_v63, 16 }
 0x1fe   : > { %v9080_v44 = vpop.permute.xlu1 %1705  ;;  %v9082_v47 = vpop.permute.xlu0 %2949  ;;  %v2880_v21 = vsel %vm544_vm1, %v2875_v55, %v2879_v34  ;;  %v3133_v11 = vshll.u32 %v9159_v45, 16  ;;  %v3478_v2 = vsel %vm1234_vm3, %v10922_v61, %v9014_v59 }
 0x1ff   : > { %v1873_v39 = vor.u32 %v1872_v3, %v1868_v4  ;;  %v1889_v24 = vrot.slane %v1887_v29, 1 }
 0x200   : > { %2893 = vrot.lane.b32.xlu1 %v2868_v8, %s7358_s6  ;;  %2221 = vrot.lane.b32.xlu0 %v2204_v20, %s7364_s12  ;;  %v9134_v20 = vld [vmem:[%s7699_s8 + $0x64] sm:$0xf]  ;;  %v1882_v8 = vshll.u32 %v5849_v19, 16  ;;  %v3135_v3 = vrot.slane %v3133_v11, 1 }
 0x201   : > { %v6007_v35 = vcombine.low %v5926_v46, %v9134_v20  ;;  %v5785_v46 = vld [vmem:[%s7691_s4 + $0xd8] sm:$0xe] }
 0x202   : > { %v9094_v23 = vpop.permute.xlu1 %2951  ;;  %v9096_v57 = vpop.permute.xlu0 %1759  ;;  %v1884_v55 = vrot.slane %v1882_v8, 1  ;;  %v9180_v8 = vld [vmem:[%s7691_s4 + $0xdc] sm:$0xf] }
 0x203   : > { %v3128_v16 = vshll.u32 %v6007_v35, 16 }
 0x204   : > { %1649 = vrot.lane.b32.xlu1 %v1634_v36, %s7358_s6  ;;  %3467 = vrot.lane.b32.xlu0 %v3450_v1, %s7364_s12  ;;  %v1877_v36 = vrot.slane %v1875_v40, 1  ;;  %v1885_v22 = vor.u32 %v1884_v55, %v1880_v32  ;;  %v9188_v32 = vld [vmem:[%s7691_s4 + $0xe8] sm:$0xf]  ;;  %v1950_v55 = vrot.slane %v9127_v49, 1 }
 0x205   : > { %v3130_v10 = vrot.slane %v3128_v16, 1 }
 0x206   : > { %v9114_v0 = vpop.permute.xlu1 %1761  ;;  %v9116_v31 = vpop.permute.xlu0 %3005  ;;  %v1878_v13 = vsel %vm544_vm1, %v1873_v39, %v1877_v36 }
 0x208   : > { %2895 = vrot.lane.b32.xlu1 %v2880_v21, %s7358_s6  ;;  %1711 = vrot.lane.b32.xlu0 %v1695_v48, %s7357_s29  ;;  %v3118_v48 = vrot.slane %v3116_v26, 1  ;;  %v5784_v21 = vld [vmem:[%s7691_s4 + $0xcc] sm:$0xe]  ;;  %v5800_v26 = vld [vmem:[%s7691_s4 + $0xe4] sm:$0xf] }
 0x20a   : > { %v9136_v37 = vpop.permute.xlu1 %3007  ;;  %v9138_v9 = vpop.permute.xlu0 %1895  ;;  %v3119_v51 = vor.u32 %v3118_v48, %v3114_v6  ;;  %v5943_v6 = vld [vmem:[%s7699_s8 + $0x60] sm:$0xe]  ;;  %v9202_v48 = vcombine.low %v5800_v26, %v9188_v32  ;;  %v9243_v26 = vld [vmem:[%s7691_s4 + $0x54] sm:$0xe] }
 0x20b   : > { %v6023_v11 = vcombine.low %v5943_v6, %v9134_v20 }
 0x20c   : > { %1713 = vrot.lane.b32.xlu1 %v1698_v56, %s7357_s29  ;;  %2957 = vrot.lane.b32.xlu0 %v2941_v38, %s7357_s29  ;;  %v3123_v56 = vrot.slane %v3121_v60, 1  ;;  %v5864_v38 = vcombine.low %v5784_v21, %v9100_v28  ;;  %v5865_v28 = vcombine.low %v5785_v46, %v9112_v14  ;;  %v1953_v60 = vrot.slane %v9141_v18, 1  ;;  %v5956_v21 = vld [vmem:[%s7699_s8 + $0x60] sm:$0xf]  ;;  %v9224_v18 = vld [vmem:[%s7699_s8 + $0x70] sm:$0xf] }
 0x20e   : > { %v9151_v1 = vpop.permute.xlu1 %1897  ;;  %v9153_v34 = vpop.permute.xlu0 %3141  ;;  %v3124_v29 = vsel %vm544_vm1, %v3119_v51, %v3123_v56  ;;  %v1949_v36 = vrot.slane %v5864_v38, 1  ;;  %v1952_v49 = vrot.slane %v5865_v28, 1  ;;  %v5958_v38 = vld [vmem:[%s7699_s8 + $0x6c] sm:$0xf] }
 0x20f   : > { %v9240_v28 = vcombine.low %v5958_v38, %v9224_v18 }
 0x210   : > { %2959 = vrot.lane.b32.xlu1 %v2944_v53, %s7357_s29  ;;  %1767 = vrot.lane.b32.xlu0 %v5848_v12, %s7359_s7  ;;  %v3126_v12 = vshrl.u32 %v6007_v35, 16  ;;  %v1890_v53 = vsel %vm544_vm1, %v1885_v22, %v1889_v24  ;;  %v9210_v24 = vld [vmem:[%s7699_s8 + $0x64] sm:$0xf]  ;;  %v1951_v22 = vsel %vm681_vm0, %v1949_v36, %v1950_v55  ;;  %v1954_v20 = vsel %vm681_vm0, %v1952_v49, %v1953_v60  ;;  %v9251_v60 = vld [vmem:[%s7699_s8 + $0x68] ss:$0 sps:$4 sm:$0x11]  }
 0x212   : > { %v9162_v15 = vpop.permute.xlu1 %3143  ;;  %v9164_v33 = vpop.permute.xlu0 %1959  ;;  %v3131_v4 = vor.u32 %v3130_v10, %v3126_v12  ;;  %v3196_v10 = vrot.slane %v9149_v63, 1  ;;  %v9235_v63 = vld [vmem:[%s7691_s4 + $0xec] ss:$0 sps:$4 sm:$0x11]  }
 0x214   : > { %1769 = vrot.lane.b32.xlu1 %v5849_v19, %s7359_s7  ;;  %3013 = vrot.lane.b32.xlu0 %v6006_v25, %s7359_s7  ;;  %v5942_v19 = vld [vmem:[%s7699_s8 + $0x54] sm:$0xe]  ;;  %v5798_v25 = vld [vmem:[%s7691_s4 + $0xd8] sm:$0xf] }
 0x215   : > { %v9199_v14 = vcombine.low %v5798_v25, %v9180_v8  ;;  %v2138_v25 = vshll.u32 %v9202_v48, 16 }
 0x216   : > { %v9173_v41 = vpop.permute.xlu1 %1961  ;;  %v9175_v40 = vpop.permute.xlu0 %3205 }
 0x217   : > { %v2126_v46 = vshll.u32 %v9199_v14, 16  ;;  %v2124_v55 = vshrl.u32 %v9199_v14, 16  ;;  %v2140_v49 = vrot.slane %v2138_v25, 1 }
 0x218   : > { %3015 = vrot.lane.b32.xlu1 %v6007_v35, %s7359_s7  ;;  %1903 = vrot.lane.b32.xlu0 %v1878_v13, %s7360_s18  ;;  %v6022_v35 = vcombine.low %v5942_v19, %v9120_v43  ;;  %v3136_v43 = vsel %vm544_vm1, %v3131_v4, %v3135_v3  ;;  %v9216_v13 = vld [vmem:[%s7691_s4 + $0xe0] ss:$0 sps:$4 sm:$0x11]   ;;  %v9228_v19 = vcombine.low %v5956_v21, %v9210_v24  ;;  %v3198_v4 = vrot.slane %v6023_v11, 1 }
 0x219   : > { %v3199_v3 = vrot.slane %v9159_v45, 1  ;;  %v2131_v6 = vshll.u32 %v9216_v13, 16  ;;  %v2232_v21 = vsel %vm1234_vm3, %v8329_v58, %v8974_v27  ;;  %v3384_v58 = vshll.u32 %v9240_v28, 16 }
 0x21a   : > { %v9193_v16 = vpop.permute.xlu1 %3207  ;;  %v9195_v39 = vpop.permute.xlu0 %2015  ;;  %v3195_v12 = vrot.slane %v6022_v35, 1  ;;  %v2128_v35 = vrot.slane %v2126_v46, 1  ;;  %v3372_v45 = vshll.u32 %v9228_v19, 16  ;;  %v2248_v11 = vsel %vm1251_vm4, %v2232_v21, %v9070_v5  ;;  %v9269_v46 = vld [vmem:[%s7699_s8 + $0x74] ss:$0 sps:$4 sm:$0x11]  }
 0x21b   : > { %v3200_v38 = vsel %vm681_vm0, %v3198_v4, %v3199_v3  ;;  %v2264_v27 = vsel %vm1268_vm5, %v2248_v11, %v9096_v57  ;;  %v2133_v52 = vrot.slane %v2131_v6, 1  ;;  %v3370_v17 = vshrl.u32 %v9228_v19, 16  ;;  %v5816_v3 = vld [vmem:[%s7691_s4 + $0xd8] sm:$0xe] }
 0x21c   : > { %1905 = vrot.lane.b32.xlu1 %v1890_v53, %s7360_s18  ;;  %3149 = vrot.lane.b32.xlu0 %v3124_v29, %s7360_s18  ;;  %v3197_v53 = vsel %vm681_vm0, %v3195_v12, %v3196_v10  ;;  %v9261_v12 = vld [vmem:[%s7691_s4 + $0x58] sm:$0xf]  ;;  %v2280_v10 = vsel %vm1285_vm6, %v2264_v27, %v9138_v9  ;;  %v3374_v21 = vrot.slane %v3372_v45, 1  ;;  %v3377_v4 = vshll.u32 %v9251_v60, 16 }
 0x21d   : > { %v2296_v57 = vsel %vm1302_vm7, %v2280_v10, %v9164_v33  ;;  %v3382_v9 = vshrl.u32 %v9240_v28, 16  ;;  %v3389_v59 = vshll.u32 %v9269_v46, 16  ;;  %v10923_v11 = vld [vmem:[#allocation63_spill] sm:$0xff] }
 0x21e   : > { %v9218_v51 = vpop.permute.xlu1 %2017  ;;  %v9220_v56 = vpop.permute.xlu0 %3261  ;;  %v2312_v6 = vsel %vm1319_vm8, %v2296_v57, %v9195_v39  ;;  %v3375_v39 = vor.u32 %v3374_v21, %v3370_v17  ;;  %v3379_v10 = vrot.slane %v3377_v4, 1  ;;  %v7044_v4 = vld [vmem:[#allocation8 + $0x8] sm:$0xff]  }
 0x220   : > { %3151 = vrot.lane.b32.xlu1 %v3136_v43, %s7360_s18  ;;  %1967 = vrot.lane.b32.xlu0 %v1951_v22, %s7361_s13  ;;  %v2136_v43 = vshrl.u32 %v9202_v48, 16  ;;  %v2143_v22 = vshll.u32 %v9235_v63, 16 }
 0x222   : > { %v9245_v29 = vpop.permute.xlu1 %3263  ;;  %v2152_v36 = vpop.permute.xlu0 %2151  ;;  %v2141_v5 = vor.u32 %v2140_v49, %v2136_v43  ;;  %v3386_v43 = vrot.slane %v3384_v58, 1  ;;  %v5974_v58 = vld [vmem:[%s7699_s8 + $0x60] sm:$0xe] }
 0x223   : > { %v2328_v33 = vsel %vm1336_vm9, %v2312_v6, %v2152_v36  ;;  %v2234_v36 = vsel %vm1234_vm3, %v10923_v11, %v9048_v42  ;;  %v3452_v11 = vrot.slane %v9251_v60, 1  ;;  %v9407_v60 = vld [vmem:[%s7699_s8 + $0x8c] ss:$0 sps:$4 sm:$0x11]  }
 0x224   : > { %1969 = vrot.lane.b32.xlu1 %v1954_v20, %s7361_s13  ;;  %3213 = vrot.lane.b32.xlu0 %v3197_v53, %s7361_s13  ;;  %v2129_v53 = vor.u32 %v2128_v35, %v2124_v55  ;;  %v2145_v55 = vrot.slane %v2143_v22, 1  ;;  %v3494_v35 = vsel %vm1251_vm4, %v3478_v2, %v9082_v47  ;;  %v5888_v22 = vcombine.low %v5816_v3, %v9180_v8  ;;  %v10925_v3 = vld [vmem:[#allocation66_spill] sm:$0xff] }
 0x225   : > { %v3510_v61 = vsel %vm1268_vm5, %v3494_v35, %v9116_v31  ;;  %v7041_v31 = vld [vmem:[#allocation8] sm:$0xff]   ;;  %v2250_v17 = vsel %vm1251_vm4, %v2234_v36, %v9080_v44  ;;  %v3387_v42 = vor.u32 %v3386_v43, %v3382_v9  ;;  %v9360_v35 = vld [vmem:[%s7699_s8 + $0x7c] sm:$0xf] }
 0x226   : > { %v9274_v25 = vpop.permute.xlu1 %2153  ;;  %v3398_v20 = vpop.permute.xlu0 %3397  ;;  %v2134_v45 = vsel %vm544_vm1, %v2129_v53, %v2133_v52  ;;  %v3526_v2 = vsel %vm1285_vm6, %v3510_v61, %v9153_v34  ;;  %v2146_v52 = vsel %vm544_vm1, %v2141_v5, %v2145_v55  ;;  %v5817_v34 = vld [vmem:[%s7691_s4 + $0xe4] sm:$0xe]  ;;  %6432 = vmatprep.subr.bf16.mxu0 %v7041_v31  ;;  %v2205_v44 = vrot.slane %v5888_v22, 1  ;;  %6498 = vmatprep.subr.bf16.mxu1 %v7041_v31  ;;  %v5975_v61 = vld [vmem:[%s7699_s8 + $0x6c] sm:$0xe] }
 0x227   : > { %6433 = vmatpush3.bf16.msra.mxu0 %v7041_v31  ;;  %6499 = vmatpush3.bf16.msra.mxu1 %v7041_v31  ;;  %v6077_v55 = vld [vmem:[%s7699_s8 + $0x84] sm:$0xf] }
 0x228   : > { %3215 = vrot.lane.b32.xlu1 %v3200_v38, %s7361_s13  ;;  %2023 = vrot.lane.b32.xlu0 %v9199_v14, %s7362_s16  ;;  %v3542_v38 = vsel %vm1302_vm7, %v3526_v2, %v9175_v40  ;;  %v3391_v40 = vrot.slane %v3389_v59, 1 }
 0x229   : > { %v3558_v8 = vsel %vm1319_vm8, %v3542_v38, %v9220_v56  ;;  %v2206_v56 = vrot.slane %v9216_v13, 1  ;;  %v3480_v13 = vsel %vm1234_vm3, %v10925_v3, %v9068_v62  ;;  %6434 = vmatprep.subr.bf16.mxu0 %v7044_v4  ;;  %6500 = vmatprep.subr.bf16.mxu1 %v7044_v4 }
 0x22a   : > { %v9298_v49 = vpop.permute.xlu1 %3399  ;;  %v2216_v14 = vpop.permute.xlu0 %2215  ;;  %v3496_v9 = vsel %vm1251_vm4, %v3480_v13, %v9094_v23 }
 0x22b   : > { %v9305_v47 = vsel %vm1353_vm10, %v2328_v33, %v2216_v14  ;;  %v3512_v6 = vsel %vm1268_vm5, %v3496_v9, %v9136_v37  ;;  %6435 = vmatpush3.bf16.msra.mxu0 %v7044_v4  ;;  %v5648_v33 = vld [vmem:[%s7691_s4 + $0x60] sm:$0xe]  ;;  %6501 = vmatpush3.bf16.msra.mxu1 %v7044_v4  ;;  %v6109_v9 = vld [vmem:[%s7699_s8 + $0x90] sm:$0xf] }
 0x22c   : > { %2025 = vrot.lane.b32.xlu1 %v9202_v48, %s7362_s16  ;;  %3269 = vrot.lane.b32.xlu0 %v9228_v19, %s7362_s16  ;;  %v2266_v48 = vsel %vm1268_vm5, %v2250_v17, %v9114_v0  ;;  %v3574_v19 = vsel %vm1336_vm9, %v3558_v8, %v3398_v20  ;;  %v3380_v0 = vsel %vm544_vm1, %v3375_v39, %v3379_v10 }
 0x22d   : > { %6420 = vmatprep.mubr.msk.bf16.mxu0 %vm2370_vm11, %v9305_v47  ;;  %v2282_v5 = vsel %vm1285_vm6, %v2266_v48, %v9151_v1  ;;  %v5889_v20 = vcombine.low %v5817_v34, %v9188_v32  ;;  %v6046_v1 = vcombine.low %v5974_v58, %v9210_v24  ;;  %v9349_v32 = vld [vmem:[%s7699_s8 + $0x88] sm:$0xf]  ;;  %v5649_v24 = vld [vmem:[%s7691_s4 + $0x6c] sm:$0xe]  ;;  %v3528_v14 = vsel %vm1285_vm6, %v3512_v6, %v9162_v15 }
 0x22e   : > { %v9328_v27 = vpop.permute.xlu1 %1643  ;;  %v3462_v53 = vpop.permute.xlu0 %3461  ;;  %v2298_v57 = vsel %vm1302_vm7, %v2282_v5, %v9173_v41  ;;  %v3392_v41 = vsel %vm544_vm1, %v3387_v42, %v3391_v40  ;;  %v9378_v37 = vcombine.low %v6077_v55, %v9349_v32  ;;  %v3544_v2 = vsel %vm1302_vm7, %v3528_v14, %v9193_v16  ;;  %v9417_v48 = vld [vmem:[%s7699_s8 + $0x80] ss:$0 sps:$4 sm:$0x11]  }
 0x22f   : > { %v9334_v21 = vsel %vm1353_vm10, %v3574_v19, %v3462_v53  ;;  %v2314_v62 = vsel %vm1319_vm8, %v2298_v57, %v9218_v51  ;;  %v2207_v51 = vsel %vm681_vm0, %v2205_v44, %v2206_v56  ;;  %v2208_v22 = vrot.slane %v5889_v20, 1  ;;  %v7062_v44 = vld [vmem:[%s7691_s4 + $0x5c] ss:$0 sps:$4 sm:$0x11]  }
 0x230   : > { %10924 = vst [vmem:[#allocation60_spill] sm:$0xff] %v9334_v21  ;;  %3271 = vrot.lane.b32.xlu1 %v9240_v28, %s7362_s16  ;;  %2159 = vrot.lane.b32.xlu0 %v2134_v45, %s7363_s17  ;;  %v6075_v28 = vld [vmem:[%s7699_s8 + $0x78] sm:$0xf]  ;;  %v2330_v23 = vsel %vm1336_vm9, %v2314_v62, %v9274_v25  ;;  %10927 = vst [vmem:[#allocation66_spill] sm:$0xff] %v9378_v37  ;;  %v2209_v15 = vrot.slane %v9235_v63, 1  ;;  %v3451_v39 = vrot.slane %v6046_v1, 1 }
 0x231   : > { %6486 = vmatprep.mubr.msk.bf16.mxu1 %vm2370_vm11, %v9334_v21  ;;  %v7047_v25 = vld [vmem:[#allocation8 + $0x10] ss:$0 sps:$4 sm:$0x33]   ;;  %v9386_v10 = vcombine.low %v6075_v28, %v9360_v35  ;;  %v3560_v31 = vsel %vm1319_vm8, %v3544_v2, %v9245_v29  ;;  %v6047_v16 = vcombine.low %v5975_v61, %v9224_v18  ;;  %v4123_v42 = vshll.u32 %v9378_v37, 16  ;;  %v9437_v62 = vld [vmem:[%s7699_s8 + $0x94] sm:$0xf] }
 0x232   : > { %v9367_v43 = vpop.permute.xlu1 %2889  ;;  %v2218_v59 = vpop.permute.xlu0 %2217  ;;  %6607 = vmatprep.subr.msk.bf16.mxu0 %vm2387_vm2, %v7047_v25  ;;  %v2520_v36 = vsel %vm2387_vm2, %v7047_v25, 0  ;;  %v7060_v63 = vld [vmem:[%s7691_s4 + $0x70] sm:$0xf]  ;;  %v3576_v29 = vsel %vm1336_vm9, %v3560_v31, %v9298_v49  ;;  %6610 = vmatprep.subr.msk.bf16.mxu1 %vm2387_vm2, %v7047_v25  ;;  %v10930_v40 = vcombine.low %v9243_v26, %v9261_v12  ;;  %v2210_v49 = vsel %vm681_vm0, %v2208_v22, %v2209_v15  ;;  %v9445_v61 = vld [vmem:[%s7699_s8 + $0x88] sm:$0xf] }
 0x233   : > { %v9375_v45 = vsel %vm1353_vm10, %v2330_v23, %v2218_v59  ;;  %10928 = vst [vmem:[#allocation106_spill] sm:$0xff] %v9386_v10  ;;  %v5721_v38 = vcombine.low %v5649_v24, %v7060_v63  ;;  %6437 = vmatpush3.bf16.msra.mxu0 %v2520_v36  ;;  %6503 = vmatpush3.bf16.msra.mxu1 %v2520_v36  ;;  %v4111_v19 = vshll.u32 %v9386_v10, 16  ;;  %v1210_v56 = vrot.slane %v7062_v44, 1  ;;  %v7063_v24 = vld [vmem:[%s7691_s4 + $0x74] ss:$0 sps:$4 sm:$0x11]  }
 0x234   : > { %10926 = vst [vmem:[#allocation63_spill] sm:$0xff] %v9375_v45  ;;  %2161 = vrot.lane.b32.xlu1 %v2146_v52, %s7363_s17  ;;  %3405 = vrot.lane.b32.xlu0 %v3380_v0, %s7363_s17  ;;  %v7061_v52 = vld [vmem:[%s7691_s4 + $0x64] sm:$0xf]  ;;  %v1209_v58 = vrot.slane %v10930_v40, 1  ;;  %v3453_v53 = vsel %vm681_vm0, %v3451_v39, %v3452_v11  ;;  %v3454_v26 = vrot.slane %v6047_v16, 1  ;;  %v3455_v12 = vrot.slane %v9269_v46, 1 }
 0x235   : > { %6421 = vmatmul.mubr.msk.bf16.gmra.mrb[4].mxu0 %vm2370_vm11, %v9375_v45  ;;  %v5720_v34 = vcombine.low %v5648_v33, %v7061_v52  ;;  %v1215_v5 = vrot.slane %v5721_v38, 1  ;;  %v4121_v3 = vshrl.u32 %v9378_v37, 16  ;;  %v4125_v13 = vrot.slane %v4123_v42, 1  ;;  %v7064_v23 = vld [vmem:[%s7691_s4 + $0x68] ss:$0 sps:$4 sm:$0x11]  }
 0x236   : > { %v9400_v17 = vpop.permute.xlu1 %1645  ;;  %v3464_v8 = vpop.permute.xlu0 %3463  ;;  %v4128_v57 = vshll.u32 %v9407_v60, 16  ;;  %v4109_v1 = vshrl.u32 %v9386_v10, 16  ;;  %v4113_v46 = vrot.slane %v4111_v19, 1  ;;  %v4116_v55 = vshll.u32 %v9417_v48, 16  ;;  %v6100_v22 = vld [vmem:[%s7699_s8 + $0x84] sm:$0xe] }
 0x237   : > { %v9404_v18 = vsel %vm1353_vm10, %v3576_v29, %v3464_v8  ;;  %v1212_v0 = vrot.slane %v5720_v34, 1  ;;  %v3456_v28 = vsel %vm681_vm0, %v3454_v26, %v3455_v12  ;;  %v1216_v6 = vrot.slane %v7063_v24, 1  ;;  %v6099_v25 = vld [vmem:[%s7699_s8 + $0x78] sm:$0xe]  ;;  %v6168_v37 = vld [vmem:[%s7699_s8 + $0xcc] sm:$0xe] }
 0x238   : > { %10929 = vst [vmem:[#allocation107_spill] sm:$0xff] %v9404_v18  ;;  %3407 = vrot.lane.b32.xlu1 %v3392_v41, %s7363_s17  ;;  %2223 = vrot.lane.b32.xlu0 %v2207_v51, %s7364_s12  ;;  %v1211_v41 = vsel %vm681_vm0, %v1209_v58, %v1210_v56  ;;  %v1213_v59 = vrot.slane %v7064_v23, 1  ;;  %v6107_v51 = vld [vmem:[%s7699_s8 + $0x84] sm:$0xf]  ;;  %v4126_v2 = vor.u32 %v4125_v13, %v4121_v3  ;;  %v4130_v39 = vrot.slane %v4128_v57, 1  ;;  %s6304_s4 = sshll.u32 %s7337_s25, 7 }
 0x239   : > { %6487 = vmatmul.mubr.msk.bf16.gmra.mrb[4].mxu1 %vm2370_vm11, %v9404_v18  ;;  %v9454_v15 = vcombine.low %v6109_v9, %v9437_v62  ;;  %v4114_v31 = vor.u32 %v4113_v46, %v4109_v1  ;;  %v4118_v11 = vrot.slane %v4116_v55, 1  ;;  %v6195_v16 = vcombine.low %v6107_v51, %v9445_v61  ;;  %v9468_v8 = vld [vmem:[%s7699_s8 + $0x98] ss:$0 sps:$4 sm:$0x11]   ;;  %v6141_v13 = vld [vmem:[%s7699_s8 + $0x9c] sm:$0xf]  ;;  %s5368_s27 = sadd.s32 %s6343_s15, %s6304_s4 }
 0x23a   : > { %v9425_v20 = vpop.permute.xlu1 %2891  ;;  %v9427_v4 = vpop.permute.xlu0 %1707  ;;  %v1217_v36 = vsel %vm681_vm0, %v1215_v5, %v1216_v6  ;;  %v1214_v63 = vsel %vm681_vm0, %v1212_v0, %v1213_v59  ;;  %v6188_v38 = vcombine.low %v6100_v22, %v9349_v32  ;;  %v6187_v52 = vcombine.low %v6099_v25, %v9360_v35  ;;  %v9491_v57 = vld [vmem:[%s7699_s8 + $0xa0] sm:$0xf]  ;;  %v6132_v55 = vld [vmem:[%s7699_s8 + $0x90] sm:$0xe]  ;;  %v6131_v6 = vld [vmem:[%s7699_s8 + $0x84] sm:$0xe] }
 0x23b   : > { %v4379_v42 = vshll.u32 %v9454_v15, 16  ;;  %v4131_v40 = vsel %vm544_vm1, %v4126_v2, %v4130_v39  ;;  %v4119_v58 = vsel %vm544_vm1, %v4114_v31, %v4118_v11  ;;  %v4367_v32 = vshll.u32 %v6195_v16, 16  ;;  %v6139_v9 = vld [vmem:[%s7699_s8 + $0x90] sm:$0xf]  ;;  %v7056_v59 = vld [vmem:[#allocation8 + $0x28] sm:$0xff]   ;;  %s6305_s3 = sshll.u32 %s5368_s27, 6 }
 0x23c   : > { %2225 = vrot.lane.b32.xlu1 %v2210_v49, %s7364_s12  ;;  %3469 = vrot.lane.b32.xlu0 %v3453_v53, %s7364_s12  ;;  %v9476_v49 = vld [vmem:[%s7699_s8 + $0x8c] ss:$0 sps:$4 sm:$0x11]   ;;  %v4247_v35 = vrot.slane %v6188_v38, 1  ;;  %v4248_v19 = vrot.slane %v9407_v60, 1  ;;  %v4244_v53 = vrot.slane %v6187_v52, 1  ;;  %v9506_v23 = vcombine.low %v6141_v13, %v9491_v57 }
 0x23d   : > { %v4245_v44 = vrot.slane %v9417_v48, 1  ;;  %v4377_v12 = vshrl.u32 %v9454_v15, 16  ;;  %v4381_v5 = vrot.slane %v4379_v42, 1  ;;  %v4384_v0 = vshll.u32 %v9468_v8, 16  ;;  %6454 = vmatprep.subr.bf16.mxu0 %v7056_v59  ;;  %6520 = vmatprep.subr.bf16.mxu1 %v7056_v59  ;;  %v6079_v38 = vld [vmem:[%s7699_s8 + $0x90] sm:$0xf] }
 0x23e   : > { %v9447_v33 = vpop.permute.xlu1 %1709  ;;  %v9449_v14 = vpop.permute.xlu0 %2953  ;;  %v4365_v3 = vshrl.u32 %v6195_v16, 16  ;;  %v4369_v60 = vrot.slane %v4367_v32, 1  ;;  %v4372_v48 = vshll.u32 %v9476_v49, 16  ;;  %v4249_v1 = vsel %vm681_vm0, %v4247_v35, %v4248_v19  ;;  %v9521_v52 = vld [vmem:[%s7699_s8 + $0x94] sm:$0xf] }
 0x23f   : > { %v4246_v46 = vsel %vm681_vm0, %v4244_v53, %v4245_v44  ;;  %v4382_v51 = vor.u32 %v4381_v5, %v4377_v12  ;;  %v4386_v22 = vrot.slane %v4384_v0, 1  ;;  %v6212_v25 = vcombine.low %v6132_v55, %v9437_v62  ;;  %v9524_v62 = vld [vmem:[%s7699_s8 + $0xa4] ss:$0 sps:$4 sm:$0x11]   ;;  %v10950_v21 = vld [vmem:[#allocation27_spill] sm:$0xff] }
 0x240   : > { %1228 = vrot.lane.b32.xlu1 %v1211_v41, %s7364_s12  ;;  %3471 = vrot.lane.b32.xlu0 %v3456_v28, %s7364_s12  ;;  %v9498_v41 = vld [vmem:[%s7699_s8 + $0x94] sm:$0xf]  ;;  %v4370_v39 = vor.u32 %v4369_v60, %v4365_v3  ;;  %v4374_v31 = vrot.slane %v4372_v48, 1  ;;  %v6211_v11 = vcombine.low %v6131_v6, %v9445_v61  ;;  %v4635_v42 = vshll.u32 %v9506_v23, 16  ;;  %v6106_v10 = vld [vmem:[%s7699_s8 + $0xcc] sm:$0xe] }
 0x241   : > { %v9512_v2 = vcombine.low %v6139_v9, %v9498_v41  ;;  %v4387_v61 = vsel %vm544_vm1, %v4382_v51, %v4386_v22  ;;  %v9533_v32 = vld [vmem:[%s7699_s8 + $0x98] ss:$0 sps:$4 sm:$0x11]   ;;  %v4501_v44 = vrot.slane %v9476_v49, 1  ;;  %v9539_v12 = vcombine.low %v6079_v38, %v9521_v52  ;;  %v6163_v22 = vld [vmem:[%s7699_s8 + $0x90] sm:$0xe] }
 0x242   : > { %v9463_v34 = vpop.permute.xlu1 %2955  ;;  %v9465_v29 = vpop.permute.xlu0 %1763  ;;  %v4375_v19 = vsel %vm544_vm1, %v4370_v39, %v4374_v31  ;;  %v4500_v53 = vrot.slane %v6211_v11, 1  ;;  %v4637_v3 = vrot.slane %v4635_v42, 1  ;;  %v4640_v60 = vshll.u32 %v9524_v62, 16  ;;  %v9552_v48 = vld [vmem:[%s7699_s8 + $0x98] ss:$0 sps:$4 sm:$0x11]  }
 0x243   : > { %v4623_v35 = vshll.u32 %v9512_v2, 16  ;;  %10931 = vst [vmem:[#allocation108_spill] sm:$0xff] %v9539_v12  ;;  %v4621_v49 = vshrl.u32 %v9512_v2, 16  ;;  %v4135_v6 = vshll.u32 %v9539_v12, 16  ;;  %v4140_v31 = vshll.u32 %v9552_v48, 16  ;;  %v10948_v18 = vld [vmem:[#allocation26_spill] sm:$0xff] }
 0x244   : > { %1232 = vrot.lane.b32.xlu1 %v1217_v36, %s7364_s12  ;;  %1230 = vrot.lane.b32.xlu0 %v1214_v63, %s7364_s12  ;;  %v4502_v9 = vsel %vm681_vm0, %v4500_v53, %v4501_v44  ;;  %v4642_v39 = vrot.slane %v4640_v60, 1  ;;  %v6164_v11 = vld [vmem:[%s7699_s8 + $0x9c] sm:$0xe]  ;;  %v6113_v53 = vld [vmem:[%s7699_s8 + $0xa8] sm:$0xf] }
 0x245   : > { %v4625_v13 = vrot.slane %v4623_v35, 1  ;;  %v4137_v35 = vrot.slane %v4135_v6, 1  ;;  %v9581_v44 = vld [vmem:[%s7699_s8 + $0xac] sm:$0xf]  ;;  %v6111_v60 = vld [vmem:[%s7699_s8 + $0x9c] sm:$0xf] }
 0x246   : > { %v9480_v56 = vpop.permute.xlu1 %1765  ;;  %v9482_v26 = vpop.permute.xlu0 %3009 }
 0x247   : > { %v4626_v38 = vor.u32 %v4625_v13, %v4621_v49  ;;  %v9590_v49 = vld [vmem:[%s7699_s8 + $0xa0] sm:$0xf] }
 0x248   : > { %4206 = vrot.lane.b32.xlu1 %v4131_v40, %s7358_s6  ;;  %4204 = vrot.lane.b32.xlu0 %v4119_v58, %s7358_s6  ;;  %v4503_v40 = vrot.slane %v6212_v25, 1  ;;  %v4504_v58 = vrot.slane %v9468_v8, 1  ;;  %v4633_v8 = vshrl.u32 %v9506_v23, 16 }
 0x24a   : > { %v9500_v28 = vpop.permute.xlu1 %3011  ;;  %v9502_v24 = vpop.permute.xlu0 %1899  ;;  %v4505_v55 = vsel %vm681_vm0, %v4503_v40, %v4504_v58  ;;  %v4638_v25 = vor.u32 %v4637_v3, %v4633_v8  ;;  %v4133_v58 = vshrl.u32 %v9539_v12, 16  ;;  %v6236_v3 = vcombine.low %v6164_v11, %v9491_v57  ;;  %v6102_v57 = vld [vmem:[%s7699_s8 + $0x9c] sm:$0xe] }
 0x24b   : > { %v9603_v11 = vcombine.low %v6113_v53, %v9581_v44 }
 0x24c   : > { %4270 = vrot.lane.b32.xlu1 %v4249_v1, %s7357_s29  ;;  %4268 = vrot.lane.b32.xlu0 %v4246_v46, %s7357_s29  ;;  %v4628_v1 = vshll.u32 %v9533_v32, 16  ;;  %v4643_v13 = vsel %vm544_vm1, %v4638_v25, %v4642_v39  ;;  %v4138_v25 = vor.u32 %v4137_v35, %v4133_v58 }
 0x24d   : > { %v4403_v35 = vshll.u32 %v9603_v11, 16 }
 0x24e   : > { %v9515_v36 = vpop.permute.xlu1 %1901  ;;  %v9517_v63 = vpop.permute.xlu0 %3145  ;;  %v4630_v42 = vrot.slane %v4628_v1, 1  ;;  %v4142_v1 = vrot.slane %v4140_v31, 1  ;;  %v4757_v31 = vrot.slane %v9533_v32, 1 }
 0x250   : > { %4326 = vrot.lane.b32.xlu1 %v9454_v15, %s7359_s7  ;;  %4324 = vrot.lane.b32.xlu0 %v6195_v16, %s7359_s7  ;;  %v6081_v15 = vld [vmem:[%s7699_s8 + $0x9c] sm:$0xf]  ;;  %v9543_v16 = vld [vmem:[%s7699_s8 + $0xa0] sm:$0xf] }
 0x251   : > { %v9559_v46 = vcombine.low %v6081_v15, %v9543_v16 }
 0x252   : > { %v9545_v5 = vpop.permute.xlu1 %3147  ;;  %v9547_v0 = vpop.permute.xlu0 %1963 }
 0x253   : > { %10932 = vst [vmem:[#allocation109_spill] sm:$0xff] %v9559_v46  ;;  %v4147_v40 = vshll.u32 %v9559_v46, 16 }
 0x254   : > { %4462 = vrot.lane.b32.xlu1 %v4387_v61, %s7360_s18  ;;  %4460 = vrot.lane.b32.xlu0 %v4375_v19, %s7360_s18  ;;  %v9574_v61 = vld [vmem:[%s7699_s8 + $0xa4] ss:$0 sps:$4 sm:$0x11]   ;;  %v6235_v19 = vcombine.low %v6163_v22, %v9498_v41  ;;  %v4631_v41 = vsel %vm544_vm1, %v4626_v38, %v4630_v42  ;;  %v6101_v22 = vld [vmem:[%s7699_s8 + $0x90] sm:$0xe]  ;;  %v4759_v38 = vrot.slane %v6236_v3, 1 }
 0x255   : > { %v4152_v6 = vshll.u32 %v9574_v61, 16  ;;  %v4760_v42 = vrot.slane %v9524_v62, 1  ;;  %v6189_v53 = vcombine.low %v6101_v22, %v9521_v52  ;;  %v9622_v3 = vld [vmem:[%s7699_s8 + $0xb0] ss:$0 sps:$4 sm:$0x11]  }
 0x256   : > { %v9564_v59 = vpop.permute.xlu1 %1965  ;;  %v9566_v51 = vpop.permute.xlu0 %3209  ;;  %v4756_v39 = vrot.slane %v6235_v19, 1  ;;  %v4143_v19 = vsel %vm544_vm1, %v4138_v25, %v4142_v1  ;;  %v10933_v1 = vld [vmem:[#allocation93_spill] sm:$0xff]  ;;  %v4401_v25 = vshrl.u32 %v9603_v11, 16 }
 0x257   : > { %v4154_v58 = vrot.slane %v4152_v6, 1  ;;  %v4761_v52 = vsel %vm681_vm0, %v4759_v38, %v4760_v42  ;;  %v4251_v6 = vrot.slane %v9552_v48, 1  ;;  %v4408_v48 = vshll.u32 %v9622_v3, 16 }
 0x258   : > { %4526 = vrot.lane.b32.xlu1 %v4505_v55, %s7361_s13  ;;  %4524 = vrot.lane.b32.xlu0 %v4502_v9, %s7361_s13  ;;  %v4145_v55 = vshrl.u32 %v9559_v46, 16  ;;  %v4149_v9 = vrot.slane %v4147_v40, 1  ;;  %v6190_v40 = vcombine.low %v6102_v57, %v9543_v16  ;;  %v2236_v57 = vsel %vm1234_vm3, %v10933_v1, %v9328_v27  ;;  %v6145_v1 = vld [vmem:[%s7699_s8 + $0xb4] sm:$0xf] }
 0x25a   : > { %v9583_v15 = vpop.permute.xlu1 %3211  ;;  %v9585_v8 = vpop.permute.xlu0 %2019  ;;  %v4150_v32 = vor.u32 %v4149_v9, %v4145_v55  ;;  %v4254_v55 = vrot.slane %v9574_v61, 1  ;;  %v4250_v9 = vrot.slane %v6189_v53, 1  ;;  %v2252_v61 = vsel %vm1251_vm4, %v2236_v57, %v9427_v4  ;;  %v9664_v57 = vld [vmem:[%s7699_s8 + $0xb8] sm:$0xf] }
 0x25b   : > { %v2268_v38 = vsel %vm1268_vm5, %v2252_v61, %v9465_v29  ;;  %v9672_v61 = vld [vmem:[%s7699_s8 + $0xac] sm:$0xf] }
 0x25c   : > { %4582 = vrot.lane.b32.xlu1 %v9506_v23, %s7362_s16  ;;  %4580 = vrot.lane.b32.xlu0 %v9512_v2, %s7362_s16  ;;  %v9607_v23 = vcombine.low %v6111_v60, %v9590_v49  ;;  %v4758_v60 = vsel %vm681_vm0, %v4756_v39, %v4757_v31  ;;  %v4155_v22 = vsel %vm544_vm1, %v4150_v32, %v4154_v58  ;;  %v4405_v39 = vrot.slane %v4403_v35, 1  ;;  %v6134_v35 = vld [vmem:[%s7699_s8 + $0xa8] sm:$0xe] }
 0x25d   : > { %v2284_v32 = vsel %vm1285_vm6, %v2268_v38, %v9502_v24  ;;  %v4252_v58 = vsel %vm681_vm0, %v4250_v9, %v4251_v6  ;;  %v4410_v9 = vrot.slane %v4408_v48, 1  ;;  %v6214_v38 = vcombine.low %v6134_v35, %v9581_v44  ;;  %v6083_v35 = vld [vmem:[%s7699_s8 + $0xa8] sm:$0xf] }
 0x25e   : > { %v9609_v46 = vpop.permute.xlu1 %2021  ;;  %v9611_v2 = vpop.permute.xlu0 %3265  ;;  %v4391_v62 = vshll.u32 %v9607_v23, 16  ;;  %v4389_v31 = vshrl.u32 %v9607_v23, 16  ;;  %v4406_v24 = vor.u32 %v4405_v39, %v4401_v25 }
 0x260   : > { %4718 = vrot.lane.b32.xlu1 %v4643_v13, %s7363_s17  ;;  %4716 = vrot.lane.b32.xlu0 %v4631_v41, %s7363_s17  ;;  %v9629_v13 = vld [vmem:[%s7699_s8 + $0xa4] ss:$0 sps:$4 sm:$0x11]   ;;  %v4253_v41 = vrot.slane %v6190_v40, 1  ;;  %v4393_v27 = vrot.slane %v4391_v62, 1  ;;  %v2300_v62 = vsel %vm1302_vm7, %v2284_v32, %v9547_v0 }
 0x261   : > { %v4396_v53 = vshll.u32 %v9629_v13, 16 }
 0x262   : > { %v9625_v12 = vpop.permute.xlu1 %3267  ;;  %v2156_v16 = vpop.permute.xlu0 %2155  ;;  %v4255_v4 = vsel %vm681_vm0, %v4253_v41, %v4254_v55  ;;  %v2316_v55 = vsel %vm1319_vm8, %v2300_v62, %v9585_v8  ;;  %v4394_v6 = vor.u32 %v4393_v27, %v4389_v31  ;;  %v9687_v31 = vcombine.low %v6145_v1, %v9664_v57  ;;  %v10938_v62 = vld [vmem:[#allocation101_spill] sm:$0xff]  ;;  %v9736_v1 = vld [vmem:[%s7699_s8 + $0xb0] ss:$0 sps:$4 sm:$0x11]  }
 0x263   : > { %v4398_v39 = vrot.slane %v4396_v53, 1 }
 0x264   : > { %4208 = vrot.lane.b32.xlu1 %v4143_v19, %s7358_s6  ;;  %4780 = vrot.lane.b32.xlu0 %v4758_v60, %s7364_s12  ;;  %v6133_v19 = vld [vmem:[%s7699_s8 + $0x9c] sm:$0xe] }
 0x265   : > { %v10934_v60 = vld [vmem:[#allocation96_spill] sm:$0xff]  ;;  %v6213_v48 = vcombine.low %v6133_v19, %v9590_v49 }
 0x266   : > { %v9646_v42 = vpop.permute.xlu1 %2157  ;;  %v3402_v40 = vpop.permute.xlu0 %3401  ;;  %v3482_v29 = vsel %vm1234_vm3, %v10934_v60, %v9367_v43  ;;  %v6143_v43 = vld [vmem:[%s7699_s8 + $0xa8] sm:$0xf]  ;;  %v9714_v19 = vld [vmem:[%s7699_s8 + $0xac] sm:$0xf] }
 0x267   : > { %v3498_v41 = vsel %vm1251_vm4, %v3482_v29, %v9449_v14  ;;  %v4659_v29 = vshll.u32 %v9687_v31, 16 }
 0x268   : > { %4210 = vrot.lane.b32.xlu1 %v4155_v22, %s7358_s6  ;;  %4782 = vrot.lane.b32.xlu0 %v4761_v52, %s7364_s12  ;;  %v3514_v0 = vsel %vm1268_vm5, %v3498_v41, %v9482_v26  ;;  %v2332_v52 = vsel %vm1336_vm9, %v2316_v55, %v2156_v16  ;;  %v10936_v26 = vld [vmem:[#allocation99_spill] sm:$0xff] }
 0x269   : > { %v3530_v14 = vsel %vm1285_vm6, %v3514_v0, %v9517_v63  ;;  %v2238_v16 = vsel %vm1234_vm3, %v10936_v26, %v9400_v17  ;;  %v9697_v63 = vcombine.low %v6143_v43, %v9672_v61  ;;  %v4411_v17 = vsel %vm544_vm1, %v4406_v24, %v4410_v9  ;;  %v9751_v9 = vld [vmem:[%s7699_s8 + $0xb8] sm:$0xf] }
 0x26a   : > { %v9677_v22 = vpop.permute.xlu1 %3403  ;;  %v2220_v25 = vpop.permute.xlu0 %2219  ;;  %v3546_v44 = vsel %vm1302_vm7, %v3530_v14, %v9566_v51  ;;  %v2254_v49 = vsel %vm1251_vm4, %v2238_v16, %v9447_v33  ;;  %v4510_v33 = vrot.slane %v9622_v3, 1  ;;  %v3484_v3 = vsel %vm1234_vm3, %v10938_v62, %v9425_v20 }
 0x26b   : > { %v9683_v8 = vsel %vm1353_vm10, %v2332_v52, %v2220_v25  ;;  %v3562_v27 = vsel %vm1319_vm8, %v3546_v44, %v9611_v2  ;;  %v2270_v51 = vsel %vm1268_vm5, %v2254_v49, %v9480_v56  ;;  %v4399_v56 = vsel %vm544_vm1, %v4394_v6, %v4398_v39 }
 0x26c   : > { %10935 = vst [vmem:[#allocation93_spill] sm:$0xff] %v9683_v8  ;;  %4274 = vrot.lane.b32.xlu1 %v4255_v4, %s7357_s29  ;;  %4272 = vrot.lane.b32.xlu0 %v4252_v58, %s7357_s29  ;;  %v3578_v53 = vsel %vm1336_vm9, %v3562_v27, %v3402_v40  ;;  %v4509_v58 = vrot.slane %v6214_v38, 1  ;;  %v2286_v2 = vsel %vm1285_vm6, %v2270_v51, %v9515_v36  ;;  %v9723_v40 = vld [vmem:[%s7699_s8 + $0xbc] ss:$0 sps:$4 sm:$0x11]   ;;  %v4506_v36 = vrot.slane %v6213_v48, 1 }
 0x26d   : > { %6424 = vmatprep.mubr.msk.bf16.mxu0 %vm2370_vm11, %v9683_v8  ;;  %v2302_v24 = vsel %vm1302_vm7, %v2286_v2, %v9564_v59  ;;  %v4647_v41 = vshll.u32 %v9697_v63, 16  ;;  %v3500_v55 = vsel %vm1251_vm4, %v3484_v3, %v9463_v34  ;;  %v4507_v59 = vrot.slane %v9629_v13, 1  ;;  %v9773_v48 = vld [vmem:[%s7699_s8 + $0xb0] ss:$0 sps:$4 sm:$0x11]  }
 0x26e   : > { %v9709_v32 = vpop.permute.xlu1 %1647  ;;  %v3466_v4 = vpop.permute.xlu0 %3465  ;;  %v2318_v20 = vsel %vm1319_vm8, %v2302_v24, %v9609_v46  ;;  %v3516_v6 = vsel %vm1268_vm5, %v3500_v55, %v9500_v28  ;;  %v4511_v0 = vsel %vm681_vm0, %v4509_v58, %v4510_v33  ;;  %v4657_v13 = vshrl.u32 %v9687_v31, 16  ;;  %v6165_v51 = vld [vmem:[%s7699_s8 + $0xa8] sm:$0xe]  ;;  %v9794_v58 = vld [vmem:[%s7699_s8 + $0xbc] ss:$0 sps:$4 sm:$0x11]  }
 0x26f   : > { %v9719_v60 = vsel %vm1353_vm10, %v3578_v53, %v3466_v4  ;;  %v2334_v34 = vsel %vm1336_vm9, %v2318_v20, %v9646_v42  ;;  %v3532_v52 = vsel %vm1285_vm6, %v3516_v6, %v9545_v5  ;;  %v4661_v39 = vrot.slane %v4659_v29, 1  ;;  %v6166_v3 = vld [vmem:[%s7699_s8 + $0xb4] sm:$0xe]  ;;  %v6117_v20 = vld [vmem:[%s7699_s8 + $0xc0] sm:$0xf] }
 0x270   : > { %10937 = vst [vmem:[#allocation96_spill] sm:$0xff] %v9719_v60  ;;  %4330 = vrot.lane.b32.xlu1 %v9603_v11, %s7359_s7  ;;  %4328 = vrot.lane.b32.xlu0 %v9607_v23, %s7359_s7  ;;  %v9747_v11 = vcombine.low %v6083_v35, %v9714_v19  ;;  %v6085_v23 = vld [vmem:[%s7699_s8 + $0xb4] sm:$0xf]  ;;  %v4664_v38 = vshll.u32 %v9723_v40, 16  ;;  %v3548_v28 = vsel %vm1302_vm7, %v3532_v52, %v9583_v15  ;;  %v4645_v42 = vshrl.u32 %v9697_v63, 16 }
 0x271   : > { %6490 = vmatprep.mubr.msk.bf16.mxu1 %vm2370_vm11, %v9719_v60  ;;  %v4649_v14 = vrot.slane %v4647_v41, 1  ;;  %v9776_v5 = vcombine.low %v6085_v23, %v9751_v9  ;;  %v3564_v26 = vsel %vm1319_vm8, %v3548_v28, %v9625_v12  ;;  %v4508_v15 = vsel %vm681_vm0, %v4506_v36, %v4507_v59  ;;  %v9813_v59 = vld [vmem:[%s7699_s8 + $0xc4] sm:$0xf] }
 0x272   : > { %10939 = vst [vmem:[#allocation99_spill] sm:$0xff] %v9747_v11  ;;  %v9757_v43 = vpop.permute.xlu1 %2893  ;;  %v2222_v46 = vpop.permute.xlu0 %2221  ;;  %v4652_v16 = vshll.u32 %v9736_v1, 16  ;;  %v4159_v44 = vshll.u32 %v9747_v11, 16  ;;  %v3580_v49 = vsel %vm1336_vm9, %v3564_v26, %v9677_v22  ;;  %v4662_v12 = vor.u32 %v4661_v39, %v4657_v13  ;;  %v6115_v39 = vld [vmem:[%s7699_s8 + $0xb4] sm:$0xf] }
 0x273   : > { %v9764_v25 = vsel %vm1353_vm10, %v2334_v34, %v2222_v46  ;;  %10941 = vst [vmem:[#allocation110_spill] sm:$0xff] %v9776_v5  ;;  %v4666_v4 = vrot.slane %v4664_v38, 1  ;;  %v4650_v33 = vor.u32 %v4649_v14, %v4645_v42  ;;  %v4164_v22 = vshll.u32 %v9773_v48, 16  ;;  %v9825_v38 = vld [vmem:[%s7699_s8 + $0xb8] sm:$0xf]  ;;  %v10947_v60 = vld [vmem:[#allocation36_spill] sm:$0xff] }
 0x274   : > { %10940 = vst [vmem:[#allocation101_spill] sm:$0xff] %v9764_v25  ;;  %4466 = vrot.lane.b32.xlu1 %v4411_v17, %s7360_s18  ;;  %4464 = vrot.lane.b32.xlu0 %v4399_v56, %s7360_s18  ;;  %v4171_v35 = vshll.u32 %v9776_v5, 16  ;;  %v4654_v2 = vrot.slane %v4652_v16, 1  ;;  %v4157_v56 = vshrl.u32 %v9747_v11, 16  ;;  %v4161_v29 = vrot.slane %v4159_v44, 1 }
 0x275   : > { %6425 = vmatmul.mubr.msk.bf16.gmra.mrb[8].mxu0 %vm2370_vm11, %v9764_v25  ;;  %v6237_v62 = vcombine.low %v6165_v51, %v9672_v61  ;;  %v4667_v41 = vsel %vm544_vm1, %v4662_v12, %v4666_v4  ;;  %v4176_v55 = vshll.u32 %v9794_v58, 16  ;;  %v4166_v61 = vrot.slane %v4164_v22, 1  ;;  %v6103_v42 = vld [vmem:[%s7699_s8 + $0xa8] sm:$0xe] }
 0x276   : > { %v9787_v27 = vpop.permute.xlu1 %1649  ;;  %v3468_v17 = vpop.permute.xlu0 %3467  ;;  %v4169_v23 = vshrl.u32 %v9776_v5, 16  ;;  %v4173_v6 = vrot.slane %v4171_v35, 1  ;;  %v6238_v34 = vcombine.low %v6166_v3, %v9664_v57  ;;  %v4655_v46 = vsel %vm544_vm1, %v4650_v33, %v4654_v2  ;;  %v9850_v22 = vld [vmem:[%s7699_s8 + $0xc8] ss:$0 sps:$4 sm:$0x11]  }
 0x277   : > { %v9791_v53 = vsel %vm1353_vm10, %v3580_v49, %v3468_v17  ;;  %v4762_v13 = vrot.slane %v6237_v62, 1  ;;  %v4763_v52 = vrot.slane %v9736_v1, 1  ;;  %v9834_v14 = vcombine.low %v6117_v20, %v9813_v59  ;;  %v9857_v35 = vld [vmem:[%s7699_s8 + $0xbc] ss:$0 sps:$4 sm:$0x11]  }
 0x278   : > { %10942 = vst [vmem:[#allocation111_spill] sm:$0xff] %v9791_v53  ;;  %4530 = vrot.lane.b32.xlu1 %v4511_v0, %s7361_s13  ;;  %4528 = vrot.lane.b32.xlu0 %v4508_v15, %s7361_s13  ;;  %v4162_v0 = vor.u32 %v4161_v29, %v4157_v56  ;;  %v4178_v57 = vrot.slane %v4176_v55, 1  ;;  %v4174_v26 = vor.u32 %v4173_v6, %v4169_v23  ;;  %v4765_v1 = vrot.slane %v6238_v34, 1  ;;  %v6149_v6 = vld [vmem:[%s7699_s8 + $0xcc] sm:$0xf] }
 0x279   : > { %6491 = vmatmul.mubr.msk.bf16.gmra.mrb[8].mxu1 %vm2370_vm11, %v9791_v53  ;;  %v4766_v15 = vrot.slane %v9723_v40, 1  ;;  %v6199_v16 = vcombine.low %v6115_v39, %v9825_v38  ;;  %v4764_v49 = vsel %vm681_vm0, %v4762_v13, %v4763_v52  ;;  %v6191_v51 = vcombine.low %v6103_v42, %v9714_v19  ;;  %v9869_v34 = vld [vmem:[%s7699_s8 + $0xd0] sm:$0xf]  ;;  %v6136_v39 = vld [vmem:[%s7699_s8 + $0xc0] sm:$0xe] }
 0x27a   : > { %v9805_v24 = vpop.permute.xlu1 %2895  ;;  %v9807_v36 = vpop.permute.xlu0 %1711  ;;  %v4167_v44 = vsel %vm544_vm1, %v4162_v0, %v4166_v61  ;;  %v4427_v33 = vshll.u32 %v9834_v14, 16  ;;  %v4179_v40 = vsel %vm544_vm1, %v4174_v26, %v4178_v57  ;;  %v4260_v56 = vrot.slane %v9794_v58, 1  ;;  %v9876_v0 = vld [vmem:[%s7699_s8 + $0xc4] sm:$0xf]  ;;  %v6135_v57 = vld [vmem:[%s7699_s8 + $0xb4] sm:$0xe] }
 0x27b   : > { %v4415_v19 = vshll.u32 %v6199_v16, 16  ;;  %v4256_v29 = vrot.slane %v6191_v51, 1  ;;  %v4257_v62 = vrot.slane %v9773_v48, 1  ;;  %v4425_v55 = vshrl.u32 %v9834_v14, 16 }
 0x27c   : > { %4586 = vrot.lane.b32.xlu1 %v9687_v31, %s7362_s16  ;;  %4584 = vrot.lane.b32.xlu0 %v9697_v63, %s7362_s16  ;;  %v6104_v63 = vld [vmem:[%s7699_s8 + $0xb4] sm:$0xe]  ;;  %v4429_v20 = vrot.slane %v4427_v33, 1  ;;  %v4432_v61 = vshll.u32 %v9850_v22, 16  ;;  %v4413_v23 = vshrl.u32 %v6199_v16, 16  ;;  %v4420_v58 = vshll.u32 %v9857_v35, 16 }
 0x27d   : > { %v6192_v17 = vcombine.low %v6104_v63, %v9751_v9  ;;  %v4767_v9 = vsel %vm681_vm0, %v4765_v1, %v4766_v15  ;;  %v4417_v48 = vrot.slane %v4415_v19, 1  ;;  %v4258_v52 = vsel %vm681_vm0, %v4256_v29, %v4257_v62  ;;  %v9909_v62 = vld [vmem:[%s7699_s8 + $0xc8] ss:$0 sps:$4 sm:$0x11]  }
 0x27e   : > { %v9827_v28 = vpop.permute.xlu1 %1713  ;;  %v9829_v31 = vpop.permute.xlu0 %2957  ;;  %v9887_v26 = vcombine.low %v6149_v6, %v9869_v34  ;;  %v4430_v1 = vor.u32 %v4429_v20, %v4425_v55  ;;  %v6216_v51 = vcombine.low %v6136_v39, %v9813_v59  ;;  %v6215_v33 = vcombine.low %v6135_v57, %v9825_v38  ;;  %v9930_v39 = vld [vmem:[%s7699_s8 + $0xd0] sm:$0xf]  ;;  %v9951_v5 = vld [vmem:[%s7699_s8 + $0xd4] ss:$0 sps:$4 sm:$0x11]  }
 0x27f   : > { %v4259_v2 = vrot.slane %v6192_v17, 1  ;;  %v4422_v17 = vrot.slane %v4420_v58, 1 }
 0x280   : > { %4722 = vrot.lane.b32.xlu1 %v4667_v41, %s7363_s17  ;;  %4720 = vrot.lane.b32.xlu0 %v4655_v46, %s7363_s17  ;;  %v6147_v46 = vld [vmem:[%s7699_s8 + $0xc0] sm:$0xf]  ;;  %v4683_v29 = vshll.u32 %v9887_v26, 16  ;;  %v4515_v20 = vrot.slane %v6216_v51, 1  ;;  %v4512_v6 = vrot.slane %v6215_v33, 1  ;;  %v4681_v58 = vshrl.u32 %v9887_v26, 16 }
 0x281   : > { %v4261_v13 = vsel %vm681_vm0, %v4259_v2, %v4260_v56  ;;  %v9890_v15 = vcombine.low %v6147_v46, %v9876_v0  ;;  %v9905_v56 = vld [vmem:[%s7699_s8 + $0xd4] ss:$0 sps:$4 sm:$0x11]   ;;  %v6167_v51 = vld [vmem:[%s7699_s8 + $0xc0] sm:$0xe] }
 0x282   : > { %v9844_v12 = vpop.permute.xlu1 %2959  ;;  %v9846_v4 = vpop.permute.xlu0 %1767  ;;  %v4685_v46 = vrot.slane %v4683_v29, 1 }
 0x283   : > { %v4671_v55 = vshll.u32 %v9890_v15, 16  ;;  %v4669_v57 = vshrl.u32 %v9890_v15, 16 }
 0x284   : > { %4212 = vrot.lane.b32.xlu1 %v4167_v44, %s7358_s6  ;;  %4784 = vrot.lane.b32.xlu0 %v4764_v49, %s7364_s12  ;;  %v4434_v44 = vrot.slane %v4432_v61, 1  ;;  %v4418_v49 = vor.u32 %v4417_v48, %v4413_v23  ;;  %v4516_v23 = vrot.slane %v9850_v22, 1  ;;  %v4513_v48 = vrot.slane %v9857_v35, 1  ;;  %v9935_v35 = vld [vmem:[%s7699_s8 + $0xc8] ss:$0 sps:$4 sm:$0x11]  }
 0x285   : > { %v4673_v22 = vrot.slane %v4671_v55, 1  ;;  %v4686_v55 = vor.u32 %v4685_v46, %v4681_v58  ;;  %v6239_v46 = vcombine.low %v6167_v51, %v9876_v0 }
 0x286   : > { %v9861_v3 = vpop.permute.xlu1 %1769  ;;  %v9863_v41 = vpop.permute.xlu0 %3013  ;;  %v4435_v59 = vsel %vm544_vm1, %v4430_v1, %v4434_v44  ;;  %v4423_v38 = vsel %vm544_vm1, %v4418_v49, %v4422_v17  ;;  %v4676_v1 = vshll.u32 %v9909_v62, 16  ;;  %v4517_v49 = vsel %vm681_vm0, %v4515_v20, %v4516_v23  ;;  %v6121_v23 = vld [vmem:[%s7699_s8 + $0xd8] sm:$0xf] }
 0x287   : > { %v4514_v17 = vsel %vm681_vm0, %v4512_v6, %v4513_v48  ;;  %v4188_v20 = vshll.u32 %v9935_v35, 16  ;;  %v9956_v6 = vld [vmem:[%s7699_s8 + $0xdc] sm:$0xf] }
 0x288   : > { %4214 = vrot.lane.b32.xlu1 %v4179_v40, %s7358_s6  ;;  %4786 = vrot.lane.b32.xlu0 %v4767_v9, %s7364_s12  ;;  %v6087_v40 = vld [vmem:[%s7699_s8 + $0xc0] sm:$0xf]  ;;  %v9898_v9 = vld [vmem:[%s7699_s8 + $0xc4] sm:$0xf]  ;;  %v4678_v11 = vrot.slane %v4676_v1, 1 }
 0x289   : > { %v9918_v61 = vcombine.low %v6087_v40, %v9898_v9  ;;  %v10946_v1 = vld [vmem:[#allocation28_spill] sm:$0xff]  ;;  %v4190_v8 = vrot.slane %v4188_v20, 1  ;;  %v6240_v20 = vcombine.low %v6168_v37, %v9869_v34 }
 0x28a   : > { %v9881_v63 = vpop.permute.xlu1 %3015  ;;  %v9883_v42 = vpop.permute.xlu0 %1903 }
 0x28b   : > { %10943 = vst [vmem:[#allocation112_spill] sm:$0xff] %v9918_v61  ;;  %v4183_v44 = vshll.u32 %v9918_v61, 16  ;;  %v4181_v48 = vshrl.u32 %v9918_v61, 16 }
 0x28c   : > { %4278 = vrot.lane.b32.xlu1 %v4261_v13, %s7357_s29  ;;  %4276 = vrot.lane.b32.xlu0 %v4258_v52, %s7357_s29  ;;  %v4688_v13 = vshll.u32 %v9905_v56, 16  ;;  %v6089_v52 = vld [vmem:[%s7699_s8 + $0xcc] sm:$0xf] }
 0x28d   : > { %v9944_v33 = vcombine.low %v6089_v52, %v9930_v39  ;;  %v4185_v58 = vrot.slane %v4183_v44, 1  ;;  %v9964_v52 = vld [vmem:[%s7699_s8 + $0xd0] sm:$0xf] }
 0x28e   : > { %v9900_v19 = vpop.permute.xlu1 %1905  ;;  %v9902_v2 = vpop.permute.xlu0 %3149 }
 0x28f   : > { %10944 = vst [vmem:[#allocation113_spill] sm:$0xff] %v9944_v33 }
 0x290   : > { %4334 = vrot.lane.b32.xlu1 %v9834_v14, %s7359_s7  ;;  %4332 = vrot.lane.b32.xlu0 %v6199_v16, %s7359_s7 }
 0x292   : > { %v9923_v14 = vpop.permute.xlu1 %3151  ;;  %v9925_v16 = vpop.permute.xlu0 %1967 }
 0x294   : > { %4470 = vrot.lane.b32.xlu1 %v4435_v59, %s7360_s18  ;;  %4468 = vrot.lane.b32.xlu0 %v4423_v38, %s7360_s18  ;;  %v4690_v59 = vrot.slane %v4688_v13, 1  ;;  %v4674_v38 = vor.u32 %v4673_v22, %v4669_v57  ;;  %v6119_v13 = vld [vmem:[%s7699_s8 + $0xcc] sm:$0xf]  ;;  %v4195_v57 = vshll.u32 %v9944_v33, 16 }
 0x295   : > { %v10945_v22 = vld [vmem:[#allocation37_spill] sm:$0xff] }
 0x296   : > { %v9946_v40 = vpop.permute.xlu1 %1969  ;;  %v9948_v29 = vpop.permute.xlu0 %3213  ;;  %v1240_v53 = vsel %vm1234_vm3, %v10946_v1, %v10945_v22  ;;  %v4691_v51 = vsel %vm544_vm1, %v4686_v55, %v4690_v59  ;;  %v4679_v25 = vsel %vm544_vm1, %v4674_v38, %v4678_v11  ;;  %v6105_v22 = vld [vmem:[%s7699_s8 + $0xc0] sm:$0xe]  ;;  %v9986_v1 = vcombine.low %v6121_v23, %v9956_v6 }
 0x297   : > { %v4769_v55 = vrot.slane %v9909_v62, 1  ;;  %v4200_v11 = vshll.u32 %v9951_v5, 16  ;;  %v4193_v59 = vshrl.u32 %v9944_v33, 16  ;;  %v4197_v38 = vrot.slane %v4195_v57, 1  ;;  %v10954_v33 = vld [vmem:[#allocation50_spill] sm:$0xff] }
 0x298   : > { %4534 = vrot.lane.b32.xlu1 %v4517_v49, %s7361_s13  ;;  %4532 = vrot.lane.b32.xlu0 %v4514_v17, %s7361_s13  ;;  %v1236_v49 = vsel %vm1234_vm3, %v10948_v18, %v10947_v60  ;;  %v10949_v17 = vld [vmem:[#allocation38_spill] sm:$0xff]  ;;  %v9989_v18 = vcombine.low %v6119_v13, %v9964_v52  ;;  %v4768_v60 = vrot.slane %v6239_v46, 1  ;;  %v6194_v23 = vcombine.low %v6106_v10, %v9930_v39  ;;  %v10951_v13 = vld [vmem:[#allocation45_spill] sm:$0xff]  ;;  %v10955_v10 = vld [vmem:[#allocation51_spill] sm:$0xff] }
 0x299   : > { %v1238_v61 = vsel %vm1234_vm3, %v10950_v21, %v10949_v17  ;;  %v4186_v21 = vor.u32 %v4185_v58, %v4181_v48  ;;  %v1257_v17 = vsel %vm1251_vm4, %v1240_v53, %v10951_v13  ;;  %v10953_v48 = vld [vmem:[#allocation34_spill] sm:$0xff]  ;;  %v6193_v57 = vcombine.low %v6105_v22, %v9898_v9  ;;  %v10956_v39 = vld [vmem:[#allocation59_spill] sm:$0xff] }
 0x29a   : > { %v9976_v44 = vpop.permute.xlu1 %3215  ;;  %v9978_v0 = vpop.permute.xlu0 %2023  ;;  %v1253_v58 = vsel %vm1251_vm4, %v1236_v49, %v10953_v48  ;;  %v4451_v34 = vshll.u32 %v9986_v1, 16  ;;  %v4202_v22 = vrot.slane %v4200_v11, 1  ;;  %v10026_v13 = vld [vmem:[%s7699_s8 + $0xe0] ss:$0 sps:$4 sm:$0x11]   ;;  %v4772_v48 = vrot.slane %v9905_v56, 1 }
 0x29b   : > { %v1270_v53 = vsel %vm1268_vm5, %v1253_v58, %v10955_v10  ;;  %v4191_v9 = vsel %vm544_vm1, %v4186_v21, %v4190_v8  ;;  %v4265_v58 = vrot.slane %v6194_v23, 1  ;;  %v10957_v10 = vld [vmem:[#allocation70_spill] sm:$0xff]  ;;  %v4262_v45 = vrot.slane %v6193_v57, 1 }
 0x29c   : > { %4590 = vrot.lane.b32.xlu1 %v9887_v26, %s7362_s16  ;;  %4588 = vrot.lane.b32.xlu0 %v9890_v15, %s7362_s16  ;;  %v10952_v26 = vld [vmem:[#allocation35_spill] sm:$0xff]  ;;  %v1287_v49 = vsel %vm1285_vm6, %v1270_v53, %v10956_v39  ;;  %v4263_v8 = vrot.slane %v9935_v35, 1  ;;  %v10036_v21 = vld [vmem:[%s7699_s8 + $0xd4] ss:$0 sps:$4 sm:$0x11]   ;;  %v4437_v11 = vshrl.u32 %v9989_v18, 16 }
 0x29d   : > { %v1255_v15 = vsel %vm1251_vm4, %v1238_v61, %v10952_v26  ;;  %v4439_v61 = vshll.u32 %v9989_v18, 16  ;;  %v4198_v26 = vor.u32 %v4197_v38, %v4193_v59  ;;  %v1304_v53 = vsel %vm1302_vm7, %v1287_v49, %v10957_v10  ;;  %v10958_v59 = vld [vmem:[#allocation53_spill] sm:$0xff]  ;;  %v10960_v57 = vld [vmem:[#allocation86_spill] sm:$0xff]  ;;  %v10961_v10 = vld [vmem:[#allocation95_spill] sm:$0xff] }
 0x29e   : > { %v10006_v62 = vpop.permute.xlu1 %2025  ;;  %v10008_v46 = vpop.permute.xlu0 %3269  ;;  %v10013_v37 = vsel %vm1268_vm5, %v1255_v15, %v10954_v33  ;;  %v4770_v33 = vsel %vm681_vm0, %v4768_v60, %v4769_v55  ;;  %v4771_v15 = vrot.slane %v6240_v20, 1  ;;  %v4449_v60 = vshrl.u32 %v9986_v1, 16  ;;  %v10959_v20 = vld [vmem:[#allocation78_spill] sm:$0xff] }
 0x29f   : > { %v4453_v55 = vrot.slane %v4451_v34, 1  ;;  %v4441_v56 = vrot.slane %v4439_v61, 1  ;;  %v10042_v38 = vsel %vm1268_vm5, %v1257_v17, %v10958_v59  ;;  %v1321_v23 = vsel %vm1319_vm8, %v1304_v53, %v10959_v20  ;;  %v6153_v20 = vld [vmem:[%s7699_s8 + $0xe4] sm:$0xf] }
 0x2a0   : > { %4726 = vrot.lane.b32.xlu1 %v4691_v51, %s7363_s17  ;;  %4724 = vrot.lane.b32.xlu0 %v4679_v25, %s7363_s17  ;;  %v4266_v25 = vrot.slane %v9951_v5, 1  ;;  %v2240_v5 = vsel %vm1234_vm3, %v8926_v30, %v9709_v32  ;;  %v4456_v35 = vshll.u32 %v10026_v13, 16  ;;  %v1338_v34 = vsel %vm1336_vm9, %v1321_v23, %v10960_v57  ;;  %v10072_v23 = vld [vmem:[%s7699_s8 + $0xe8] sm:$0xf] }
 0x2a1   : > { %v2256_v17 = vsel %vm1251_vm4, %v2240_v5, %v9807_v36  ;;  %v4203_v61 = vsel %vm544_vm1, %v4198_v26, %v4202_v22  ;;  %v4773_v49 = vsel %vm681_vm0, %v4771_v15, %v4772_v48  ;;  %v10060_v30 = vsel %vm1353_vm10, %v1338_v34, %v10961_v10  ;;  %v6138_v36 = vld [vmem:[%s7699_s8 + $0xd8] sm:$0xe]  ;;  %v6137_v5 = vld [vmem:[%s7699_s8 + $0xcc] sm:$0xe] }
 0x2a2   : > { %v10031_v39 = vpop.permute.xlu1 %3271  ;;  %v2160_v51 = vpop.permute.xlu0 %2159  ;;  %v2272_v32 = vsel %vm1268_vm5, %v2256_v17, %v9846_v4  ;;  %v4267_v53 = vsel %vm681_vm0, %v4265_v58, %v4266_v25  ;;  %v4264_v59 = vsel %vm681_vm0, %v4262_v45, %v4263_v8  ;;  %v4454_v26 = vor.u32 %v4453_v55, %v4449_v60  ;;  %v6151_v25 = vld [vmem:[%s7699_s8 + $0xd8] sm:$0xf]  ;;  %v10086_v8 = vld [vmem:[%s7699_s8 + $0xdc] sm:$0xf] }
 0x2a3   : > { %v2288_v22 = vsel %vm1285_vm6, %v2272_v32, %v9883_v42  ;;  %v4442_v15 = vor.u32 %v4441_v56, %v4437_v11  ;;  %v4444_v48 = vshll.u32 %v10036_v21, 16  ;;  %v3486_v4 = vsel %vm1234_vm3, %v8969_v54, %v9757_v43 }
 0x2a4   : > { %4216 = vrot.lane.b32.xlu1 %v4191_v9, %s7358_s6  ;;  %4788 = vrot.lane.b32.xlu0 %v4770_v33, %s7364_s12  ;;  %v2242_v58 = vsel %vm1234_vm3, %v9008_v50, %v9787_v27  ;;  %v2304_v45 = vsel %vm1302_vm7, %v2288_v22, %v9925_v16  ;;  %v4458_v42 = vrot.slane %v4456_v35, 1  ;;  %v3502_v54 = vsel %vm1251_vm4, %v3486_v4, %v9829_v31  ;;  %v10963_v22 = vld [vmem:[#allocation62_spill] sm:$0xff] }
 0x2a5   : > { %v2258_v60 = vsel %vm1251_vm4, %v2242_v58, %v9827_v28  ;;  %v2320_v50 = vsel %vm1319_vm8, %v2304_v45, %v9978_v0  ;;  %v6218_v43 = vcombine.low %v6138_v36, %v9956_v6  ;;  %v3518_v16 = vsel %vm1268_vm5, %v3502_v54, %v9863_v41 }
 0x2a6   : > { %v2162_v9 = vpop.permute.xlu1 %2161  ;;  %v3406_v33 = vpop.permute.xlu0 %3405  ;;  %v2274_v27 = vsel %vm1268_vm5, %v2258_v60, %v9861_v3  ;;  %v2336_v55 = vsel %vm1336_vm9, %v2320_v50, %v2160_v51  ;;  %v10102_v28 = vcombine.low %v6153_v20, %v10072_v23  ;;  %v3534_v6 = vsel %vm1285_vm6, %v3518_v16, %v9902_v2  ;;  %v10966_v60 = vld [vmem:[#allocation77_spill] sm:$0xff] }
 0x2a7   : > { %v2290_v31 = vsel %vm1285_vm6, %v2274_v27, %v9900_v19  ;;  %v10112_v3 = vcombine.low %v6151_v25, %v10086_v8  ;;  %v3488_v41 = vsel %vm1234_vm3, %v9044_v7, %v9805_v24  ;;  %v3550_v35 = vsel %vm1302_vm7, %v3534_v6, %v9948_v29  ;;  %v10967_v27 = vld [vmem:[#allocation39_spill] sm:$0xff]  ;;  %v10968_v16 = vld [vmem:[#allocation29_spill] sm:$0xff]  ;;  %v10971_v6 = vld [vmem:[#allocation102_spill] sm:$0xff] }
 0x2a8   : > { %4218 = vrot.lane.b32.xlu1 %v4203_v61, %s7358_s6  ;;  %4790 = vrot.lane.b32.xlu0 %v4773_v49, %s7364_s12  ;;  %v2306_v51 = vsel %vm1302_vm7, %v2290_v31, %v9946_v40  ;;  %v4446_v19 = vrot.slane %v4444_v48, 1  ;;  %v3504_v2 = vsel %vm1251_vm4, %v3488_v41, %v9844_v12  ;;  %v3566_v7 = vsel %vm1319_vm8, %v3550_v35, %v10008_v46  ;;  %v10146_v49 = vld [vmem:[%s7699_s8 + $0xec] ss:$0 sps:$4 sm:$0x11]   ;;  %v6170_v35 = vld [vmem:[%s7699_s8 + $0xe4] sm:$0xe] }
 0x2a9   : > { %v2322_v57 = vsel %vm1319_vm8, %v2306_v51, %v10006_v62  ;;  %v6217_v24 = vcombine.low %v6137_v5, %v9964_v52  ;;  %v3520_v40 = vsel %vm1268_vm5, %v3504_v2, %v9881_v63  ;;  %v3582_v34 = vsel %vm1336_vm9, %v3566_v7, %v3406_v33  ;;  %v10970_v5 = vld [vmem:[#allocation85_spill] sm:$0xff] }
 0x2aa   : > { %v3408_v11 = vpop.permute.xlu1 %3407  ;;  %v2224_v56 = vpop.permute.xlu0 %2223  ;;  %v2338_v29 = vsel %vm1336_vm9, %v2322_v57, %v2162_v9  ;;  %v4459_v62 = vsel %vm544_vm1, %v4454_v26, %v4458_v42  ;;  %v3536_v46 = vsel %vm1285_vm6, %v3520_v40, %v9923_v14  ;;  %v4707_v63 = vshll.u32 %v10102_v28, 16  ;;  %v10157_v9 = vld [vmem:[%s7699_s8 + $0xe0] ss:$0 sps:$4 sm:$0x11]   ;;  %v10972_v2 = vld [vmem:[#allocation41_spill] sm:$0xff]  ;;  %v10973_v57 = vld [vmem:[#allocation31_spill] sm:$0xff] }
 0x2ab   : > { %v10109_v0 = vsel %vm1353_vm10, %v2336_v55, %v2224_v56  ;;  %v3552_v10 = vsel %vm1302_vm7, %v3536_v46, %v9976_v44  ;;  %v4447_v14 = vsel %vm544_vm1, %v4442_v15, %v4446_v19  ;;  %v4521_v32 = vrot.slane %v6218_v43, 1  ;;  %v10965_v42 = vld [vmem:[#allocation72_spill] sm:$0xff]  ;;  %v6169_v19 = vld [vmem:[%s7699_s8 + $0xd8] sm:$0xe] }
 0x2ac   : > { %4282 = vrot.lane.b32.xlu1 %v4267_v53, %s7357_s29  ;;  %4280 = vrot.lane.b32.xlu0 %v4264_v59, %s7357_s29  ;;  %v4695_v33 = vshll.u32 %v10112_v3, 16  ;;  %v3568_v53 = vsel %vm1319_vm8, %v3552_v10, %v10031_v39  ;;  %v4522_v44 = vrot.slane %v10026_v13, 1  ;;  %v10962_v59 = vld [vmem:[#allocation58_spill] sm:$0xff]  ;;  %v1291_v26 = vsel %vm1285_vm6, %v10042_v38, %v10963_v22  ;;  %v10964_v13 = vld [vmem:[#allocation69_spill] sm:$0xff]  ;;  %v10980_v22 = vld [vmem:[#allocation55_spill] sm:$0xff] }
 0x2ad   : > { %6428 = vmatprep.mubr.msk.bf16.mxu0 %vm2370_vm11, %v10109_v0  ;;  %v1289_v36 = vsel %vm1285_vm6, %v10013_v37, %v10962_v59  ;;  %v3584_v39 = vsel %vm1336_vm9, %v3568_v53, %v3408_v11  ;;  %v4705_v37 = vshrl.u32 %v10102_v28, 16  ;;  %v4709_v4 = vrot.slane %v4707_v63, 1  ;;  %v10969_v11 = vld [vmem:[#allocation80_spill] sm:$0xff]  ;;  %v10978_v53 = vld [vmem:[#allocation98_spill] sm:$0xff] }
 0x2ae   : > { %v2226_v12 = vpop.permute.xlu1 %2225  ;;  %v3470_v17 = vpop.permute.xlu0 %3469  ;;  %v1306_v20 = vsel %vm1302_vm7, %v1289_v36, %v10964_v13  ;;  %v4712_v38 = vshll.u32 %v10146_v49, 16  ;;  %v4697_v58 = vrot.slane %v4695_v33, 1  ;;  %v4700_v45 = vshll.u32 %v10157_v9, 16  ;;  %v10979_v59 = vld [vmem:[#allocation52_spill] sm:$0xff] }
 0x2af   : > { %v10140_v61 = vsel %vm1353_vm10, %v2338_v29, %v2226_v12  ;;  %v10143_v52 = vsel %vm1353_vm10, %v3582_v34, %v3470_v17  ;;  %v1308_v25 = vsel %vm1302_vm7, %v1291_v26, %v10965_v42  ;;  %v1323_v54 = vsel %vm1319_vm8, %v1306_v20, %v10966_v60  ;;  %v10975_v29 = vld [vmem:[#allocation88_spill] sm:$0xff]  ;;  %v10976_v12 = vld [vmem:[#allocation94_spill] sm:$0xff]  ;;  %v10981_v20 = vld [vmem:[#allocation61_spill] sm:$0xff] }
 0x2b0   : > { %4338 = vrot.lane.b32.xlu1 %v9986_v1, %s7359_s7  ;;  %4336 = vrot.lane.b32.xlu0 %v9989_v18, %s7359_s7  ;;  %v4518_v1 = vrot.slane %v6217_v24, 1  ;;  %v4519_v18 = vrot.slane %v10036_v21, 1  ;;  %v4523_v50 = vsel %vm681_vm0, %v4521_v32, %v4522_v44  ;;  %v1242_v55 = vsel %vm1234_vm3, %v10968_v16, %v10967_v27  ;;  %v10974_v24 = vld [vmem:[#allocation44_spill] sm:$0xff]  ;;  %v10977_v32 = vld [vmem:[#allocation47_spill] sm:$0xff]  ;;  %s11034_s7 = sld [smem:[#allocation117_spill]] }
 0x2b1   : > { %6429 = vmatmul.mubr.msk.bf16.gmra.mrb[12].mxu0 %vm2370_vm11, %v10140_v61  ;;  %6494 = vmatprep.mubr.msk.bf16.mxu1 %vm2370_vm11, %v10143_v52  ;;  %v1325_v56 = vsel %vm1319_vm8, %v1308_v25, %v10969_v11  ;;  %v1340_v31 = vsel %vm1336_vm9, %v1323_v54, %v10970_v5  ;;  %v1244_v7 = vsel %vm1234_vm3, %v10973_v57, %v10972_v2  ;;  %v4714_v63 = vrot.slane %v4712_v38, 1  ;;  %v7065_v13 = vld [vmem:[#allocation8 + $0x28] sm:$0xff]   ;;  %v10987_v11 = vld [vmem:[#allocation82_spill] sm:$0xff]  ;;  %v10992_v2 = vld [vmem:[#allocation97_spill] sm:$0xff] }
 0x2b2   : > { %6438 = vmatprep.mubr.msk.bf16.mxu0 %vm2370_vm11, %v10060_v30  ;;  %v10177_v15 = vpop.permute.xlu1 %1228  ;;  %v3472_v48 = vpop.permute.xlu0 %3471  ;;  %v4693_v30 = vshrl.u32 %v10112_v3, 16  ;;  %v4520_v43 = vsel %vm681_vm0, %v4518_v1, %v4519_v18  ;;  %v1259_v40 = vsel %vm1251_vm4, %v1242_v55, %v10974_v24  ;;  %v1342_v34 = vsel %vm1336_vm9, %v1325_v56, %v10975_v29  ;;  %v10983_v38 = vld [vmem:[#allocation71_spill] sm:$0xff]  ;;  %v10984_v42 = vld [vmem:[#allocation104_spill] sm:$0xff] }
 0x2b3   : > { %v10182_v21 = vsel %vm1353_vm10, %v3584_v39, %v3472_v48  ;;  %v1357_v17 = vsel %vm1353_vm10, %v1340_v31, %v10976_v12  ;;  %v4710_v46 = vor.u32 %v4709_v4, %v4705_v37  ;;  %v1261_v33 = vsel %vm1251_vm4, %v1244_v7, %v10977_v32  ;;  %v7058_v4 = vld [vmem:[#allocation8 + $0x38] ss:$0 sps:$4 sm:$0x33]   ;;  %v10988_v56 = vld [vmem:[#allocation87_spill] sm:$0xff]  ;;  %v10989_v31 = vld [vmem:[#allocation40_spill] sm:$0xff] }
 0x2b4   : > { %4474 = vrot.lane.b32.xlu1 %v4459_v62, %s7360_s18  ;;  %4472 = vrot.lane.b32.xlu0 %v4447_v14, %s7360_s18  ;;  %v10222_v62 = vld [vmem:[#allocation8 + $0x30] sm:$0xff]   ;;  %v4698_v10 = vor.u32 %v4697_v58, %v4693_v30  ;;  %v4702_v14 = vrot.slane %v4700_v45, 1  ;;  %v1359_v44 = vsel %vm1353_vm10, %v1342_v34, %v10978_v53  ;;  %v6242_v1 = vcombine.low %v6170_v35, %v10072_v23  ;;  %v10991_v35 = vld [vmem:[#allocation90_spill] sm:$0xff]  ;;  %v10994_v34 = vld [vmem:[#allocation43_spill] sm:$0xff] }
 0x2b5   : > { %6495 = vmatmul.mubr.msk.bf16.gmra.mrb[12].mxu1 %vm2370_vm11, %v10182_v21  ;;  %v6241_v18 = vcombine.low %v6169_v19, %v10086_v8  ;;  %v1276_v36 = vsel %vm1268_vm5, %v1259_v40, %v10979_v59  ;;  %v1278_v26 = vsel %vm1268_vm5, %v1261_v33, %v10980_v22  ;;  %v10982_v23 = vld [vmem:[#allocation65_spill] sm:$0xff]  ;;  %v4715_v58 = vsel %vm544_vm1, %v4710_v46, %v4714_v63  ;;  %v10993_v7 = vld [vmem:[#allocation100_spill] sm:$0xff]  ;;  %v10996_v46 = vld [vmem:[#allocation46_spill] sm:$0xff] }
 0x2b6   : > { %6504 = vmatprep.mubr.msk.bf16.mxu1 %vm2370_vm11, %v10971_v6  ;;  %v10207_v41 = vpop.permute.xlu1 %1232  ;;  %v10209_v51 = vpop.permute.xlu0 %1230  ;;  %v1293_v37 = vsel %vm1285_vm6, %v1276_v36, %v10981_v20  ;;  %v1295_v8 = vsel %vm1285_vm6, %v1278_v26, %v10982_v23  ;;  %v4703_v45 = vsel %vm544_vm1, %v4698_v10, %v4702_v14  ;;  %v4777_v25 = vrot.slane %v6242_v1, 1  ;;  %v10990_v6 = vld [vmem:[#allocation30_spill] sm:$0xff]  ;;  %v10995_v12 = vld [vmem:[#allocation33_spill] sm:$0xff]  ;;  %v11000_v59 = vld [vmem:[#allocation64_spill] sm:$0xff]  ;;  %s10637_s18 = scalar_lea.hbm %s11034_s7, %s6305_s3 }
 0x2b7   : > { %v1310_v30 = vsel %vm1302_vm7, %v1293_v37, %v10983_v38  ;;  %v4778_v60 = vrot.slane %v10146_v49, 1  ;;  %v4774_v54 = vrot.slane %v6241_v18, 1  ;;  %v3633_v5 = vsel %vm2387_vm2, %v7058_v4, 0  ;;  %v10997_v32 = vld [vmem:[#allocation49_spill] sm:$0xff]  ;;  %v10998_v53 = vld [vmem:[#allocation54_spill] sm:$0xff]  ;;  %v11001_v22 = vld [vmem:[#allocation68_spill] sm:$0xff] }
 0x2b8   : > { %4538 = vrot.lane.b32.xlu1 %v4523_v50, %s7361_s13  ;;  %4536 = vrot.lane.b32.xlu0 %v4520_v43, %s7361_s13  ;;  %v4775_v50 = vrot.slane %v10157_v9, 1  ;;  %v10985_v43 = vld [vmem:[#allocation74_spill] sm:$0xff]  ;;  %v10999_v1 = vld [vmem:[#allocation57_spill] sm:$0xff]  ;;  %v11003_v37 = vld [vmem:[#allocation63_spill] sm:$0xff]  ;;  %s5350_s13 = scalar_lea.sflag [#allocation5], %s7687_s30 }
 0x2b9   : > { %6439 = vmatmul.mubr.msk.bf16.vlgmr.msra.gmra.mrb[0].mxu0 %vm2370_vm11, %v1357_v17  ;;  %v1312_v27 = vsel %vm1302_vm7, %v1295_v8, %v10985_v43  ;;  %v4779_v40 = vsel %vm681_vm0, %v4777_v25, %v4778_v60  ;;  %v1248_v17 = vsel %vm1234_vm3, %v10995_v12, %v10994_v34  ;;  %v11005_v8 = vld [vmem:[#allocation81_spill] sm:$0xff]  ;;  %v11019_v12 = vld [vmem:[#allocation106_spill] sm:$0xff] }
 0x2ba   : > { %6442 = vmatprep.mubr.msk.bf16.mxu0 %vm2370_vm11, %v1359_v44  ;;  %v10238_v39 = vpop.permute.xlu1 %4206  ;;  %v10240_v48 = vpop.permute.xlu0 %4204  ;;  %6455 = vmatpush3.bf16.msra.mxu0 %v7065_v13  ;;  %v1329_v49 = vsel %vm1319_vm8, %v1312_v27, %v10987_v11  ;;  %v4776_v29 = vsel %vm681_vm0, %v4774_v54, %v4775_v50  ;;  %v1265_v33 = vsel %vm1251_vm4, %v1248_v17, %v10997_v32  ;;  %v11008_v60 = vld [vmem:[#allocation89_spill] sm:$0xff]  ;;  %v11009_v50 = vld [vmem:[#allocation92_spill] sm:$0xff]  ;;  %v11010_v27 = vld [vmem:[#allocation42_spill] sm:$0xff] }
 0x2bb   : > { %6456 = vmatprep.subr.bf16.mxu0 %v10222_v62  ;;  %v1346_v19 = vsel %vm1336_vm9, %v1329_v49, %v10991_v35  ;;  %v1282_v18 = vsel %vm1268_vm5, %v1265_v33, %v10999_v1  ;;  %v11012_v49 = vld [vmem:[#allocation48_spill] sm:$0xff]  ;;  %v11015_v35 = vld [vmem:[#allocation75_spill] sm:$0xff]  ;;  %v4797_v17 = vsel %vm1234_vm3, %v11019_v12, %v10240_v48 }
 0x2bc   : > { %4594 = vrot.lane.b32.xlu1 %v10102_v28, %s7362_s16  ;;  %4592 = vrot.lane.b32.xlu0 %v10112_v3, %s7362_s16  ;;  %v10986_v28 = vld [vmem:[#allocation79_spill] sm:$0xff]  ;;  %v1363_v24 = vsel %vm1353_vm10, %v1346_v19, %v10993_v7  ;;  %v1299_v26 = vsel %vm1285_vm6, %v1282_v18, %v11001_v22  ;;  %s7183_s16 = scalar_lea.vmem %s10629_s9, 2048 }
 0x2bd   : > { %6505 = vmatmul.mubr.msk.bf16.vlgmr.msra.gmra.mrb[0].mxu1 %vm2370_vm11, %v10984_v42  ;;  %v1327_v16 = vsel %vm1319_vm8, %v1310_v30, %v10986_v28  ;;  %v11006_v30 = vld [vmem:[#allocation93_spill] sm:$0xff]  ;;  %v11007_v42 = vld [vmem:[#allocation84_spill] sm:$0xff]  ;;  %p7184_p9 = scmp.ne.s32.totalorder %s10629_s9, %s7183_s16 }
 0x2be   : > { %6508 = vmatprep.mubr.msk.bf16.mxu1 %vm2370_vm11, %v9305_v47  ;;  %v10265_v3 = vpop.permute.xlu1 %4270  ;;  %v10267_v55 = vpop.permute.xlu0 %4268  ;;  %6457 = vmatpush3.bf16.msra.mxu0 %v10222_v62  ;;  %v1344_v9 = vsel %vm1336_vm9, %v1327_v16, %v10988_v56  ;;  %v1246_v47 = vsel %vm1234_vm3, %v10990_v6, %v10989_v31  ;;  %v11011_v28 = vld [vmem:[#allocation32_spill] sm:$0xff] }
 0x2bf   : > { %6521 = vmatpush3.bf16.msra.mxu1 %v7065_v13  ;;  %6608 = vmatprep.subr.msk.bf16.mxu0 %vm2387_vm2, %v7058_v4  ;;  %v1361_v57 = vsel %vm1353_vm10, %v1344_v9, %v10992_v2  ;;  %v1263_v63 = vsel %vm1251_vm4, %v1246_v47, %v10996_v46  ;;  %v11002_v13 = vld [vmem:[#allocation73_spill] sm:$0xff]  ;;  %v1250_v16 = vsel %vm1234_vm3, %v11011_v28, %v11010_v27  ;;  %v11013_v31 = vld [vmem:[#allocation56_spill] sm:$0xff]  ;;  %p7185_p8 = pnand %p7184_p9, %p11035_p12 }
 0x2c0   : > { %4730 = vrot.lane.b32.xlu1 %v4715_v58, %s7363_s17  ;;  %4728 = vrot.lane.b32.xlu0 %v4703_v45, %s7363_s17  ;;  %v1280_v44 = vsel %vm1268_vm5, %v1263_v63, %v10998_v53  ;;  %v1267_v56 = vsel %vm1251_vm4, %v1250_v16, %v11012_v49  ;;  %v11016_v2 = vld [vmem:[#allocation101_spill] sm:$0xff]  ;;  %v4813_v46 = vsel %vm1251_vm4, %v4797_v17, %v10267_v55  ;;  %v11027_v27 = vld [vmem:[#allocation108_spill] sm:$0xff]  ;;  %s7365_s17 = smov [#allocation11]  }
 0x2c1   : > { %6443 = vmatmul.mubr.msk.bf16.gmra.mrb[4].mxu0 %vm2370_vm11, %v1361_v57  ;;  %6522 = vmatprep.subr.bf16.mxu1 %v10222_v62  ;;  %v1297_v36 = vsel %vm1285_vm6, %v1280_v44, %v11000_v59  ;;  %v1284_v6 = vsel %vm1268_vm5, %v1267_v56, %v11013_v31  ;;  %p7186_p4 = pneg %p7185_p8 }
 0x2c2   : > { %6446 = vmatprep.mubr.msk.bf16.mxu0 %vm2370_vm11, %v1363_v24  ;;  %v4327_v10 = vpop.permute.xlu1 %4326  ;;  %v4325_v14 = vpop.permute.xlu0 %4324  ;;  %6459 = vmatpush3.bf16.msra.mxu0 %v3633_v5  ;;  %v1314_v20 = vsel %vm1302_vm7, %v1297_v36, %v11002_v13  ;;  %v11022_v13 = vld [vmem:[#allocation105_spill] sm:$0xff] }
 0x2c3   : > { %6523 = vmatpush3.bf16.msra.mxu1 %v10222_v62  ;;  %v11004_v62 = vld [vmem:[#allocation76_spill] sm:$0xff]  ;;  %v1331_v38 = vsel %vm1319_vm8, %v1314_v20, %v11005_v8  ;;  %v4829_v63 = vsel %vm1268_vm5, %v4813_v46, %v4325_v14 }
 0x2c4   : > { %4794 = vrot.lane.b32.xlu1 %v4779_v40, %s7364_s12  ;;  %4792 = vrot.lane.b32.xlu0 %v4776_v29, %s7364_s12  ;;  %v1316_v23 = vsel %vm1302_vm7, %v1299_v26, %v11004_v62  ;;  %v1348_v54 = vsel %vm1336_vm9, %v1331_v38, %v11008_v60  ;;  %v11018_v40 = vld [vmem:[#allocation91_spill] sm:$0xff]  ;;  %s7187_s12 = sshll.u32 %s7365_s17, 4  ;;  %s7188_s12 = int_to_ptr.vmem [resolvable:$false] %s7187_s12 }
 0x2c5   : > { %6509 = vmatmul.mubr.msk.bf16.gmra.mrb[4].mxu1 %vm2370_vm11, %v11003_v37  ;;  %6611 = vmatprep.subr.msk.bf16.mxu1 %vm2387_vm2, %v7058_v4  ;;  %v1333_v25 = vsel %vm1319_vm8, %v1316_v23, %v11007_v42  ;;  %v1365_v43 = vsel %vm1353_vm10, %v1348_v54, %v10177_v15  ;;  %v11014_v15 = vld [vmem:[#allocation67_spill] sm:$0xff]  ;;  %s7189_s21 = scalar_lea.vmem %s7188_s12, 4096  ;;  %p7190_p7 = scmp.lt.s32.totalorder %s10629_s9, %s7188_s12 }
 0x2c6   : > { %6512 = vmatprep.mubr.msk.bf16.mxu1 %vm2370_vm11, %v11006_v30  ;;  %v4463_v58 = vpop.permute.xlu1 %4462  ;;  %v4461_v45 = vpop.permute.xlu0 %4460  ;;  %v1350_v4 = vsel %vm1336_vm9, %v1333_v25, %v11009_v50  ;;  %v1301_v47 = vsel %vm1285_vm6, %v1284_v6, %v11014_v15  ;;  %v11024_v38 = vld [vmem:[#allocation107_spill] sm:$0xff]  ;;  %v11025_v30 = vld [vmem:[#allocation96_spill] sm:$0xff]  ;;  %p7191_p6 = scmp.lt.s32.totalorder %s7189_s21, %s7183_s16 }
 0x2c7   : > { %6525 = vmatpush3.bf16.msra.mxu1 %v3633_v5  ;;  %v1367_v11 = vsel %vm1353_vm10, %v1350_v4, %v10209_v51  ;;  %v1318_v19 = vsel %vm1302_vm7, %v1301_v47, %v11015_v35  ;;  %v11017_v51 = vld [vmem:[#allocation83_spill] sm:$0xff]  ;;  %v4845_v53 = vsel %vm1285_vm6, %v4829_v63, %v4461_v45 }
 0x2c8   : > { %v1335_v57 = vsel %vm1319_vm8, %v1318_v19, %v11017_v51  ;;  %v11026_v60 = vld [vmem:[#allocation111_spill] sm:$0xff]  ;;  %p7192_p10 = por %p7191_p6, %p7190_p7 }
 0x2c9   : > { %6447 = vmatmul.mubr.msk.bf16.gmra.mrb[8].mxu0 %vm2370_vm11, %v1365_v43  ;;  %v1352_v29 = vsel %vm1336_vm9, %v1335_v57, %v11018_v40 }
 0x2ca   : > { %6450 = vmatprep.mubr.msk.bf16.mxu0 %vm2370_vm11, %v1367_v11  ;;  %v4527_v9 = vpop.permute.xlu1 %4526  ;;  %v4525_v5 = vpop.permute.xlu0 %4524  ;;  %v1369_v34 = vsel %vm1353_vm10, %v1352_v29, %v10207_v41  ;;  %v11021_v41 = vld [vmem:[#allocation66_spill] sm:$0xff]  ;;  %p7193_p13 = pnand %p7192_p10, %p7186_p4 }
 0x2cb   : > { %v4799_v44 = vsel %vm1234_vm3, %v11021_v41, %v10238_v39  ;;  %v4861_v48 = vsel %vm1302_vm7, %v4845_v53, %v4525_v5  ;;  %v11028_v5 = vld [vmem:[#allocation109_spill] sm:$0xff] }
 0x2cc   : > { %v4815_v55 = vsel %vm1251_vm4, %v4799_v44, %v10265_v3 }
 0x2cd   : > { %6513 = vmatmul.mubr.msk.bf16.gmra.mrb[8].mxu1 %vm2370_vm11, %v11016_v2  ;;  %v4831_v14 = vsel %vm1268_vm5, %v4815_v55, %v4327_v10  ;;  %v11023_v10 = vld [vmem:[#allocation60_spill] sm:$0xff] }
 0x2ce   : > { %6516 = vmatprep.mubr.msk.bf16.mxu1 %vm2370_vm11, %v10109_v0  ;;  %v4583_v7 = vpop.permute.xlu1 %4582  ;;  %v4581_v24 = vpop.permute.xlu0 %4580  ;;  %v11020_v0 = vld [vmem:[#allocation103_spill] sm:$0xff]  ;;  %v4847_v22 = vsel %vm1285_vm6, %v4831_v14, %v4463_v58 }
 0x2cf   : > { %v4877_v1 = vsel %vm1319_vm8, %v4861_v48, %v4581_v24  ;;  %v4863_v26 = vsel %vm1302_vm7, %v4847_v22, %v4527_v9  ;;  %v11029_v48 = vld [vmem:[#allocation99_spill] sm:$0xff]  ;;  %v11030_v22 = vld [vmem:[#allocation110_spill] sm:$0xff] }
 0x2d0   : > { %v4879_v3 = vsel %vm1319_vm8, %v4863_v26, %v4583_v7 }
 0x2d1   : > { %6451 = vmatmul.mubr.msk.bf16.gmra.mrb[12].mxu0 %vm2370_vm11, %v1369_v34 }
 0x2d2   : > { %6460 = vmatprep.mubr.msk.bf16.mxu0 %vm2370_vm11, %v11020_v0  ;;  %v4719_v32 = vpop.permute.xlu1 %4718  ;;  %v4717_v33 = vpop.permute.xlu0 %4716 }
 0x2d3   : > { %v4893_v18 = vsel %vm1336_vm9, %v4877_v1, %v4717_v33 }
 0x2d5   : > { %6517 = vmatmul.mubr.msk.bf16.gmra.mrb[12].mxu1 %vm2370_vm11, %v10140_v61  ;;  %v4895_v61 = vsel %vm1336_vm9, %v4879_v3, %v4719_v32 }
 0x2d6   : > { %v4209_v59 = vpop.permute.xlu1 %4208  ;;  %v4781_v36 = vpop.permute.xlu0 %4780 }
 0x2d7   : > { %v4909_v39 = vsel %vm1353_vm10, %v4893_v18, %v4781_v36  ;;  %v4801_v28 = vsel %vm1234_vm3, %v11027_v27, %v4209_v59 }
 0x2d8   : > { %6526 = vmatprep.mubr.msk.bf16.mxu1 %vm2370_vm11, %v4909_v39 }
 0x2d9   : > { %6461 = vmatmul.mubr.msk.bf16.vlgmr.msra.gmra.mrb[0].mxu0 %vm2370_vm11, %v11022_v13 }
 0x2da   : > { %6464 = vmatprep.mubr.msk.bf16.mxu0 %vm2370_vm11, %v11023_v10  ;;  %v4211_v20 = vpop.permute.xlu1 %4210  ;;  %v4783_v37 = vpop.permute.xlu0 %4782 }
 0x2db   : > { %v4911_v62 = vsel %vm1353_vm10, %v4895_v61, %v4783_v37 }
 0x2dd   : > { %6527 = vmatmul.mubr.msk.bf16.vlgmr.msra.gmra.mrb[0].mxu1 %vm2370_vm11, %v4911_v62 }
 0x2de   : > { %v4275_v23 = vpop.permute.xlu1 %4274  ;;  %v4273_v8 = vpop.permute.xlu0 %4272 }
 0x2df   : > { %v4817_v16 = vsel %vm1251_vm4, %v4801_v28, %v4273_v8 }
 0x2e1   : > { %6465 = vmatmul.mubr.msk.bf16.gmra.mrb[4].mxu0 %vm2370_vm11, %v11024_v38 }
 0x2e2   : > { %6468 = vmatprep.mubr.msk.bf16.mxu0 %vm2370_vm11, %v11025_v30  ;;  %v4331_v58 = vpop.permute.xlu1 %4330  ;;  %v4329_v45 = vpop.permute.xlu0 %4328 }
 0x2e3   : > { %v4833_v11 = vsel %vm1268_vm5, %v4817_v16, %v4329_v45 }
 0x2e6   : > { %v4467_v42 = vpop.permute.xlu1 %4466  ;;  %v4465_v25 = vpop.permute.xlu0 %4464 }
 0x2e7   : > { %v4849_v9 = vsel %vm1285_vm6, %v4833_v11, %v4465_v25 }
 0x2e9   : > { %6469 = vmatmul.mubr.msk.bf16.gmra.mrb[8].mxu0 %vm2370_vm11, %v11026_v60 }
 0x2ea   : > { %6472 = vmatprep.mubr.msk.bf16.mxu0 %vm2370_vm11, %v10143_v52  ;;  %v4531_v54 = vpop.permute.xlu1 %4530  ;;  %v4529_v50 = vpop.permute.xlu0 %4528  ;;  %v4803_v52 = vsel %vm1234_vm3, %v11028_v5, %v4211_v20 }
 0x2eb   : > { %v4865_v31 = vsel %vm1302_vm7, %v4849_v9, %v4529_v50  ;;  %v4819_v6 = vsel %vm1251_vm4, %v4803_v52, %v4275_v23  ;;  %v11032_v9 = vld [vmem:[#allocation113_spill] sm:$0xff] }
 0x2ec   : > { %v4835_v47 = vsel %vm1268_vm5, %v4819_v6, %v4331_v58 }
 0x2ed   : > { %v4851_v2 = vsel %vm1285_vm6, %v4835_v47, %v4467_v42 }
 0x2ee   : > { %v4587_v4 = vpop.permute.xlu1 %4586  ;;  %v4585_v43 = vpop.permute.xlu0 %4584  ;;  %v4867_v57 = vsel %vm1302_vm7, %v4851_v2, %v4531_v54 }
 0x2ef   : > { %v4881_v15 = vsel %vm1319_vm8, %v4865_v31, %v4585_v43  ;;  %v4883_v7 = vsel %vm1319_vm8, %v4867_v57, %v4587_v4 }
 0x2f1   : > { %6473 = vmatmul.mubr.msk.bf16.gmra.mrb[12].mxu0 %vm2370_vm11, %v10182_v21 }
 0x2f2   : > { %v4723_v49 = vpop.permute.xlu1 %4722  ;;  %v4721_v56 = vpop.permute.xlu0 %4720 }
 0x2f3   : > { %v4897_v35 = vsel %vm1336_vm9, %v4881_v15, %v4721_v56  ;;  %v4899_v24 = vsel %vm1336_vm9, %v4883_v7, %v4723_v49  ;;  %v11031_v49 = vld [vmem:[#allocation112_spill] sm:$0xff] }
 0x2f6   : > { %v4213_v21 = vpop.permute.xlu1 %4212  ;;  %v4785_v19 = vpop.permute.xlu0 %4784 }
 0x2f7   : > { %v4913_v51 = vsel %vm1353_vm10, %v4897_v35, %v4785_v19  ;;  %v4805_v55 = vsel %vm1234_vm3, %v11029_v48, %v4213_v21 }
 0x2f8   : > { %6530 = vmatprep.mubr.msk.bf16.mxu1 %vm2370_vm11, %v4913_v51 }
 0x2fa   : > { %v4215_v40 = vpop.permute.xlu1 %4214  ;;  %v4787_v29 = vpop.permute.xlu0 %4786 }
 0x2fb   : > { %v4915_v34 = vsel %vm1353_vm10, %v4899_v24, %v4787_v29  ;;  %v4807_v39 = vsel %vm1234_vm3, %v11030_v22, %v4215_v40 }
 0x2fc   : > { %6531 = vmatmul.mubr.msk.bf16.gmra.mrb[4].mxu1 %vm2370_vm11, %v4915_v34 }
 0x2fe   : > { %v4279_v12 = vpop.permute.xlu1 %4278  ;;  %v4277_v17 = vpop.permute.xlu0 %4276 }
 0x2ff   : > { %v4821_v1 = vsel %vm1251_vm4, %v4805_v55, %v4277_v17  ;;  %v4823_v3 = vsel %vm1251_vm4, %v4807_v39, %v4279_v12 }
 0x302   : > { %v4335_v46 = vpop.permute.xlu1 %4334  ;;  %v4333_v63 = vpop.permute.xlu0 %4332 }
 0x303   : > { %v4837_v14 = vsel %vm1268_vm5, %v4821_v1, %v4333_v63  ;;  %v4839_v61 = vsel %vm1268_vm5, %v4823_v3, %v4335_v46  ;;  %v10457_v46 = vld [vmem:[#allocation9] ss:$0 sm:$0xff] }
 0x306   : > { %v4471_v0 = vpop.permute.xlu1 %4470  ;;  %v4469_v32 = vpop.permute.xlu0 %4468 }
 0x307   : > { %v4853_v36 = vsel %vm1285_vm6, %v4837_v14, %v4469_v32  ;;  %v4855_v62 = vsel %vm1285_vm6, %v4839_v61, %v4471_v0 }
 0x30a   : > { %v4535_v33 = vpop.permute.xlu1 %4534  ;;  %v4533_v53 = vpop.permute.xlu0 %4532 }
 0x30b   : > { %v4869_v26 = vsel %vm1302_vm7, %v4853_v36, %v4533_v53  ;;  %v4871_v8 = vsel %vm1302_vm7, %v4855_v62, %v4535_v33 }
 0x30e   : > { %v4591_v41 = vpop.permute.xlu1 %4590  ;;  %v4589_v44 = vpop.permute.xlu0 %4588 }
 0x30f   : > { %v4885_v13 = vsel %vm1319_vm8, %v4869_v26, %v4589_v44  ;;  %v4887_v38 = vsel %vm1319_vm8, %v4871_v8, %v4591_v41 }
 0x312   : > { %v4727_v18 = vpop.permute.xlu1 %4726  ;;  %v4725_v59 = vpop.permute.xlu0 %4724 }
 0x313   : > { %v4901_v10 = vsel %vm1336_vm9, %v4885_v13, %v4725_v59  ;;  %v4903_v30 = vsel %vm1336_vm9, %v4887_v38, %v4727_v18 }
 0x316   : > { %v4217_v20 = vpop.permute.xlu1 %4216  ;;  %v4789_v37 = vpop.permute.xlu0 %4788 }
 0x317   : > { %v4917_v23 = vsel %vm1353_vm10, %v4901_v10, %v4789_v37  ;;  %v4809_v56 = vsel %vm1234_vm3, %v11031_v49, %v4217_v20 }
 0x318   : > { %6534 = vmatprep.mubr.msk.bf16.mxu1 %vm2370_vm11, %v4917_v23 }
 0x31a   : > { %v4219_v58 = vpop.permute.xlu1 %4218  ;;  %v4791_v45 = vpop.permute.xlu0 %4790 }
 0x31b   : > { %v4919_v42 = vsel %vm1353_vm10, %v4903_v30, %v4791_v45  ;;  %v4811_v5 = vsel %vm1234_vm3, %v11032_v9, %v4219_v58 }
 0x31c   : > { %6535 = vmatmul.mubr.msk.bf16.gmra.mrb[8].mxu1 %vm2370_vm11, %v4919_v42 }
 0x31e   : > { %v4283_v25 = vpop.permute.xlu1 %4282  ;;  %v4281_v60 = vpop.permute.xlu0 %4280 }
 0x31f   : > { %v4827_v52 = vsel %vm1251_vm4, %v4811_v5, %v4283_v25  ;;  %v4825_v31 = vsel %vm1251_vm4, %v4809_v56, %v4281_v60 }
 0x322   : > { %v4339_v54 = vpop.permute.xlu1 %4338  ;;  %v4337_v50 = vpop.permute.xlu0 %4336 }
 0x323   : > { %v4843_v6 = vsel %vm1268_vm5, %v4827_v52, %v4339_v54  ;;  %v4841_v15 = vsel %vm1268_vm5, %v4825_v31, %v4337_v50 }
 0x326   : > { %v4475_v4 = vpop.permute.xlu1 %4474  ;;  %v4473_v43 = vpop.permute.xlu0 %4472 }
 0x327   : > { %v4859_v21 = vsel %vm1285_vm6, %v4843_v6, %v4475_v4  ;;  %v4857_v19 = vsel %vm1285_vm6, %v4841_v15, %v4473_v43 }
 0x32a   : > { %v4539_v27 = vpop.permute.xlu1 %4538  ;;  %v4537_v28 = vpop.permute.xlu0 %4536 }
 0x32b   : > { %v4875_v2 = vsel %vm1302_vm7, %v4859_v21, %v4539_v27  ;;  %v4873_v51 = vsel %vm1302_vm7, %v4857_v19, %v4537_v28 }
 0x32e   : > { %v4595_v16 = vpop.permute.xlu1 %4594  ;;  %v4593_v11 = vpop.permute.xlu0 %4592 }
 0x32f   : > { %v4891_v57 = vsel %vm1319_vm8, %v4875_v2, %v4595_v16  ;;  %v4889_v7 = vsel %vm1319_vm8, %v4873_v51, %v4593_v11 }
 0x332   : > { %v4731_v47 = vpop.permute.xlu1 %4730  ;;  %v4729_v35 = vpop.permute.xlu0 %4728 }
 0x333   : > { %v4907_v24 = vsel %vm1336_vm9, %v4891_v57, %v4731_v47  ;;  %v4905_v40 = vsel %vm1336_vm9, %v4889_v7, %v4729_v35 }
 0x336   : > { %v4795_v29 = vpop.permute.xlu1 %4794  ;;  %v4793_v34 = vpop.permute.xlu0 %4792 }
 0x337   : > { %v4923_v12 = vsel %vm1353_vm10, %v4907_v24, %v4795_v29  ;;  %v4921_v17 = vsel %vm1353_vm10, %v4905_v40, %v4793_v34 }
 0x338   : > { %6538 = vmatprep.mubr.msk.bf16.mxu1 %vm2370_vm11, %v4921_v17 }
 0x339   : > { %6539 = vmatmul.mubr.msk.bf16.gmra.mrb[12].mxu1 %vm2370_vm11, %v4923_v12 }
 0x3ac   : > { %v6462_v63 = vpop.f32.mrb[0].mxu0 }
 0x3ad   : > { %v5061_v0 = vadd.f32 %v6462_v63, %v10457_v46  ;;  %v3669_v32 = vpop.f32.mrb[1].mxu0 }
 0x3ae   : > { %v5059_v33 = vadd.f32 %v10457_v46, %v3669_v32  ;;  %v6463_v53 = vpop.f32.mrb[2].mxu0 }
 0x3af   : > { %v5077_v41 = vmax.f32 %v5061_v0, 0.0  ;;  %v5062_v44 = vadd.f32 %v6463_v53, %v10457_v46  ;;  %v3672_v48 = vpop.f32.mrb[3].mxu0 }
 0x3b0   : > { %v5075_v55 = vmax.f32 %v5059_v33, 0.0  ;;  %v5060_v1 = vadd.f32 %v10457_v46, %v3672_v48  ;;  %v6528_v14 = vpop.f32.mrb[0].mxu1 }
 0x3b1   : > { %v6313_v18 = vpack.c.bf16 %v5077_v41, %v5077_v41  ;;  %v5078_v59 = vmax.f32 %v5062_v44, 0.0  ;;  %v5177_v36 = vadd.f32 %v6528_v14, %v10457_v46  ;;  %v4974_v22 = vpop.f32.mrb[1].mxu1 }
 0x3b2   : > { %v6311_v39 = vpack.c.bf16 %v5075_v55, %v5075_v55  ;;  %v5076_v26 = vmax.f32 %v5060_v1, 0.0  ;;  %v5175_v3 = vadd.f32 %v10457_v46, %v4974_v22  ;;  %v6529_v13 = vpop.f32.mrb[2].mxu1 }
 0x3b3   : > { %5161 = vst.msk [vmem:[%s10466_s11 + $0x8] sm:$0xf] %vm5158_vm12, %v6313_v18  ;;  %v6314_v61 = vpack.c.bf16 %v5078_v59, %v5078_v59  ;;  %v5193_v10 = vmax.f32 %v5177_v36, 0.0  ;;  %v5178_v20 = vadd.f32 %v6529_v13, %v10457_v46  ;;  %v4977_v37 = vpop.f32.mrb[3].mxu1 }
 0x3b4   : > { %5159 = vst.msk [vmem:[%s10466_s11] sm:$0xf] %vm5158_vm12, %v6311_v39  ;;  %v6312_v62 = vpack.c.bf16 %v5076_v26, %v5076_v26  ;;  %v5191_v23 = vmax.f32 %v5175_v3, 0.0  ;;  %v5176_v8 = vadd.f32 %v10457_v46, %v4977_v37  ;;  %v6466_v38 = vpop.f32.mrb[4].mxu0 }
 0x3b5   : > { %5162 = vst.msk [vmem:[%s10466_s11 + $0xc] sm:$0xf] %vm5158_vm12, %v6314_v61  ;;  %v6329_v30 = vpack.c.bf16 %v5193_v10, %v5193_v10  ;;  %v5292_v58 = vmax.f32 %v5077_v41, %v5193_v10  ;;  %v5194_v45 = vmax.f32 %v5178_v20, 0.0  ;;  %v5065_v42 = vadd.f32 %v6466_v38, %v10457_v46  ;;  %v3685_v25 = vpop.f32.mrb[5].mxu0 }
 0x3b6   : > { %5160 = vst.msk [vmem:[%s10466_s11 + $0x4] sm:$0xf] %vm5158_vm12, %v6312_v62  ;;  %v6327_v60 = vpack.c.bf16 %v5191_v23, %v5191_v23  ;;  %v5290_v54 = vmax.f32 %v5075_v55, %v5191_v23  ;;  %v5192_v50 = vmax.f32 %v5176_v8, 0.0  ;;  %v5063_v4 = vadd.f32 %v10457_v46, %v3685_v25  ;;  %v6467_v43 = vpop.f32.mrb[6].mxu0 }
 0x3b7   : > { %6286 = vst.msk [vmem:[%s10466_s11 + $0x48] sm:$0xf] %vm5158_vm12, %v6329_v30  ;;  %v6330_v27 = vpack.c.bf16 %v5194_v45, %v5194_v45  ;;  %v5293_v28 = vmax.f32 %v5078_v59, %v5194_v45  ;;  %v10482_v16 = vmax.f32 %v5065_v42, 0.0  ;;  %v5066_v11 = vadd.f32 %v6467_v43, %v10457_v46  ;;  %v3688_v49 = vpop.f32.mrb[7].mxu0 }
 0x3b8   : > { %6284 = vst.msk [vmem:[%s10466_s11 + $0x40] sm:$0xf] %vm5158_vm12, %v6327_v60  ;;  %v5306_v56 = vmax.f32 %v5290_v54, %v5292_v58  ;;  %v6328_v9 = vpack.c.bf16 %v5192_v50, %v5192_v50  ;;  %v5291_v5 = vmax.f32 %v5076_v26, %v5192_v50  ;;  %v10487_v52 = vmax.f32 %v5063_v4, 0.0 }
 0x3b9   : > { %6287 = vst.msk [vmem:[%s10466_s11 + $0x4c] sm:$0xf] %vm5158_vm12, %v6330_v27  ;;  %v6317_v31 = vpack.c.bf16 %v10482_v16, %v10482_v16  ;;  %v10493_v6 = vmax.f32 %v5066_v11, 0.0  ;;  %v5064_v15 = vadd.f32 %v10457_v46, %v3688_v49 }
 0x3ba   : > { %5314 = vst.msk [vmem:[#allocation2] sm:$0xff] %vm1251_vm4, %v5306_v56  ;;  %v5307_v47 = vmax.f32 %v5291_v5, %v5293_v28  ;;  %v6315_v35 = vpack.c.bf16 %v10487_v52, %v10487_v52 }
 0x3bb   : > { %6285 = vst.msk [vmem:[%s10466_s11 + $0x44] sm:$0xf] %vm5158_vm12, %v6328_v9  ;;  %5165 = vst.msk [vmem:[%s10466_s11 + $0x18] sm:$0xf] %vm5158_vm12, %v6317_v31  ;;  %v6318_v21 = vpack.c.bf16 %v10493_v6, %v10493_v6  ;;  %v10505_v19 = vmax.f32 %v5064_v15, 0.0 }
 0x3bc   : > { %5315 = vst.msk [vmem:[#allocation2 + $0x8] sm:$0xff] %vm1251_vm4, %v5307_v47  ;;  %v6470_v2 = vpop.f32.mrb[8].mxu0 }
 0x3bd   : > { %5163 = vst.msk [vmem:[%s10466_s11 + $0x10] sm:$0xf] %vm5158_vm12, %v6315_v35  ;;  %5166 = vst.msk [vmem:[%s10466_s11 + $0x1c] sm:$0xf] %vm5158_vm12, %v6318_v21  ;;  %v6316_v51 = vpack.c.bf16 %v10505_v19, %v10505_v19  ;;  %v5069_v57 = vadd.f32 %v6470_v2, %v10457_v46  ;;  %v3701_v7 = vpop.f32.mrb[9].mxu0 }
 0x3be   : > { %v5067_v24 = vadd.f32 %v10457_v46, %v3701_v7  ;;  %v6471_v40 = vpop.f32.mrb[10].mxu0 }
 0x3bf   : > { %5164 = vst.msk [vmem:[%s10466_s11 + $0x14] sm:$0xf] %vm5158_vm12, %v6316_v51  ;;  %v10518_v29 = vmax.f32 %v5069_v57, 0.0  ;;  %v5070_v34 = vadd.f32 %v6471_v40, %v10457_v46  ;;  %v3704_v12 = vpop.f32.mrb[11].mxu0 }
 0x3c0   : > { %v10521_v17 = vmax.f32 %v5067_v24, 0.0  ;;  %v5068_v63 = vadd.f32 %v10457_v46, %v3704_v12 }
 0x3c1   : > { %v6321_v0 = vpack.c.bf16 %v10518_v29, %v10518_v29  ;;  %v10526_v32 = vmax.f32 %v5070_v34, 0.0 }
 0x3c2   : > { %v6319_v33 = vpack.c.bf16 %v10521_v17, %v10521_v17  ;;  %v10530_v53 = vmax.f32 %v5068_v63, 0.0 }
 0x3c3   : > { %5169 = vst.msk [vmem:[%s10466_s11 + $0x28] sm:$0xf] %vm5158_vm12, %v6321_v0  ;;  %v6322_v41 = vpack.c.bf16 %v10526_v32, %v10526_v32  ;;  %v5322_v44 = vld [vmem:[#allocation2] ss:$2 sm:$0xff]  ;;  %v5330_v48 = vld [vmem:[#allocation2 + $0x1] ss:$2 sm:$0xff] }
 0x3c4   : > { %5167 = vst.msk [vmem:[%s10466_s11 + $0x20] sm:$0xf] %vm5158_vm12, %v6319_v33  ;;  %v6320_v55 = vpack.c.bf16 %v10530_v53, %v10530_v53  ;;  %v6474_v1 = vpop.f32.mrb[12].mxu0  ;;  %v5337_v14 = vmax.f32 %v5322_v44, %v5330_v48 }
 0x3c5   : > { %5170 = vst.msk [vmem:[%s10466_s11 + $0x2c] sm:$0xf] %vm5158_vm12, %v6322_v41  ;;  %v5073_v18 = vadd.f32 %v6474_v1, %v10457_v46  ;;  %v3717_v59 = vpop.f32.mrb[13].mxu0 }
 0x3c6   : > { %5168 = vst.msk [vmem:[%s10466_s11 + $0x24] sm:$0xf] %vm5158_vm12, %v6320_v55  ;;  %v5071_v36 = vadd.f32 %v10457_v46, %v3717_v59  ;;  %v6475_v22 = vpop.f32.mrb[14].mxu0  ;;  %v5341_v39 = vpack.c.bf16 %v5337_v14, %v5337_v14 }
 0x3c7   : > { %v10547_v26 = vmax.f32 %v5073_v18, 0.0  ;;  %v5074_v3 = vadd.f32 %v6475_v22, %v10457_v46  ;;  %v3720_v13 = vpop.f32.mrb[15].mxu0 }
 0x3c8   : > { %v10550_v61 = vmax.f32 %v5071_v36, 0.0  ;;  %v5072_v10 = vadd.f32 %v10457_v46, %v3720_v13  ;;  %5345 = vst.msk [vmem:[%s10553_s0] sm:$0xf] %vm5158_vm12, %v5341_v39 }
 0x3c9   : > { %v6325_v20 = vpack.c.bf16 %v10547_v26, %v10547_v26  ;;  %v10559_v37 = vmax.f32 %v5074_v3, 0.0 }
 0x3ca   : > { %v6323_v62 = vpack.c.bf16 %v10550_v61, %v10550_v61  ;;  %v10563_v23 = vmax.f32 %v5072_v10, 0.0 }
 0x3cb   : > { %5173 = vst.msk [vmem:[%s10466_s11 + $0x38] sm:$0xf] %vm5158_vm12, %v6325_v20  ;;  %v6326_v8 = vpack.c.bf16 %v10559_v37, %v10559_v37 }
 0x3cc   : > { %5171 = vst.msk [vmem:[%s10466_s11 + $0x30] sm:$0xf] %vm5158_vm12, %v6323_v62  ;;  %v6324_v38 = vpack.c.bf16 %v10563_v23, %v10563_v23 }
 0x3cd   : > { %5174 = vst.msk [vmem:[%s10466_s11 + $0x3c] sm:$0xf] %vm5158_vm12, %v6326_v8 }
 0x3ce   : > { %5172 = vst.msk [vmem:[%s10466_s11 + $0x34] sm:$0xf] %vm5158_vm12, %v6324_v38 }
 0x3cf   : > { %v6532_v30 = vpop.f32.mrb[4].mxu1 }
 0x3d0   : > { %v5181_v58 = vadd.f32 %v6532_v30, %v10457_v46  ;;  %v4990_v45 = vpop.f32.mrb[5].mxu1 }
 0x3d1   : > { %v5179_v42 = vadd.f32 %v10457_v46, %v4990_v45  ;;  %v6533_v25 = vpop.f32.mrb[6].mxu1 }
 0x3d2   : > { %v5197_v60 = vmax.f32 %v5181_v58, 0.0  ;;  %v5182_v54 = vadd.f32 %v6533_v25, %v10457_v46  ;;  %v4993_v50 = vpop.f32.mrb[7].mxu1 }
 0x3d3   : > { %v5195_v4 = vmax.f32 %v5179_v42, 0.0  ;;  %v5180_v43 = vadd.f32 %v10457_v46, %v4993_v50 }
 0x3d4   : > { %v6333_v27 = vpack.c.bf16 %v5197_v60, %v5197_v60  ;;  %v5296_v28 = vmax.f32 %v10482_v16, %v5197_v60  ;;  %v5198_v11 = vmax.f32 %v5182_v54, 0.0 }
 0x3d5   : > { %v6331_v49 = vpack.c.bf16 %v5195_v4, %v5195_v4  ;;  %v5294_v56 = vmax.f32 %v10487_v52, %v5195_v4  ;;  %v5196_v9 = vmax.f32 %v5180_v43, 0.0 }
 0x3d6   : > { %6290 = vst.msk [vmem:[%s10466_s11 + $0x58] sm:$0xf] %vm5158_vm12, %v6333_v27  ;;  %v6334_v5 = vpack.c.bf16 %v5198_v11, %v5198_v11  ;;  %v5297_v31 = vmax.f32 %v10493_v6, %v5198_v11 }
 0x3d7   : > { %6288 = vst.msk [vmem:[%s10466_s11 + $0x50] sm:$0xf] %vm5158_vm12, %v6331_v49  ;;  %v5308_v15 = vmax.f32 %v5294_v56, %v5296_v28  ;;  %v6332_v47 = vpack.c.bf16 %v5196_v9, %v5196_v9  ;;  %v5295_v35 = vmax.f32 %v10505_v19, %v5196_v9 }
 0x3d8   : > { %6291 = vst.msk [vmem:[%s10466_s11 + $0x5c] sm:$0xf] %vm5158_vm12, %v6334_v5 }
 0x3d9   : > { %5316 = vst.msk [vmem:[#allocation2 + $0x10] sm:$0xff] %vm1251_vm4, %v5308_v15  ;;  %v5309_v16 = vmax.f32 %v5295_v35, %v5297_v31 }
 0x3da   : > { %6289 = vst.msk [vmem:[%s10466_s11 + $0x54] sm:$0xf] %vm5158_vm12, %v6332_v47 }
 0x3db   : > { %5317 = vst.msk [vmem:[#allocation2 + $0x18] sm:$0xff] %vm1251_vm4, %v5309_v16 }
 0x3e2   : > { %v5324_v52 = vld [vmem:[#allocation2 + $0x10] ss:$2 sm:$0xff]  ;;  %v5332_v21 = vld [vmem:[#allocation2 + $0x11] ss:$2 sm:$0xff] }
 0x3e3   : > { %v5338_v2 = vmax.f32 %v5324_v52, %v5332_v21 }
 0x3e5   : > { %v5342_v51 = vpack.c.bf16 %v5338_v2, %v5338_v2 }
 0x3e7   : > { %5346 = vst.msk [vmem:[%s10553_s0 + $0x4] sm:$0xf] %vm5158_vm12, %v5342_v51 }
 0x3ef   : > { %v6536_v6 = vpop.f32.mrb[8].mxu1 }
 0x3f0   : > { %v5185_v57 = vadd.f32 %v6536_v6, %v10457_v46  ;;  %v5006_v19 = vpop.f32.mrb[9].mxu1 }
 0x3f1   : > { %v5183_v7 = vadd.f32 %v10457_v46, %v5006_v19  ;;  %v6537_v24 = vpop.f32.mrb[10].mxu1 }
 0x3f2   : > { %v5201_v40 = vmax.f32 %v5185_v57, 0.0  ;;  %v5186_v34 = vadd.f32 %v6537_v24, %v10457_v46  ;;  %v5009_v12 = vpop.f32.mrb[11].mxu1 }
 0x3f3   : > { %v5199_v63 = vmax.f32 %v5183_v7, 0.0  ;;  %v5184_v0 = vadd.f32 %v10457_v46, %v5009_v12 }
 0x3f4   : > { %v6337_v33 = vpack.c.bf16 %v5201_v40, %v5201_v40  ;;  %v5300_v41 = vmax.f32 %v10518_v29, %v5201_v40  ;;  %v5202_v44 = vmax.f32 %v5186_v34, 0.0 }
 0x3f5   : > { %v6335_v48 = vpack.c.bf16 %v5199_v63, %v5199_v63  ;;  %v5298_v55 = vmax.f32 %v10521_v17, %v5199_v63  ;;  %v5200_v1 = vmax.f32 %v5184_v0, 0.0 }
 0x3f6   : > { %6294 = vst.msk [vmem:[%s10466_s11 + $0x68] sm:$0xf] %vm5158_vm12, %v6337_v33  ;;  %v6338_v14 = vpack.c.bf16 %v5202_v44, %v5202_v44  ;;  %v5301_v18 = vmax.f32 %v10526_v32, %v5202_v44 }
 0x3f7   : > { %6292 = vst.msk [vmem:[%s10466_s11 + $0x60] sm:$0xf] %vm5158_vm12, %v6335_v48  ;;  %v5310_v59 = vmax.f32 %v5298_v55, %v5300_v41  ;;  %v6336_v36 = vpack.c.bf16 %v5200_v1, %v5200_v1  ;;  %v5299_v22 = vmax.f32 %v10530_v53, %v5200_v1 }
 0x3f8   : > { %6295 = vst.msk [vmem:[%s10466_s11 + $0x6c] sm:$0xf] %vm5158_vm12, %v6338_v14 }
 0x3f9   : > { %5318 = vst.msk [vmem:[#allocation2 + $0x20] sm:$0xff] %vm1251_vm4, %v5310_v59  ;;  %v5311_v29 = vmax.f32 %v5299_v22, %v5301_v18 }
 0x3fa   : > { %6293 = vst.msk [vmem:[%s10466_s11 + $0x64] sm:$0xf] %vm5158_vm12, %v6336_v36 }
 0x3fb   : > { %5319 = vst.msk [vmem:[#allocation2 + $0x28] sm:$0xff] %vm1251_vm4, %v5311_v29 }
 0x402   : > { %v5326_v17 = vld [vmem:[#allocation2 + $0x20] ss:$2 sm:$0xff]  ;;  %v5334_v39 = vld [vmem:[#allocation2 + $0x21] ss:$2 sm:$0xff] }
 0x403   : > { %v5339_v3 = vmax.f32 %v5326_v17, %v5334_v39 }
 0x405   : > { %v5343_v32 = vpack.c.bf16 %v5339_v3, %v5339_v3 }
 0x407   : > { %5347 = vst.msk [vmem:[%s10553_s0 + $0x8] sm:$0xf] %vm5158_vm12, %v5343_v32 }
 0x40c   : > { %v6540_v13 = vpop.f32.mrb[12].mxu1 }
 0x40d   : > { %v5189_v53 = vadd.f32 %v6540_v13, %v10457_v46  ;;  %v5022_v10 = vpop.f32.mrb[13].mxu1 }
 0x40e   : > { %v5187_v20 = vadd.f32 %v10457_v46, %v5022_v10  ;;  %v6541_v62 = vpop.f32.mrb[14].mxu1 }
 0x40f   : > { %v5205_v8 = vmax.f32 %v5189_v53, 0.0  ;;  %v5190_v38 = vadd.f32 %v6541_v62, %v10457_v46  ;;  %v5025_v30 = vpop.f32.mrb[15].mxu1 }
 0x410   : > { %v5203_v58 = vmax.f32 %v5187_v20, 0.0  ;;  %v5188_v45 = vadd.f32 %v10457_v46, %v5025_v30 }
 0x411   : > { %v6341_v42 = vpack.c.bf16 %v5205_v8, %v5205_v8  ;;  %v5304_v25 = vmax.f32 %v10547_v26, %v5205_v8  ;;  %v5206_v60 = vmax.f32 %v5190_v38, 0.0 }
 0x412   : > { %v6339_v54 = vpack.c.bf16 %v5203_v58, %v5203_v58  ;;  %v5302_v50 = vmax.f32 %v10550_v61, %v5203_v58  ;;  %v5204_v4 = vmax.f32 %v5188_v45, 0.0 }
 0x413   : > { %6298 = vst.msk [vmem:[%s10466_s11 + $0x78] sm:$0xf] %vm5158_vm12, %v6341_v42  ;;  %v6342_v43 = vpack.c.bf16 %v5206_v60, %v5206_v60  ;;  %v5305_v27 = vmax.f32 %v10559_v37, %v5206_v60 }
 0x414   : > { %6296 = vst.msk [vmem:[%s10466_s11 + $0x70] sm:$0xf] %vm5158_vm12, %v6339_v54  ;;  %v5312_v46 = vmax.f32 %v5302_v50, %v5304_v25  ;;  %v6340_v26 = vpack.c.bf16 %v5204_v4, %v5204_v4  ;;  %v5303_v28 = vmax.f32 %v10563_v23, %v5204_v4 }
 0x415   : > { %6299 = vst.msk [vmem:[%s10466_s11 + $0x7c] sm:$0xf] %vm5158_vm12, %v6342_v43 }
 0x416   : > { %5320 = vst.msk [vmem:[#allocation2 + $0x30] sm:$0xff] %vm1251_vm4, %v5312_v46  ;;  %v5313_v61 = vmax.f32 %v5303_v28, %v5305_v27 }
 0x417   : > { %6297 = vst.msk [vmem:[%s10466_s11 + $0x74] sm:$0xf] %vm5158_vm12, %v6340_v26 }
 0x418   : > { %7196 = shalt.err (!%p7193_p13)
}
 0x419   : > { %s7197_s11 = scalar_lea.hbm %s10637_s18, 2048  ;;  %s7201_s4 = scalar_lea.hbm %s11034_s7, 16384 }
 0x41a   : > { %p7198_p0 = scmp.ne.s32.totalorder %s10637_s18, %s7197_s11  ;;  %p7202_p3 = scmp.lt.u32.totalorder %s10637_s18, %s11034_s7 }
 0x41b   : > { %p7203_p11 = scmp.lt.u32.totalorder %s7201_s4, %s7197_s11  ;;  %p7205_p9 = scmp.lt.u32.totalorder %s7197_s11, %s10637_s18 }
 0x41c   : > { %p7199_p2 = pnand %p7198_p0, %p11035_p12 }
 0x41d   : > { %p7204_p5 = por %p7203_p11, %p7202_p3 }
 0x41e   : > { %p7200_p1 = pneg %p7199_p2 }
 0x41f   : > { %p7206_p8 = por %p7205_p9, %p7204_p5 }
 0x421   : > { %p7207_p4 = pnand %p7206_p8, %p7200_p1 }
 0x423   : > { %7210 = shalt.err (!%p7207_p4)
}
 0x424   : > { %s7366_s8 = smov 64   ;;  %5321 = vst.msk [vmem:[#allocation2 + $0x38] sm:$0xff] %vm1251_vm4, %v5313_v61  ;;  %s6306_s29 = sshll.u32 %s7333_s24, 2 }
 0x425   : > { %6630 = dma.vmem_to_hbm [thread:$0]  (%p11035_p12), %s10629_s9, 2048, %s10637_s18, %s5350_s13, %s7366_s8, %s7366_s8, %s7358_s6  }
 0x426   : > { %s6307_s16 = sshll.u32 %s7337_s25, 4  ;;  %s5389_s21 = sshll.u32 %s10553_s0, 4  ;;  %s10680_s21 = int_to_ptr.vmem [resolvable:$true] %s5389_s21 }
 0x427   : > { %s5386_s17 = sadd.s32 %s6307_s16, %s6306_s29  ;;  %s11036_s15 = sld [smem:[#allocation118_spill]] }
 0x428   : > { %s6308_s12 = sshll.u32 %s5386_s17, 6  ;;  %s5355_s24 = scalar_lea.sflag [#allocation13], %s7687_s30 }
 0x429   : > { %s7211_s25 = scalar_lea.vmem %s10680_s21, 256  ;;  %s7367_s9 = smov [#allocation12]  }
 0x42a   : > { %p7212_p7 = scmp.ne.s32.totalorder %s10680_s21, %s7211_s25  ;;  %s7215_s18 = sshll.u32 %s7367_s9, 4  ;;  %s7216_s18 = int_to_ptr.vmem [resolvable:$false] %s7215_s18 }
 0x42b   : > { %v5328_v37 = vld [vmem:[#allocation2 + $0x30] ss:$2 sm:$0xff]  ;;  %v5336_v23 = vld [vmem:[#allocation2 + $0x31] ss:$2 sm:$0xff]  ;;  %s7217_s13 = scalar_lea.vmem %s7216_s18, 512  ;;  %p7218_p13 = scmp.lt.s32.totalorder %s10680_s21, %s7216_s18 }
 0x42c   : > { %v5340_v11 = vmax.f32 %v5328_v37, %v5336_v23  ;;  %p7213_p6 = pnand %p7212_p7, %p11035_p12  ;;  %p7219_p0 = scmp.lt.s32.totalorder %s7217_s13, %s7211_s25 }
 0x42d   : > { %s10678_s4 = scalar_lea.hbm %s11036_s15, %s6308_s12 }
 0x42e   : > { %v5344_v49 = vpack.c.bf16 %v5340_v11, %v5340_v11  ;;  %p7214_p10 = pneg %p7213_p6  ;;  %p7220_p2 = por %p7219_p0, %p7218_p13 }
 0x430   : > { %5348 = vst.msk [vmem:[%s10553_s0 + $0xc] sm:$0xf] %vm5158_vm12, %v5344_v49  ;;  %p7221_p1 = pnand %p7220_p2, %p7214_p10 }
 0x432   : > { %7224 = shalt.err (!%p7221_p1)
}
 0x433   : > { %s7225_s0 = scalar_lea.hbm %s10678_s4, 256  ;;  %s7229_s29 = scalar_lea.hbm %s11036_s15, 2048 }
 0x434   : > { %p7226_p3 = scmp.ne.s32.totalorder %s10678_s4, %s7225_s0  ;;  %p7230_p9 = scmp.lt.u32.totalorder %s10678_s4, %s11036_s15 }
 0x435   : > { %p7231_p8 = scmp.lt.u32.totalorder %s7229_s29, %s7225_s0  ;;  %p7233_p7 = scmp.lt.u32.totalorder %s7225_s0, %s10678_s4 }
 0x436   : > { %p7227_p11 = pnand %p7226_p3, %p11035_p12 }
 0x437   : > { %p7232_p4 = por %p7231_p8, %p7230_p9 }
 0x438   : > { %p7228_p5 = pneg %p7227_p11 }
 0x439   : > { %p7234_p6 = por %p7233_p7, %p7232_p4 }
 0x43b   : > { %p7235_p10 = pnand %p7234_p6, %p7228_p5 }
 0x43d   : > { %7238 = shalt.err (!%p7235_p10)
}
 0x43e   : > { %6631 = dma.vmem_to_hbm [thread:$0]  (%p11035_p12), %s10680_s21, 256, %s10678_s4, %s5355_s24, %s7366_s8, %s7366_s8, %s7358_s6  }
 0x43f PF: > { %s11037_s12 = sld [smem:[#allocation20_spill]]  ;;  %s11038_s11 = sld [smem:[#allocation22_spill]] }
 0x440   : > { %p6660_p13 = scmp.ge.s32.totalorder %s7349_s28, 2 }
 0x445   : > { %s5404_s14 = sand.u32 1, %s11037_s12   ;;  %p11039_p0 = scmp.ne.s32.totalorder %s11038_s11, 0 }
 0x446   : > { %s5405_s25 = scalar_lea.sflag [#allocation5], %s5404_s14 }
 0x447   : > { %p6649_p2 = pnand %p6660_p13, %p11039_p0 }
 0x449   : > { %7300 = dma.done.wait (!%p6649_p2), %s5405_s25, 2048  }
 0x44a   : > { %7302 = vsyncadd (!%p6649_p2), %s5405_s25, 4294965248  ;;  %s5414_s5 = scalar_lea.sflag [#allocation13], %s5404_s14 }
 0x44b   : > { %7304 = dma.done.wait (!%p6649_p2), %s5414_s5, 256  }
 0x44c   : > { %7306 = vsyncadd (!%p6649_p2), %s5414_s5, 4294967040  ;;  %s29_s28 = sadd.s32 1, %s7349_s28   ;;  %s11040_s25 = sld [smem:[#allocation21_spill]] }
 0x44d   : > { %p26_p1 = scmp.ge.s32.totalorder %s29_s28, 10   ;;  %s11041_s30 = sld [smem:[#allocation23_spill]] }
 0x44e   : > { %s11042_s27 = sld [smem:[#allocation25_spill]]  ;;  %s11043_s18 = smov %s7313_s19 }
 0x44f   : > { %s11044_s19 = smov %s7317_s20  ;;  %s11045_s20 = smov %s7636_s10 }
 0x450   : > { %s11046_s21 = smov %s7325_s22  ;;  %s11047_s22 = smov %s7329_s23 }
 0x451   : > { %s11048_s23 = smov %s7576_s2  ;;  %s11049_s24 = smov %s7341_s26 }
 0x452   :  { %28 = sbr.rel (!%p26_p1) target bundleno = 20 (0x14), region = 142 }
 0x453   : > { %s11050_s26 = smov %s11041_s30 }
 0x459   :  { %5419 = vsyncpa [#allocation4], 1 }
 0x45a   :  { %5421 = vsyncpa [#allocation4 + $0x1], 1 }
 0x45b   :  { %5422 = vsyncpa [#allocation7], 1 }
 0x45c   :  { %5424 = vsyncpa [#allocation7 + $0x1], 1 }
 0x45d   :  { %5425 = vsyncpa [#allocation10], 1 }
 0x45e   :  { %5426 = vsyncpa [#allocation5], 1 }
 0x45f   :  { %5428 = vsyncpa [#allocation5 + $0x1], 1 }
 0x460   :  { %5429 = vsyncpa [#allocation13], 1 }
 0x461   :  { %5431 = vsyncpa [#allocation13 + $0x1], 1 }

</bundles_post_ra>
